<compile_context>
chip_gen: v5e
topology: v5e:2x2
jax: 0.10.0
libtpu: 0.0.40
codegen_flags: <defaults>
</compile_context>

<pallas_src>
import jax
import jax.numpy as jnp
import numpy as np
from jax import lax
from jax.experimental import pallas as pl
from jax.experimental.pallas import tpu as pltpu


def _round_up(x, m):
    return ((x + m - 1) // m) * m


# ----------------------------------------------------------------------------
# LSTM cell with precomputed input gates (PyTorch gate order: i, f, g, o).
# Bias is already folded into gx; only h @ W_hh sits on the recurrence.
# ----------------------------------------------------------------------------
def _cell(gx, h, c, w_hh, hs):
    gates = gx + jnp.dot(h.astype(w_hh.dtype), w_hh,
                         preferred_element_type=jnp.float32)
    i = jax.nn.sigmoid(gates[:, 0 * hs:1 * hs])
    f = jax.nn.sigmoid(gates[:, 1 * hs:2 * hs])
    g = jnp.tanh(gates[:, 2 * hs:3 * hs])
    o = jax.nn.sigmoid(gates[:, 3 * hs:4 * hs])
    c_new = f * c + i * g
    h_new = o * jnp.tanh(c_new)
    return h_new, c_new


# ----------------------------------------------------------------------------
# Pallas kernel: 2-layer bi-LSTM (length masked) + option_linear + score dot
# ----------------------------------------------------------------------------
def _make_kernel(seq, tn, hs):
    def kernel(x_ref, len_ref, ctx_ref,
               w1x_ref, b1_ref, whh0f_ref, whh0b_ref,
               w2f_ref, w2b_ref, b2_ref, whh1f_ref, whh1b_ref,
               wlinf_ref, wlinb_ref, blin_ref, beta_ref,
               out_ref,
               gf_s, gb_s, fwd_s, bwd_s):
        lens = len_ref[...]                                    # [TN, 1] int32
        zero_h = jnp.zeros((tn, hs), jnp.float32)

        whh0f = whh0f_ref[...]; whh0b = whh0b_ref[...]
        whh1f = whh1f_ref[...]; whh1b = whh1b_ref[...]

        # ---- layer 1: hoisted input gates (fwd|bwd fused on output axis) ---
        x_flat = x_ref[...].reshape(seq * tn, -1)              # bf16 [SEQ*TN, E]
        g1 = jnp.dot(x_flat, w1x_ref[...],
                     preferred_element_type=jnp.float32) + b1_ref[...]
        gf_s[...] = g1[:, 0:4 * hs].reshape(seq, tn, 4 * hs)
        gb_s[...] = g1[:, 4 * hs:8 * hs].reshape(seq, tn, 4 * hs)

        # ---- layer 1: fused fwd/bwd butterfly recurrence --------------------
        def l1(s, carry):
            hf, cf, hb, cb = carry
            tb = seq - 1 - s
            hf_new, cf_new = _cell(gf_s[s], hf, cf, whh0f, hs)
            mf = lens > s
            hf = jnp.where(mf, hf_new, hf)
            cf = jnp.where(mf, cf_new, cf)
            fwd_s[s] = hf.astype(jnp.bfloat16)
            hb_new, cb_new = _cell(gb_s[tb], hb, cb, whh0b, hs)
            mb = lens > tb
            hb = jnp.where(mb, hb_new, hb)
            cb = jnp.where(mb, cb_new, cb)
            bwd_s[tb] = hb.astype(jnp.bfloat16)
            return hf, cf, hb, cb

        lax.fori_loop(0, seq, l1, (zero_h, zero_h, zero_h, zero_h), unroll=True)

        # NOTE: nn.LSTM inter-layer dropout is identity in eval mode.

        # ---- layer 2: hoisted input gates from layer-1 outputs --------------
        # (2*HS input weight split by rows into fwd/bwd halves -> no concat)
        f_flat = fwd_s[...].reshape(seq * tn, hs)
        b_flat = bwd_s[...].reshape(seq * tn, hs)
        g2 = (jnp.dot(f_flat, w2f_ref[...], preferred_element_type=jnp.float32)
              + jnp.dot(b_flat, w2b_ref[...], preferred_element_type=jnp.float32)
              + b2_ref[...])
        gf_s[...] = g2[:, 0:4 * hs].reshape(seq, tn, 4 * hs)
        gb_s[...] = g2[:, 4 * hs:8 * hs].reshape(seq, tn, 4 * hs)

        # ---- layer 2: fused fwd/bwd butterfly recurrence (final h only) -----
        def l2(s, carry):
            hf, cf, hb, cb = carry
            tb = seq - 1 - s
            hf_new, cf_new = _cell(gf_s[s], hf, cf, whh1f, hs)
            mf = lens > s
            hf = jnp.where(mf, hf_new, hf)
            cf = jnp.where(mf, cf_new, cf)
            hb_new, cb_new = _cell(gb_s[tb], hb, cb, whh1b, hs)
            mb = lens > tb
            hb = jnp.where(mb, hb_new, hb)
            cb = jnp.where(mb, cb_new, cb)
            return hf, cf, hb, cb

        h2f, _, h2b, _ = lax.fori_loop(0, seq, l2,
                                       (zero_h, zero_h, zero_h, zero_h),
                                       unroll=True)

        # option_linear(concat(h2f, h2b)) done as split-by-rows matmuls
        lin = (jnp.dot(h2f.astype(jnp.bfloat16), wlinf_ref[...],
                       preferred_element_type=jnp.float32)
               + jnp.dot(h2b.astype(jnp.bfloat16), wlinb_ref[...],
                         preferred_element_type=jnp.float32)
               + blin_ref[...])

        # zero-length rows keep LayerNorm(zeros) == beta; valid rows keep the
        # raw option_linear output (matches the PyTorch module).
        embed = jnp.where(lens > 0, lin, beta_ref[...])        # [TN, HS] f32

        # scores = matmul(options_embed, context_vec[..., None]).squeeze(-1)
        out_ref[...] = jnp.sum(embed * ctx_ref[...], axis=-1, keepdims=True)

    return kernel


def _resident_spec(shape):
    nd = len(shape)
    return pl.BlockSpec(shape, lambda i, _nd=nd: (0,) * _nd)


def _auto_tile_n(requested, N, seq, e, hs, budget_bytes):
    """Largest TILE_N (multiple of 8, capped at `requested` and padded N) such
    that streamed blocks + scratches + resident weights fit `budget_bytes`."""
    # per-row bytes: gate scratches (f32) + layer-1 out scratches (bf16)
    #              + x stream (bf16, double-buffered) + ctx/lens/out streams.
    per_row = (2 * seq * 4 * hs * 4          # gf_s + gb_s
               + 2 * seq * hs * 2            # fwd_s + bwd_s
               + 2 * seq * e * 2             # x block (x2 double buffer)
               + 2 * (hs * 4 + 4 + 4))       # ctx / lens / out (x2)
    resident = (68 * hs * hs + 16 * e * hs + 80 * hs + 4096)   # fused weights
    avail = max(budget_bytes - resident, per_row * 8)
    cap = max(8, (avail // per_row) // 8 * 8)
    tn = min(requested, cap, _round_up(max(N, 1), 8))
    return max(8, _round_up(tn, 8))


# ----------------------------------------------------------------------------
# Wrapper (glue: embedding gather, weight fusion/casting, padding, reshapes)
# ----------------------------------------------------------------------------
def disc_decoder_scores(params, options, opts_len, context_vec, *,
                        tile_n=256, vmem_budget_bytes=40 * 1024 * 1024,
                        test_mode=False, num_rounds=None):
    BS, NH, NO, SEQ = options.shape
    HS = params['hidden_size']
    E = params['emb'].shape[1]
    N = BS * NH * NO

    # VMEM-aware tile sizing (shrink vmem_budget_bytes for v7x's 64 MiB/TC).
    tile_n = _auto_tile_n(tile_n, N, SEQ, E, HS, vmem_budget_bytes)
    n_pad = _round_up(N, tile_n)
    grid = (n_pad // tile_n,)

    # Embedding lookup (padding_idx=0 row of the table is zero) + layout prep.
    x = params['emb'][options.reshape(N, SEQ)]                 # [N, SEQ, E]
    x = jnp.transpose(x, (1, 0, 2))                            # [SEQ, N, E]
    lens = opts_len.reshape(N, 1).astype(jnp.int32)            # [N, 1]
    ctx = jnp.broadcast_to(context_vec[:, :, None, :],
                           (BS, NH, NO, HS)).reshape(N, HS).astype(jnp.float32)

    pad = n_pad - N
    if pad:
        x = jnp.pad(x, ((0, 0), (0, pad), (0, 0)))
        lens = jnp.pad(lens, ((0, pad), (0, 0)))               # len 0 -> beta path
        ctx = jnp.pad(ctx, ((0, pad), (0, 0)))
    x = x.astype(jnp.bfloat16)

    # Fuse fwd|bwd weights on the output axis, split 2*HS inputs by rows,
    # cast matmul operands to bf16 (biases / LayerNorm beta stay f32).
    bf16 = jnp.bfloat16
    w1x = jnp.concatenate([params['wih0f'], params['wih0b']], axis=1).astype(bf16)
    b1 = jnp.concatenate([params['b0f'], params['b0b']], axis=1)
    w2f = jnp.concatenate([params['wih1f'][:HS], params['wih1b'][:HS]], axis=1).astype(bf16)
    w2b = jnp.concatenate([params['wih1f'][HS:], params['wih1b'][HS:]], axis=1).astype(bf16)
    b2 = jnp.concatenate([params['b1f'], params['b1b']], axis=1)
    whh0f = params['whh0f'].astype(bf16)
    whh0b = params['whh0b'].astype(bf16)
    whh1f = params['whh1f'].astype(bf16)
    whh1b = params['whh1b'].astype(bf16)
    wlinf = params['wlin'][:HS].astype(bf16)
    wlinb = params['wlin'][HS:].astype(bf16)
    blin = params['blin']
    beta = params['beta']

    stream_specs = [
        pl.BlockSpec((SEQ, tile_n, E), lambda i: (0, i, 0)),   # x (streamed)
        pl.BlockSpec((tile_n, 1), lambda i: (i, 0)),           # lens (streamed)
        pl.BlockSpec((tile_n, HS), lambda i: (i, 0)),          # ctx (streamed)
    ]
    weights = [w1x, b1, whh0f, whh0b, w2f, w2b, b2, whh1f, whh1b,
               wlinf, wlinb, blin, beta]
    weight_specs = [_resident_spec(w.shape) for w in weights]  # resident in VMEM

    out = pl.pallas_call(
        _make_kernel(SEQ, tile_n, HS),
        out_shape=jax.ShapeDtypeStruct((n_pad, 1), jnp.float32),
        grid=grid,
        in_specs=stream_specs + weight_specs,
        out_specs=pl.BlockSpec((tile_n, 1), lambda i: (i, 0)),
        scratch_shapes=[
            pltpu.VMEM((SEQ, tile_n, 4 * HS), jnp.float32),    # fwd input gates
            pltpu.VMEM((SEQ, tile_n, 4 * HS), jnp.float32),    # bwd input gates
            pltpu.VMEM((SEQ, tile_n, HS), jnp.bfloat16),       # layer-1 fwd outs
            pltpu.VMEM((SEQ, tile_n, HS), jnp.bfloat16),       # layer-1 bwd outs
        ],
        compiler_params=pltpu.CompilerParams(
            dimension_semantics=("parallel",),
            vmem_limit_bytes=48 * 1024 * 1024),
    )(x, lens, ctx, *weights)

    scores = out[:N, 0].reshape(BS, NH, NO)
    if test_mode:
        scores = scores[:, num_rounds - 1]
    return scores


# ----------------------------------------------------------------------------
# Pure-JAX f32 reference (original weight layout) for the correctness check
# ----------------------------------------------------------------------------
def _ref_cell(x_t, h, c, w_ih, w_hh, b, hs):
    gates = (jnp.dot(x_t, w_ih, preferred_element_type=jnp.float32)
             + jnp.dot(h, w_hh, preferred_element_type=jnp.float32) + b)
    i = jax.nn.sigmoid(gates[:, 0 * hs:1 * hs])
    f = jax.nn.sigmoid(gates[:, 1 * hs:2 * hs])
    g = jnp.tanh(gates[:, 2 * hs:3 * hs])
    o = jax.nn.sigmoid(gates[:, 3 * hs:4 * hs])
    c_new = f * c + i * g
    h_new = o * jnp.tanh(c_new)
    return h_new, c_new


def _ref_dir(x, lens, w_ih, w_hh, b, hs, reverse):
    SEQ, N, _ = x.shape
    h = jnp.zeros((N, hs), jnp.float32)
    c = jnp.zeros((N, hs), jnp.float32)
    outs = [None] * SEQ
    order = range(SEQ - 1, -1, -1) if reverse else range(SEQ)
    for t in order:
        h_new, c_new = _ref_cell(x[t], h, c, w_ih, w_hh, b, hs)
        mask = lens > t
        h = jnp.where(mask, h_new, h)
        c = jnp.where(mask, c_new, c)
        outs[t] = h
    return jnp.stack(outs, 0), h


def reference_scores(params, options, opts_len, context_vec):
    BS, NH, NO, SEQ = options.shape
    HS = params['hidden_size']
    N = BS * NH * NO
    x = params['emb'][options.reshape(N, SEQ)]
    x = jnp.transpose(x, (1, 0, 2)).astype(jnp.float32)
    lens = opts_len.reshape(N, 1).astype(jnp.int32)
    ctx = jnp.broadcast_to(context_vec[:, :, None, :],
                           (BS, NH, NO, HS)).reshape(N, HS).astype(jnp.float32)

    f1, _ = _ref_dir(x, lens, params['wih0f'], params['whh0f'], params['b0f'], HS, False)
    b1, _ = _ref_dir(x, lens, params['wih0b'], params['whh0b'], params['b0b'], HS, True)
    x2 = jnp.concatenate([f1, b1], axis=-1)
    _, h2f = _ref_dir(x2, lens, params['wih1f'], params['whh1f'], params['b1f'], HS, False)
    _, h2b = _ref_dir(x2, lens, params['wih1b'], params['whh1b'], params['b1b'], HS, True)
    feat = jnp.concatenate([h2f, h2b], axis=-1)
    lin = jnp.dot(feat, params['wlin'], preferred_element_type=jnp.float32) + params['blin']
    embed = jnp.where(lens > 0, lin, params['beta'])
    return jnp.sum(embed * ctx, axis=-1).reshape(BS, NH, NO)


# ----------------------------------------------------------------------------
# Deterministic parameter init (synthetic; shapes per the module __init__)
# ----------------------------------------------------------------------------
def init_params(key, vocab, emb_size, hs):
    ks = iter(jax.random.split(key, 32))

    def w(shape, scale=0.1):
        return (scale * jax.random.normal(next(ks), shape)).astype(jnp.float32)

    emb = w((vocab, emb_size), 0.5)
    emb = emb.at[0].set(0.0)                    # padding_idx=0

    p = dict(emb=emb, hidden_size=hs)
    # layer 0 (input = emb_size), forward / backward
    p['wih0f'] = w((emb_size, 4 * hs)); p['whh0f'] = w((hs, 4 * hs)); p['b0f'] = w((1, 4 * hs))
    p['wih0b'] = w((emb_size, 4 * hs)); p['whh0b'] = w((hs, 4 * hs)); p['b0b'] = w((1, 4 * hs))
    # layer 1 (input = 2*hs), forward / backward
    p['wih1f'] = w((2 * hs, 4 * hs)); p['whh1f'] = w((hs, 4 * hs)); p['b1f'] = w((1, 4 * hs))
    p['wih1b'] = w((2 * hs, 4 * hs)); p['whh1b'] = w((hs, 4 * hs)); p['b1b'] = w((1, 4 * hs))
    # option_linear: Linear(2*hs -> hs)
    p['wlin'] = w((2 * hs, hs)); p['blin'] = w((1, hs))
    # LayerNorm(hs): only beta matters for LayerNorm(zeros); gamma * 0 == 0
    p['beta'] = w((1, hs))
    return p


if __name__ == "__main__":
    # small shapes consistent with the forward:
    BS, NH, NO, SEQ = 2, 2, 5, 8
    VOCAB, E, HS = 50, 32, 32          # txt_vocab_size, txt_embedding_size, hidden_size

    key = jax.random.PRNGKey(0)
    kp, ko, kl, kc = jax.random.split(key, 4)
    params = init_params(kp, VOCAB, E, HS)

    options = jax.random.randint(ko, (BS, NH, NO, SEQ), 1, VOCAB, dtype=jnp.int32)
    opts_len = jax.random.randint(kl, (BS, NH, NO), 0, SEQ + 1, dtype=jnp.int32)
    opts_len = opts_len.at[0, 0, 0].set(0)      # exercise the zero-length / beta path
    pos = jnp.arange(SEQ)
    options = jnp.where(pos[None, None, None, :] < opts_len[..., None], options, 0)

    context_vec = jax.random.normal(kc, (BS, NH, HS)).astype(jnp.float32)

    # tile_n=8 so the demo exercises a multi-step grid and row padding.
    scores = disc_decoder_scores(params, options, opts_len, context_vec, tile_n=8)
    scores = jax.block_until_ready(scores)

    ref = reference_scores(params, options, opts_len, context_vec)
    # Tolerance widened vs the pure-f32 reference because matmul operands are
    # bf16 in the kernel (accumulation and state remain f32).
    np.testing.assert_allclose(np.asarray(scores), np.asarray(ref),
                               atol=5e-2, rtol=5e-2)
    assert scores.shape == (BS, NH, NO)
    print("KERNEL_OK")
</pallas_src>

<mosaic_0001>
module attributes {stable_mosaic.version = 11 : i64} {
  func.func @kernel(%arg0: i32, %arg1: memref<8x8x32xbf16, #tpu.memory_space<vmem>>, %arg2: memref<8x1xi32, #tpu.memory_space<vmem>>, %arg3: memref<8x32xf32, #tpu.memory_space<vmem>>, %arg4: memref<32x256xbf16, #tpu.memory_space<vmem>>, %arg5: memref<1x256xf32, #tpu.memory_space<vmem>>, %arg6: memref<32x128xbf16, #tpu.memory_space<vmem>>, %arg7: memref<32x128xbf16, #tpu.memory_space<vmem>>, %arg8: memref<32x256xbf16, #tpu.memory_space<vmem>>, %arg9: memref<32x256xbf16, #tpu.memory_space<vmem>>, %arg10: memref<1x256xf32, #tpu.memory_space<vmem>>, %arg11: memref<32x128xbf16, #tpu.memory_space<vmem>>, %arg12: memref<32x128xbf16, #tpu.memory_space<vmem>>, %arg13: memref<32x32xbf16, #tpu.memory_space<vmem>>, %arg14: memref<32x32xbf16, #tpu.memory_space<vmem>>, %arg15: memref<1x32xf32, #tpu.memory_space<vmem>>, %arg16: memref<1x32xf32, #tpu.memory_space<vmem>>, %arg17: memref<8x1xf32, #tpu.memory_space<vmem>>, %arg18: memref<8x8x128xf32, #tpu.memory_space<vmem>>, %arg19: memref<8x8x128xf32, #tpu.memory_space<vmem>>, %arg20: memref<8x8x32xbf16, #tpu.memory_space<vmem>>, %arg21: memref<8x8x32xbf16, #tpu.memory_space<vmem>>) attributes {dimension_semantics = [#tpu.dimension_semantics<parallel>], iteration_bounds = array<i64: 3>, scalar_prefetch = 0 : i64, scratch_operands = 4 : i64, tpu.core_type = #tpu.core_type<tc>, window_params = [{transform_indices = @transform_0, window_bounds = array<i64: 8, 8, 32>}, {transform_indices = @transform_1, window_bounds = array<i64: 8, 1>}, {transform_indices = @transform_2, window_bounds = array<i64: 8, 32>}, {pipeline_mode = #tpu.pipeline_mode<synchronous>, transform_indices = @transform_3, window_bounds = array<i64: 32, 256>}, {pipeline_mode = #tpu.pipeline_mode<synchronous>, transform_indices = @transform_4, window_bounds = array<i64: 1, 256>}, {pipeline_mode = #tpu.pipeline_mode<synchronous>, transform_indices = @transform_5, window_bounds = array<i64: 32, 128>}, {pipeline_mode = #tpu.pipeline_mode<synchronous>, transform_indices = @transform_6, window_bounds = array<i64: 32, 128>}, {pipeline_mode = #tpu.pipeline_mode<synchronous>, transform_indices = @transform_7, window_bounds = array<i64: 32, 256>}, {pipeline_mode = #tpu.pipeline_mode<synchronous>, transform_indices = @transform_8, window_bounds = array<i64: 32, 256>}, {pipeline_mode = #tpu.pipeline_mode<synchronous>, transform_indices = @transform_9, window_bounds = array<i64: 1, 256>}, {pipeline_mode = #tpu.pipeline_mode<synchronous>, transform_indices = @transform_10, window_bounds = array<i64: 32, 128>}, {pipeline_mode = #tpu.pipeline_mode<synchronous>, transform_indices = @transform_11, window_bounds = array<i64: 32, 128>}, {pipeline_mode = #tpu.pipeline_mode<synchronous>, transform_indices = @transform_12, window_bounds = array<i64: 32, 32>}, {pipeline_mode = #tpu.pipeline_mode<synchronous>, transform_indices = @transform_13, window_bounds = array<i64: 32, 32>}, {pipeline_mode = #tpu.pipeline_mode<synchronous>, transform_indices = @transform_14, window_bounds = array<i64: 1, 32>}, {pipeline_mode = #tpu.pipeline_mode<synchronous>, transform_indices = @transform_15, window_bounds = array<i64: 1, 32>}, {transform_indices = @transform_16, window_bounds = array<i64: 8, 1>}]} {
    %c0 = arith.constant 0 : index
    %c0_0 = arith.constant 0 : index
    %0 = vector.load %arg2[%c0, %c0_0] : memref<8x1xi32, #tpu.memory_space<vmem>>, vector<8x1xi32>
    %cst = arith.constant 0.000000e+00 : f32
    %1 = vector.broadcast %cst : f32 to vector<8x32xf32>
    %c0_1 = arith.constant 0 : index
    %c0_2 = arith.constant 0 : index
    %2 = vector.load %arg6[%c0_1, %c0_2] : memref<32x128xbf16, #tpu.memory_space<vmem>>, vector<32x128xbf16>
    %c0_3 = arith.constant 0 : index
    %c0_4 = arith.constant 0 : index
    %3 = vector.load %arg7[%c0_3, %c0_4] : memref<32x128xbf16, #tpu.memory_space<vmem>>, vector<32x128xbf16>
    %c0_5 = arith.constant 0 : index
    %c0_6 = arith.constant 0 : index
    %4 = vector.load %arg11[%c0_5, %c0_6] : memref<32x128xbf16, #tpu.memory_space<vmem>>, vector<32x128xbf16>
    %c0_7 = arith.constant 0 : index
    %c0_8 = arith.constant 0 : index
    %5 = vector.load %arg12[%c0_7, %c0_8] : memref<32x128xbf16, #tpu.memory_space<vmem>>, vector<32x128xbf16>
    %c0_9 = arith.constant 0 : index
    %c0_10 = arith.constant 0 : index
    %c0_11 = arith.constant 0 : index
    %6 = vector.load %arg1[%c0_9, %c0_10, %c0_11] : memref<8x8x32xbf16, #tpu.memory_space<vmem>>, vector<8x8x32xbf16>
    %7 = vector.shape_cast %6 : vector<8x8x32xbf16> to vector<64x32xbf16>
    %c0_12 = arith.constant 0 : index
    %c0_13 = arith.constant 0 : index
    %8 = vector.load %arg4[%c0_12, %c0_13] : memref<32x256xbf16, #tpu.memory_space<vmem>>, vector<32x256xbf16>
    %cst_14 = arith.constant dense<0.000000e+00> : vector<64x256xf32>
    %9 = tpu.matmul %7, %8, %cst_14 {dimension_numbers = #tpu.dot_dimension_numbers<[1], [0], [0], [1], [0, 0, 1, 1], [], []>} : vector<64x32xbf16>, vector<32x256xbf16>, vector<64x256xf32> -> vector<64x256xf32>
    %c0_15 = arith.constant 0 : index
    %c0_16 = arith.constant 0 : index
    %10 = vector.load %arg5[%c0_15, %c0_16] : memref<1x256xf32, #tpu.memory_space<vmem>>, vector<1x256xf32>
    %11 = vector.broadcast %10 : vector<1x256xf32> to vector<64x256xf32>
    %12 = arith.addf %9, %11 : vector<64x256xf32>
    %13 = vector.extract_strided_slice %12 {offsets = [0, 0], sizes = [64, 128], strides = [1, 1]} : vector<64x256xf32> to vector<64x128xf32>
    %14 = vector.shape_cast %13 : vector<64x128xf32> to vector<8x8x128xf32>
    %c0_17 = arith.constant 0 : index
    %c0_18 = arith.constant 0 : index
    %c0_19 = arith.constant 0 : index
    %15 = vector.load %arg18[%c0_17, %c0_18, %c0_19] : memref<8x8x128xf32, #tpu.memory_space<vmem>>, vector<8x8x128xf32>
    tpu.vector_store %arg18[%c0_17, %c0_18, %c0_19], %14 {strides = array<i32>} : memref<8x8x128xf32, #tpu.memory_space<vmem>>, vector<8x8x128xf32>,
    %16 = vector.extract_strided_slice %12 {offsets = [0, 128], sizes = [64, 128], strides = [1, 1]} : vector<64x256xf32> to vector<64x128xf32>
    %17 = vector.shape_cast %16 : vector<64x128xf32> to vector<8x8x128xf32>
    %c0_20 = arith.constant 0 : index
    %c0_21 = arith.constant 0 : index
    %c0_22 = arith.constant 0 : index
    %18 = vector.load %arg19[%c0_20, %c0_21, %c0_22] : memref<8x8x128xf32, #tpu.memory_space<vmem>>, vector<8x8x128xf32>
    tpu.vector_store %arg19[%c0_20, %c0_21, %c0_22], %17 {strides = array<i32>} : memref<8x8x128xf32, #tpu.memory_space<vmem>>, vector<8x8x128xf32>,
    %c0_i32 = arith.constant 0 : i32
    %c7_i32 = arith.constant 7 : i32
    %19 = arith.subi %c7_i32, %c0_i32 : i32
    %20 = arith.index_cast %c0_i32 : i32 to index
    %c0_23 = arith.constant 0 : index
    %c0_24 = arith.constant 0 : index
    %21 = vector.load %arg18[%20, %c0_23, %c0_24] : memref<8x8x128xf32, #tpu.memory_space<vmem>>, vector<1x8x128xf32>
    %22 = vector.shape_cast %21 : vector<1x8x128xf32> to vector<8x128xf32>
    %23 = arith.truncf %1 : vector<8x32xf32> to vector<8x32xbf16>
    %cst_25 = arith.constant dense<0.000000e+00> : vector<8x128xf32>
    %24 = tpu.matmul %23, %2, %cst_25 {dimension_numbers = #tpu.dot_dimension_numbers<[1], [0], [0], [1], [0, 0, 1, 1], [], []>} : vector<8x32xbf16>, vector<32x128xbf16>, vector<8x128xf32> -> vector<8x128xf32>
    %25 = arith.addf %22, %24 : vector<8x128xf32>
    %26 = vector.extract_strided_slice %25 {offsets = [0, 0], sizes = [8, 32], strides = [1, 1]} : vector<8x128xf32> to vector<8x32xf32>
    %27 = arith.negf %26 : vector<8x32xf32>
    %28 = math.exp %27 : vector<8x32xf32>
    %cst_26 = arith.constant 1.000000e+00 : f32
    %29 = vector.broadcast %cst_26 : f32 to vector<8x32xf32>
    %30 = arith.addf %29, %28 : vector<8x32xf32>
    %31 = arith.divf %29, %30 : vector<8x32xf32>
    %32 = vector.extract_strided_slice %25 {offsets = [0, 32], sizes = [8, 32], strides = [1, 1]} : vector<8x128xf32> to vector<8x32xf32>
    %33 = arith.negf %32 : vector<8x32xf32>
    %34 = math.exp %33 : vector<8x32xf32>
    %cst_27 = arith.constant 1.000000e+00 : f32
    %35 = vector.broadcast %cst_27 : f32 to vector<8x32xf32>
    %36 = arith.addf %35, %34 : vector<8x32xf32>
    %37 = arith.divf %35, %36 : vector<8x32xf32>
    %38 = vector.extract_strided_slice %25 {offsets = [0, 64], sizes = [8, 32], strides = [1, 1]} : vector<8x128xf32> to vector<8x32xf32>
    %39 = math.tanh %38 : vector<8x32xf32>
    %40 = vector.extract_strided_slice %25 {offsets = [0, 96], sizes = [8, 32], strides = [1, 1]} : vector<8x128xf32> to vector<8x32xf32>
    %41 = arith.negf %40 : vector<8x32xf32>
    %42 = math.exp %41 : vector<8x32xf32>
    %cst_28 = arith.constant 1.000000e+00 : f32
    %43 = vector.broadcast %cst_28 : f32 to vector<8x32xf32>
    %44 = arith.addf %43, %42 : vector<8x32xf32>
    %45 = arith.divf %43, %44 : vector<8x32xf32>
    %46 = arith.mulf %37, %1 : vector<8x32xf32>
    %47 = arith.mulf %31, %39 : vector<8x32xf32>
    %48 = arith.addf %46, %47 : vector<8x32xf32>
    %49 = math.tanh %48 : vector<8x32xf32>
    %50 = arith.mulf %45, %49 : vector<8x32xf32>
    %51 = vector.broadcast %c0_i32 : i32 to vector<8x1xi32>
    %52 = arith.cmpi sgt, %0, %51 : vector<8x1xi32>
    %53 = vector.shape_cast %52 : vector<8x1xi1> to vector<8x1xi1>
    %54 = vector.broadcast %53 : vector<8x1xi1> to vector<8x32xi1>
    %55 = arith.select %54, %50, %1 : vector<8x32xi1>, vector<8x32xf32>
    %56 = vector.shape_cast %52 : vector<8x1xi1> to vector<8x1xi1>
    %57 = vector.broadcast %56 : vector<8x1xi1> to vector<8x32xi1>
    %58 = arith.select %57, %48, %1 : vector<8x32xi1>, vector<8x32xf32>
    %59 = arith.truncf %55 : vector<8x32xf32> to vector<8x32xbf16>
    %60 = arith.index_cast %c0_i32 : i32 to index
    %c0_29 = arith.constant 0 : index
    %c0_30 = arith.constant 0 : index
    %61 = vector.load %arg20[%60, %c0_29, %c0_30] : memref<8x8x32xbf16, #tpu.memory_space<vmem>>, vector<1x8x32xbf16>
    %62 = vector.shape_cast %61 : vector<1x8x32xbf16> to vector<8x32xbf16>
    %63 = vector.shape_cast %59 : vector<8x32xbf16> to vector<1x8x32xbf16>
    tpu.vector_store %arg20[%60, %c0_29, %c0_30], %63 {strides = array<i32>} : memref<8x8x32xbf16, #tpu.memory_space<vmem>>, vector<1x8x32xbf16>,
    %64 = arith.index_cast %19 : i32 to index
    %c0_31 = arith.constant 0 : index
    %c0_32 = arith.constant 0 : index
    %65 = vector.load %arg19[%64, %c0_31, %c0_32] : memref<8x8x128xf32, #tpu.memory_space<vmem>>, vector<1x8x128xf32>
    %66 = vector.shape_cast %65 : vector<1x8x128xf32> to vector<8x128xf32>
    %67 = arith.truncf %1 : vector<8x32xf32> to vector<8x32xbf16>
    %cst_33 = arith.constant dense<0.000000e+00> : vector<8x128xf32>
    %68 = tpu.matmul %67, %3, %cst_33 {dimension_numbers = #tpu.dot_dimension_numbers<[1], [0], [0], [1], [0, 0, 1, 1], [], []>} : vector<8x32xbf16>, vector<32x128xbf16>, vector<8x128xf32> -> vector<8x128xf32>
    %69 = arith.addf %66, %68 : vector<8x128xf32>
    %70 = vector.extract_strided_slice %69 {offsets = [0, 0], sizes = [8, 32], strides = [1, 1]} : vector<8x128xf32> to vector<8x32xf32>
    %71 = arith.negf %70 : vector<8x32xf32>
    %72 = math.exp %71 : vector<8x32xf32>
    %cst_34 = arith.constant 1.000000e+00 : f32
    %73 = vector.broadcast %cst_34 : f32 to vector<8x32xf32>
    %74 = arith.addf %73, %72 : vector<8x32xf32>
    %75 = arith.divf %73, %74 : vector<8x32xf32>
    %76 = vector.extract_strided_slice %69 {offsets = [0, 32], sizes = [8, 32], strides = [1, 1]} : vector<8x128xf32> to vector<8x32xf32>
    %77 = arith.negf %76 : vector<8x32xf32>
    %78 = math.exp %77 : vector<8x32xf32>
    %cst_35 = arith.constant 1.000000e+00 : f32
    %79 = vector.broadcast %cst_35 : f32 to vector<8x32xf32>
    %80 = arith.addf %79, %78 : vector<8x32xf32>
    %81 = arith.divf %79, %80 : vector<8x32xf32>
    %82 = vector.extract_strided_slice %69 {offsets = [0, 64], sizes = [8, 32], strides = [1, 1]} : vector<8x128xf32> to vector<8x32xf32>
    %83 = math.tanh %82 : vector<8x32xf32>
    %84 = vector.extract_strided_slice %69 {offsets = [0, 96], sizes = [8, 32], strides = [1, 1]} : vector<8x128xf32> to vector<8x32xf32>
    %85 = arith.negf %84 : vector<8x32xf32>
    %86 = math.exp %85 : vector<8x32xf32>
    %cst_36 = arith.constant 1.000000e+00 : f32
    %87 = vector.broadcast %cst_36 : f32 to vector<8x32xf32>
    %88 = arith.addf %87, %86 : vector<8x32xf32>
    %89 = arith.divf %87, %88 : vector<8x32xf32>
    %90 = arith.mulf %81, %1 : vector<8x32xf32>
    %91 = arith.mulf %75, %83 : vector<8x32xf32>
    %92 = arith.addf %90, %91 : vector<8x32xf32>
    %93 = math.tanh %92 : vector<8x32xf32>
    %94 = arith.mulf %89, %93 : vector<8x32xf32>
    %95 = vector.broadcast %19 : i32 to vector<8x1xi32>
    %96 = arith.cmpi sgt, %0, %95 : vector<8x1xi32>
    %97 = vector.shape_cast %96 : vector<8x1xi1> to vector<8x1xi1>
    %98 = vector.broadcast %97 : vector<8x1xi1> to vector<8x32xi1>
    %99 = arith.select %98, %94, %1 : vector<8x32xi1>, vector<8x32xf32>
    %100 = vector.shape_cast %96 : vector<8x1xi1> to vector<8x1xi1>
    %101 = vector.broadcast %100 : vector<8x1xi1> to vector<8x32xi1>
    %102 = arith.select %101, %92, %1 : vector<8x32xi1>, vector<8x32xf32>
    %103 = arith.truncf %99 : vector<8x32xf32> to vector<8x32xbf16>
    %104 = arith.index_cast %19 : i32 to index
    %c0_37 = arith.constant 0 : index
    %c0_38 = arith.constant 0 : index
    %105 = vector.load %arg21[%104, %c0_37, %c0_38] : memref<8x8x32xbf16, #tpu.memory_space<vmem>>, vector<1x8x32xbf16>
    %106 = vector.shape_cast %105 : vector<1x8x32xbf16> to vector<8x32xbf16>
    %107 = vector.shape_cast %103 : vector<8x32xbf16> to vector<1x8x32xbf16>
    tpu.vector_store %arg21[%104, %c0_37, %c0_38], %107 {strides = array<i32>} : memref<8x8x32xbf16, #tpu.memory_space<vmem>>, vector<1x8x32xbf16>,
    %c1_i32 = arith.constant 1 : i32
    %c7_i32_39 = arith.constant 7 : i32
    %108 = arith.subi %c7_i32_39, %c1_i32 : i32
    %109 = arith.index_cast %c1_i32 : i32 to index
    %c0_40 = arith.constant 0 : index
    %c0_41 = arith.constant 0 : index
    %110 = vector.load %arg18[%109, %c0_40, %c0_41] : memref<8x8x128xf32, #tpu.memory_space<vmem>>, vector<1x8x128xf32>
    %111 = vector.shape_cast %110 : vector<1x8x128xf32> to vector<8x128xf32>
    %112 = arith.truncf %55 : vector<8x32xf32> to vector<8x32xbf16>
    %cst_42 = arith.constant dense<0.000000e+00> : vector<8x128xf32>
    %113 = tpu.matmul %112, %2, %cst_42 {dimension_numbers = #tpu.dot_dimension_numbers<[1], [0], [0], [1], [0, 0, 1, 1], [], []>} : vector<8x32xbf16>, vector<32x128xbf16>, vector<8x128xf32> -> vector<8x128xf32>
    %114 = arith.addf %111, %113 : vector<8x128xf32>
    %115 = vector.extract_strided_slice %114 {offsets = [0, 0], sizes = [8, 32], strides = [1, 1]} : vector<8x128xf32> to vector<8x32xf32>
    %116 = arith.negf %115 : vector<8x32xf32>
    %117 = math.exp %116 : vector<8x32xf32>
    %cst_43 = arith.constant 1.000000e+00 : f32
    %118 = vector.broadcast %cst_43 : f32 to vector<8x32xf32>
    %119 = arith.addf %118, %117 : vector<8x32xf32>
    %120 = arith.divf %118, %119 : vector<8x32xf32>
    %121 = vector.extract_strided_slice %114 {offsets = [0, 32], sizes = [8, 32], strides = [1, 1]} : vector<8x128xf32> to vector<8x32xf32>
    %122 = arith.negf %121 : vector<8x32xf32>
    %123 = math.exp %122 : vector<8x32xf32>
    %cst_44 = arith.constant 1.000000e+00 : f32
    %124 = vector.broadcast %cst_44 : f32 to vector<8x32xf32>
    %125 = arith.addf %124, %123 : vector<8x32xf32>
    %126 = arith.divf %124, %125 : vector<8x32xf32>
    %127 = vector.extract_strided_slice %114 {offsets = [0, 64], sizes = [8, 32], strides = [1, 1]} : vector<8x128xf32> to vector<8x32xf32>
    %128 = math.tanh %127 : vector<8x32xf32>
    %129 = vector.extract_strided_slice %114 {offsets = [0, 96], sizes = [8, 32], strides = [1, 1]} : vector<8x128xf32> to vector<8x32xf32>
    %130 = arith.negf %129 : vector<8x32xf32>
    %131 = math.exp %130 : vector<8x32xf32>
    %cst_45 = arith.constant 1.000000e+00 : f32
    %132 = vector.broadcast %cst_45 : f32 to vector<8x32xf32>
    %133 = arith.addf %132, %131 : vector<8x32xf32>
    %134 = arith.divf %132, %133 : vector<8x32xf32>
    %135 = arith.mulf %126, %58 : vector<8x32xf32>
    %136 = arith.mulf %120, %128 : vector<8x32xf32>
    %137 = arith.addf %135, %136 : vector<8x32xf32>
    %138 = math.tanh %137 : vector<8x32xf32>
    %139 = arith.mulf %134, %138 : vector<8x32xf32>
    %140 = vector.broadcast %c1_i32 : i32 to vector<8x1xi32>
    %141 = arith.cmpi sgt, %0, %140 : vector<8x1xi32>
    %142 = vector.shape_cast %141 : vector<8x1xi1> to vector<8x1xi1>
    %143 = vector.broadcast %142 : vector<8x1xi1> to vector<8x32xi1>
    %144 = arith.select %143, %139, %55 : vector<8x32xi1>, vector<8x32xf32>
    %145 = vector.shape_cast %141 : vector<8x1xi1> to vector<8x1xi1>
    %146 = vector.broadcast %145 : vector<8x1xi1> to vector<8x32xi1>
    %147 = arith.select %146, %137, %58 : vector<8x32xi1>, vector<8x32xf32>
    %148 = arith.truncf %144 : vector<8x32xf32> to vector<8x32xbf16>
    %149 = arith.index_cast %c1_i32 : i32 to index
    %c0_46 = arith.constant 0 : index
    %c0_47 = arith.constant 0 : index
    %150 = vector.load %arg20[%149, %c0_46, %c0_47] : memref<8x8x32xbf16, #tpu.memory_space<vmem>>, vector<1x8x32xbf16>
    %151 = vector.shape_cast %150 : vector<1x8x32xbf16> to vector<8x32xbf16>
    %152 = vector.shape_cast %148 : vector<8x32xbf16> to vector<1x8x32xbf16>
    tpu.vector_store %arg20[%149, %c0_46, %c0_47], %152 {strides = array<i32>} : memref<8x8x32xbf16, #tpu.memory_space<vmem>>, vector<1x8x32xbf16>,
    %153 = arith.index_cast %108 : i32 to index
    %c0_48 = arith.constant 0 : index
    %c0_49 = arith.constant 0 : index
    %154 = vector.load %arg19[%153, %c0_48, %c0_49] : memref<8x8x128xf32, #tpu.memory_space<vmem>>, vector<1x8x128xf32>
    %155 = vector.shape_cast %154 : vector<1x8x128xf32> to vector<8x128xf32>
    %156 = arith.truncf %99 : vector<8x32xf32> to vector<8x32xbf16>
    %cst_50 = arith.constant dense<0.000000e+00> : vector<8x128xf32>
    %157 = tpu.matmul %156, %3, %cst_50 {dimension_numbers = #tpu.dot_dimension_numbers<[1], [0], [0], [1], [0, 0, 1, 1], [], []>} : vector<8x32xbf16>, vector<32x128xbf16>, vector<8x128xf32> -> vector<8x128xf32>
    %158 = arith.addf %155, %157 : vector<8x128xf32>
    %159 = vector.extract_strided_slice %158 {offsets = [0, 0], sizes = [8, 32], strides = [1, 1]} : vector<8x128xf32> to vector<8x32xf32>
    %160 = arith.negf %159 : vector<8x32xf32>
    %161 = math.exp %160 : vector<8x32xf32>
    %cst_51 = arith.constant 1.000000e+00 : f32
    %162 = vector.broadcast %cst_51 : f32 to vector<8x32xf32>
    %163 = arith.addf %162, %161 : vector<8x32xf32>
    %164 = arith.divf %162, %163 : vector<8x32xf32>
    %165 = vector.extract_strided_slice %158 {offsets = [0, 32], sizes = [8, 32], strides = [1, 1]} : vector<8x128xf32> to vector<8x32xf32>
    %166 = arith.negf %165 : vector<8x32xf32>
    %167 = math.exp %166 : vector<8x32xf32>
    %cst_52 = arith.constant 1.000000e+00 : f32
    %168 = vector.broadcast %cst_52 : f32 to vector<8x32xf32>
    %169 = arith.addf %168, %167 : vector<8x32xf32>
    %170 = arith.divf %168, %169 : vector<8x32xf32>
    %171 = vector.extract_strided_slice %158 {offsets = [0, 64], sizes = [8, 32], strides = [1, 1]} : vector<8x128xf32> to vector<8x32xf32>
    %172 = math.tanh %171 : vector<8x32xf32>
    %173 = vector.extract_strided_slice %158 {offsets = [0, 96], sizes = [8, 32], strides = [1, 1]} : vector<8x128xf32> to vector<8x32xf32>
    %174 = arith.negf %173 : vector<8x32xf32>
    %175 = math.exp %174 : vector<8x32xf32>
    %cst_53 = arith.constant 1.000000e+00 : f32
    %176 = vector.broadcast %cst_53 : f32 to vector<8x32xf32>
    %177 = arith.addf %176, %175 : vector<8x32xf32>
    %178 = arith.divf %176, %177 : vector<8x32xf32>
    %179 = arith.mulf %170, %102 : vector<8x32xf32>
    %180 = arith.mulf %164, %172 : vector<8x32xf32>
    %181 = arith.addf %179, %180 : vector<8x32xf32>
    %182 = math.tanh %181 : vector<8x32xf32>
    %183 = arith.mulf %178, %182 : vector<8x32xf32>
    %184 = vector.broadcast %108 : i32 to vector<8x1xi32>
    %185 = arith.cmpi sgt, %0, %184 : vector<8x1xi32>
    %186 = vector.shape_cast %185 : vector<8x1xi1> to vector<8x1xi1>
    %187 = vector.broadcast %186 : vector<8x1xi1> to vector<8x32xi1>
    %188 = arith.select %187, %183, %99 : vector<8x32xi1>, vector<8x32xf32>
    %189 = vector.shape_cast %185 : vector<8x1xi1> to vector<8x1xi1>
    %190 = vector.broadcast %189 : vector<8x1xi1> to vector<8x32xi1>
    %191 = arith.select %190, %181, %102 : vector<8x32xi1>, vector<8x32xf32>
    %192 = arith.truncf %188 : vector<8x32xf32> to vector<8x32xbf16>
    %193 = arith.index_cast %108 : i32 to index
    %c0_54 = arith.constant 0 : index
    %c0_55 = arith.constant 0 : index
    %194 = vector.load %arg21[%193, %c0_54, %c0_55] : memref<8x8x32xbf16, #tpu.memory_space<vmem>>, vector<1x8x32xbf16>
    %195 = vector.shape_cast %194 : vector<1x8x32xbf16> to vector<8x32xbf16>
    %196 = vector.shape_cast %192 : vector<8x32xbf16> to vector<1x8x32xbf16>
    tpu.vector_store %arg21[%193, %c0_54, %c0_55], %196 {strides = array<i32>} : memref<8x8x32xbf16, #tpu.memory_space<vmem>>, vector<1x8x32xbf16>,
    %c2_i32 = arith.constant 2 : i32
    %c7_i32_56 = arith.constant 7 : i32
    %197 = arith.subi %c7_i32_56, %c2_i32 : i32
    %198 = arith.index_cast %c2_i32 : i32 to index
    %c0_57 = arith.constant 0 : index
    %c0_58 = arith.constant 0 : index
    %199 = vector.load %arg18[%198, %c0_57, %c0_58] : memref<8x8x128xf32, #tpu.memory_space<vmem>>, vector<1x8x128xf32>
    %200 = vector.shape_cast %199 : vector<1x8x128xf32> to vector<8x128xf32>
    %201 = arith.truncf %144 : vector<8x32xf32> to vector<8x32xbf16>
    %cst_59 = arith.constant dense<0.000000e+00> : vector<8x128xf32>
    %202 = tpu.matmul %201, %2, %cst_59 {dimension_numbers = #tpu.dot_dimension_numbers<[1], [0], [0], [1], [0, 0, 1, 1], [], []>} : vector<8x32xbf16>, vector<32x128xbf16>, vector<8x128xf32> -> vector<8x128xf32>
    %203 = arith.addf %200, %202 : vector<8x128xf32>
    %204 = vector.extract_strided_slice %203 {offsets = [0, 0], sizes = [8, 32], strides = [1, 1]} : vector<8x128xf32> to vector<8x32xf32>
    %205 = arith.negf %204 : vector<8x32xf32>
    %206 = math.exp %205 : vector<8x32xf32>
    %cst_60 = arith.constant 1.000000e+00 : f32
    %207 = vector.broadcast %cst_60 : f32 to vector<8x32xf32>
    %208 = arith.addf %207, %206 : vector<8x32xf32>
    %209 = arith.divf %207, %208 : vector<8x32xf32>
    %210 = vector.extract_strided_slice %203 {offsets = [0, 32], sizes = [8, 32], strides = [1, 1]} : vector<8x128xf32> to vector<8x32xf32>
    %211 = arith.negf %210 : vector<8x32xf32>
    %212 = math.exp %211 : vector<8x32xf32>
    %cst_61 = arith.constant 1.000000e+00 : f32
    %213 = vector.broadcast %cst_61 : f32 to vector<8x32xf32>
    %214 = arith.addf %213, %212 : vector<8x32xf32>
    %215 = arith.divf %213, %214 : vector<8x32xf32>
    %216 = vector.extract_strided_slice %203 {offsets = [0, 64], sizes = [8, 32], strides = [1, 1]} : vector<8x128xf32> to vector<8x32xf32>
    %217 = math.tanh %216 : vector<8x32xf32>
    %218 = vector.extract_strided_slice %203 {offsets = [0, 96], sizes = [8, 32], strides = [1, 1]} : vector<8x128xf32> to vector<8x32xf32>
    %219 = arith.negf %218 : vector<8x32xf32>
    %220 = math.exp %219 : vector<8x32xf32>
    %cst_62 = arith.constant 1.000000e+00 : f32
    %221 = vector.broadcast %cst_62 : f32 to vector<8x32xf32>
    %222 = arith.addf %221, %220 : vector<8x32xf32>
    %223 = arith.divf %221, %222 : vector<8x32xf32>
    %224 = arith.mulf %215, %147 : vector<8x32xf32>
    %225 = arith.mulf %209, %217 : vector<8x32xf32>
    %226 = arith.addf %224, %225 : vector<8x32xf32>
    %227 = math.tanh %226 : vector<8x32xf32>
    %228 = arith.mulf %223, %227 : vector<8x32xf32>
    %229 = vector.broadcast %c2_i32 : i32 to vector<8x1xi32>
    %230 = arith.cmpi sgt, %0, %229 : vector<8x1xi32>
    %231 = vector.shape_cast %230 : vector<8x1xi1> to vector<8x1xi1>
    %232 = vector.broadcast %231 : vector<8x1xi1> to vector<8x32xi1>
    %233 = arith.select %232, %228, %144 : vector<8x32xi1>, vector<8x32xf32>
    %234 = vector.shape_cast %230 : vector<8x1xi1> to vector<8x1xi1>
    %235 = vector.broadcast %234 : vector<8x1xi1> to vector<8x32xi1>
    %236 = arith.select %235, %226, %147 : vector<8x32xi1>, vector<8x32xf32>
    %237 = arith.truncf %233 : vector<8x32xf32> to vector<8x32xbf16>
    %238 = arith.index_cast %c2_i32 : i32 to index
    %c0_63 = arith.constant 0 : index
    %c0_64 = arith.constant 0 : index
    %239 = vector.load %arg20[%238, %c0_63, %c0_64] : memref<8x8x32xbf16, #tpu.memory_space<vmem>>, vector<1x8x32xbf16>
    %240 = vector.shape_cast %239 : vector<1x8x32xbf16> to vector<8x32xbf16>
    %241 = vector.shape_cast %237 : vector<8x32xbf16> to vector<1x8x32xbf16>
    tpu.vector_store %arg20[%238, %c0_63, %c0_64], %241 {strides = array<i32>} : memref<8x8x32xbf16, #tpu.memory_space<vmem>>, vector<1x8x32xbf16>,
    %242 = arith.index_cast %197 : i32 to index
    %c0_65 = arith.constant 0 : index
    %c0_66 = arith.constant 0 : index
    %243 = vector.load %arg19[%242, %c0_65, %c0_66] : memref<8x8x128xf32, #tpu.memory_space<vmem>>, vector<1x8x128xf32>
    %244 = vector.shape_cast %243 : vector<1x8x128xf32> to vector<8x128xf32>
    %245 = arith.truncf %188 : vector<8x32xf32> to vector<8x32xbf16>
    %cst_67 = arith.constant dense<0.000000e+00> : vector<8x128xf32>
    %246 = tpu.matmul %245, %3, %cst_67 {dimension_numbers = #tpu.dot_dimension_numbers<[1], [0], [0], [1], [0, 0, 1, 1], [], []>} : vector<8x32xbf16>, vector<32x128xbf16>, vector<8x128xf32> -> vector<8x128xf32>
    %247 = arith.addf %244, %246 : vector<8x128xf32>
    %248 = vector.extract_strided_slice %247 {offsets = [0, 0], sizes = [8, 32], strides = [1, 1]} : vector<8x128xf32> to vector<8x32xf32>
    %249 = arith.negf %248 : vector<8x32xf32>
    %250 = math.exp %249 : vector<8x32xf32>
    %cst_68 = arith.constant 1.000000e+00 : f32
    %251 = vector.broadcast %cst_68 : f32 to vector<8x32xf32>
    %252 = arith.addf %251, %250 : vector<8x32xf32>
    %253 = arith.divf %251, %252 : vector<8x32xf32>
    %254 = vector.extract_strided_slice %247 {offsets = [0, 32], sizes = [8, 32], strides = [1, 1]} : vector<8x128xf32> to vector<8x32xf32>
    %255 = arith.negf %254 : vector<8x32xf32>
    %256 = math.exp %255 : vector<8x32xf32>
    %cst_69 = arith.constant 1.000000e+00 : f32
    %257 = vector.broadcast %cst_69 : f32 to vector<8x32xf32>
    %258 = arith.addf %257, %256 : vector<8x32xf32>
    %259 = arith.divf %257, %258 : vector<8x32xf32>
    %260 = vector.extract_strided_slice %247 {offsets = [0, 64], sizes = [8, 32], strides = [1, 1]} : vector<8x128xf32> to vector<8x32xf32>
    %261 = math.tanh %260 : vector<8x32xf32>
    %262 = vector.extract_strided_slice %247 {offsets = [0, 96], sizes = [8, 32], strides = [1, 1]} : vector<8x128xf32> to vector<8x32xf32>
    %263 = arith.negf %262 : vector<8x32xf32>
    %264 = math.exp %263 : vector<8x32xf32>
    %cst_70 = arith.constant 1.000000e+00 : f32
    %265 = vector.broadcast %cst_70 : f32 to vector<8x32xf32>
    %266 = arith.addf %265, %264 : vector<8x32xf32>
    %267 = arith.divf %265, %266 : vector<8x32xf32>
    %268 = arith.mulf %259, %191 : vector<8x32xf32>
    %269 = arith.mulf %253, %261 : vector<8x32xf32>
    %270 = arith.addf %268, %269 : vector<8x32xf32>
    %271 = math.tanh %270 : vector<8x32xf32>
    %272 = arith.mulf %267, %271 : vector<8x32xf32>
    %273 = vector.broadcast %197 : i32 to vector<8x1xi32>
    %274 = arith.cmpi sgt, %0, %273 : vector<8x1xi32>
    %275 = vector.shape_cast %274 : vector<8x1xi1> to vector<8x1xi1>
    %276 = vector.broadcast %275 : vector<8x1xi1> to vector<8x32xi1>
    %277 = arith.select %276, %272, %188 : vector<8x32xi1>, vector<8x32xf32>
    %278 = vector.shape_cast %274 : vector<8x1xi1> to vector<8x1xi1>
    %279 = vector.broadcast %278 : vector<8x1xi1> to vector<8x32xi1>
    %280 = arith.select %279, %270, %191 : vector<8x32xi1>, vector<8x32xf32>
    %281 = arith.truncf %277 : vector<8x32xf32> to vector<8x32xbf16>
    %282 = arith.index_cast %197 : i32 to index
    %c0_71 = arith.constant 0 : index
    %c0_72 = arith.constant 0 : index
    %283 = vector.load %arg21[%282, %c0_71, %c0_72] : memref<8x8x32xbf16, #tpu.memory_space<vmem>>, vector<1x8x32xbf16>
    %284 = vector.shape_cast %283 : vector<1x8x32xbf16> to vector<8x32xbf16>
    %285 = vector.shape_cast %281 : vector<8x32xbf16> to vector<1x8x32xbf16>
    tpu.vector_store %arg21[%282, %c0_71, %c0_72], %285 {strides = array<i32>} : memref<8x8x32xbf16, #tpu.memory_space<vmem>>, vector<1x8x32xbf16>,
    %c3_i32 = arith.constant 3 : i32
    %c7_i32_73 = arith.constant 7 : i32
    %286 = arith.subi %c7_i32_73, %c3_i32 : i32
    %287 = arith.index_cast %c3_i32 : i32 to index
    %c0_74 = arith.constant 0 : index
    %c0_75 = arith.constant 0 : index
    %288 = vector.load %arg18[%287, %c0_74, %c0_75] : memref<8x8x128xf32, #tpu.memory_space<vmem>>, vector<1x8x128xf32>
    %289 = vector.shape_cast %288 : vector<1x8x128xf32> to vector<8x128xf32>
    %290 = arith.truncf %233 : vector<8x32xf32> to vector<8x32xbf16>
    %cst_76 = arith.constant dense<0.000000e+00> : vector<8x128xf32>
    %291 = tpu.matmul %290, %2, %cst_76 {dimension_numbers = #tpu.dot_dimension_numbers<[1], [0], [0], [1], [0, 0, 1, 1], [], []>} : vector<8x32xbf16>, vector<32x128xbf16>, vector<8x128xf32> -> vector<8x128xf32>
    %292 = arith.addf %289, %291 : vector<8x128xf32>
    %293 = vector.extract_strided_slice %292 {offsets = [0, 0], sizes = [8, 32], strides = [1, 1]} : vector<8x128xf32> to vector<8x32xf32>
    %294 = arith.negf %293 : vector<8x32xf32>
    %295 = math.exp %294 : vector<8x32xf32>
    %cst_77 = arith.constant 1.000000e+00 : f32
    %296 = vector.broadcast %cst_77 : f32 to vector<8x32xf32>
    %297 = arith.addf %296, %295 : vector<8x32xf32>
    %298 = arith.divf %296, %297 : vector<8x32xf32>
    %299 = vector.extract_strided_slice %292 {offsets = [0, 32], sizes = [8, 32], strides = [1, 1]} : vector<8x128xf32> to vector<8x32xf32>
    %300 = arith.negf %299 : vector<8x32xf32>
    %301 = math.exp %300 : vector<8x32xf32>
    %cst_78 = arith.constant 1.000000e+00 : f32
    %302 = vector.broadcast %cst_78 : f32 to vector<8x32xf32>
    %303 = arith.addf %302, %301 : vector<8x32xf32>
    %304 = arith.divf %302, %303 : vector<8x32xf32>
    %305 = vector.extract_strided_slice %292 {offsets = [0, 64], sizes = [8, 32], strides = [1, 1]} : vector<8x128xf32> to vector<8x32xf32>
    %306 = math.tanh %305 : vector<8x32xf32>
    %307 = vector.extract_strided_slice %292 {offsets = [0, 96], sizes = [8, 32], strides = [1, 1]} : vector<8x128xf32> to vector<8x32xf32>
    %308 = arith.negf %307 : vector<8x32xf32>
    %309 = math.exp %308 : vector<8x32xf32>
    %cst_79 = arith.constant 1.000000e+00 : f32
    %310 = vector.broadcast %cst_79 : f32 to vector<8x32xf32>
    %311 = arith.addf %310, %309 : vector<8x32xf32>
    %312 = arith.divf %310, %311 : vector<8x32xf32>
    %313 = arith.mulf %304, %236 : vector<8x32xf32>
    %314 = arith.mulf %298, %306 : vector<8x32xf32>
    %315 = arith.addf %313, %314 : vector<8x32xf32>
    %316 = math.tanh %315 : vector<8x32xf32>
    %317 = arith.mulf %312, %316 : vector<8x32xf32>
    %318 = vector.broadcast %c3_i32 : i32 to vector<8x1xi32>
    %319 = arith.cmpi sgt, %0, %318 : vector<8x1xi32>
    %320 = vector.shape_cast %319 : vector<8x1xi1> to vector<8x1xi1>
    %321 = vector.broadcast %320 : vector<8x1xi1> to vector<8x32xi1>
    %322 = arith.select %321, %317, %233 : vector<8x32xi1>, vector<8x32xf32>
    %323 = vector.shape_cast %319 : vector<8x1xi1> to vector<8x1xi1>
    %324 = vector.broadcast %323 : vector<8x1xi1> to vector<8x32xi1>
    %325 = arith.select %324, %315, %236 : vector<8x32xi1>, vector<8x32xf32>
    %326 = arith.truncf %322 : vector<8x32xf32> to vector<8x32xbf16>
    %327 = arith.index_cast %c3_i32 : i32 to index
    %c0_80 = arith.constant 0 : index
    %c0_81 = arith.constant 0 : index
    %328 = vector.load %arg20[%327, %c0_80, %c0_81] : memref<8x8x32xbf16, #tpu.memory_space<vmem>>, vector<1x8x32xbf16>
    %329 = vector.shape_cast %328 : vector<1x8x32xbf16> to vector<8x32xbf16>
    %330 = vector.shape_cast %326 : vector<8x32xbf16> to vector<1x8x32xbf16>
    tpu.vector_store %arg20[%327, %c0_80, %c0_81], %330 {strides = array<i32>} : memref<8x8x32xbf16, #tpu.memory_space<vmem>>, vector<1x8x32xbf16>,
    %331 = arith.index_cast %286 : i32 to index
    %c0_82 = arith.constant 0 : index
    %c0_83 = arith.constant 0 : index
    %332 = vector.load %arg19[%331, %c0_82, %c0_83] : memref<8x8x128xf32, #tpu.memory_space<vmem>>, vector<1x8x128xf32>
    %333 = vector.shape_cast %332 : vector<1x8x128xf32> to vector<8x128xf32>
    %334 = arith.truncf %277 : vector<8x32xf32> to vector<8x32xbf16>
    %cst_84 = arith.constant dense<0.000000e+00> : vector<8x128xf32>
    %335 = tpu.matmul %334, %3, %cst_84 {dimension_numbers = #tpu.dot_dimension_numbers<[1], [0], [0], [1], [0, 0, 1, 1], [], []>} : vector<8x32xbf16>, vector<32x128xbf16>, vector<8x128xf32> -> vector<8x128xf32>
    %336 = arith.addf %333, %335 : vector<8x128xf32>
    %337 = vector.extract_strided_slice %336 {offsets = [0, 0], sizes = [8, 32], strides = [1, 1]} : vector<8x128xf32> to vector<8x32xf32>
    %338 = arith.negf %337 : vector<8x32xf32>
    %339 = math.exp %338 : vector<8x32xf32>
    %cst_85 = arith.constant 1.000000e+00 : f32
    %340 = vector.broadcast %cst_85 : f32 to vector<8x32xf32>
    %341 = arith.addf %340, %339 : vector<8x32xf32>
    %342 = arith.divf %340, %341 : vector<8x32xf32>
    %343 = vector.extract_strided_slice %336 {offsets = [0, 32], sizes = [8, 32], strides = [1, 1]} : vector<8x128xf32> to vector<8x32xf32>
    %344 = arith.negf %343 : vector<8x32xf32>
    %345 = math.exp %344 : vector<8x32xf32>
    %cst_86 = arith.constant 1.000000e+00 : f32
    %346 = vector.broadcast %cst_86 : f32 to vector<8x32xf32>
    %347 = arith.addf %346, %345 : vector<8x32xf32>
    %348 = arith.divf %346, %347 : vector<8x32xf32>
    %349 = vector.extract_strided_slice %336 {offsets = [0, 64], sizes = [8, 32], strides = [1, 1]} : vector<8x128xf32> to vector<8x32xf32>
    %350 = math.tanh %349 : vector<8x32xf32>
    %351 = vector.extract_strided_slice %336 {offsets = [0, 96], sizes = [8, 32], strides = [1, 1]} : vector<8x128xf32> to vector<8x32xf32>
    %352 = arith.negf %351 : vector<8x32xf32>
    %353 = math.exp %352 : vector<8x32xf32>
    %cst_87 = arith.constant 1.000000e+00 : f32
    %354 = vector.broadcast %cst_87 : f32 to vector<8x32xf32>
    %355 = arith.addf %354, %353 : vector<8x32xf32>
    %356 = arith.divf %354, %355 : vector<8x32xf32>
    %357 = arith.mulf %348, %280 : vector<8x32xf32>
    %358 = arith.mulf %342, %350 : vector<8x32xf32>
    %359 = arith.addf %357, %358 : vector<8x32xf32>
    %360 = math.tanh %359 : vector<8x32xf32>
    %361 = arith.mulf %356, %360 : vector<8x32xf32>
    %362 = vector.broadcast %286 : i32 to vector<8x1xi32>
    %363 = arith.cmpi sgt, %0, %362 : vector<8x1xi32>
    %364 = vector.shape_cast %363 : vector<8x1xi1> to vector<8x1xi1>
    %365 = vector.broadcast %364 : vector<8x1xi1> to vector<8x32xi1>
    %366 = arith.select %365, %361, %277 : vector<8x32xi1>, vector<8x32xf32>
    %367 = vector.shape_cast %363 : vector<8x1xi1> to vector<8x1xi1>
    %368 = vector.broadcast %367 : vector<8x1xi1> to vector<8x32xi1>
    %369 = arith.select %368, %359, %280 : vector<8x32xi1>, vector<8x32xf32>
    %370 = arith.truncf %366 : vector<8x32xf32> to vector<8x32xbf16>
    %371 = arith.index_cast %286 : i32 to index
    %c0_88 = arith.constant 0 : index
    %c0_89 = arith.constant 0 : index
    %372 = vector.load %arg21[%371, %c0_88, %c0_89] : memref<8x8x32xbf16, #tpu.memory_space<vmem>>, vector<1x8x32xbf16>
    %373 = vector.shape_cast %372 : vector<1x8x32xbf16> to vector<8x32xbf16>
    %374 = vector.shape_cast %370 : vector<8x32xbf16> to vector<1x8x32xbf16>
    tpu.vector_store %arg21[%371, %c0_88, %c0_89], %374 {strides = array<i32>} : memref<8x8x32xbf16, #tpu.memory_space<vmem>>, vector<1x8x32xbf16>,
    %c4_i32 = arith.constant 4 : i32
    %c7_i32_90 = arith.constant 7 : i32
    %375 = arith.subi %c7_i32_90, %c4_i32 : i32
    %376 = arith.index_cast %c4_i32 : i32 to index
    %c0_91 = arith.constant 0 : index
    %c0_92 = arith.constant 0 : index
    %377 = vector.load %arg18[%376, %c0_91, %c0_92] : memref<8x8x128xf32, #tpu.memory_space<vmem>>, vector<1x8x128xf32>
    %378 = vector.shape_cast %377 : vector<1x8x128xf32> to vector<8x128xf32>
    %379 = arith.truncf %322 : vector<8x32xf32> to vector<8x32xbf16>
    %cst_93 = arith.constant dense<0.000000e+00> : vector<8x128xf32>
    %380 = tpu.matmul %379, %2, %cst_93 {dimension_numbers = #tpu.dot_dimension_numbers<[1], [0], [0], [1], [0, 0, 1, 1], [], []>} : vector<8x32xbf16>, vector<32x128xbf16>, vector<8x128xf32> -> vector<8x128xf32>
    %381 = arith.addf %378, %380 : vector<8x128xf32>
    %382 = vector.extract_strided_slice %381 {offsets = [0, 0], sizes = [8, 32], strides = [1, 1]} : vector<8x128xf32> to vector<8x32xf32>
    %383 = arith.negf %382 : vector<8x32xf32>
    %384 = math.exp %383 : vector<8x32xf32>
    %cst_94 = arith.constant 1.000000e+00 : f32
    %385 = vector.broadcast %cst_94 : f32 to vector<8x32xf32>
    %386 = arith.addf %385, %384 : vector<8x32xf32>
    %387 = arith.divf %385, %386 : vector<8x32xf32>
    %388 = vector.extract_strided_slice %381 {offsets = [0, 32], sizes = [8, 32], strides = [1, 1]} : vector<8x128xf32> to vector<8x32xf32>
    %389 = arith.negf %388 : vector<8x32xf32>
    %390 = math.exp %389 : vector<8x32xf32>
    %cst_95 = arith.constant 1.000000e+00 : f32
    %391 = vector.broadcast %cst_95 : f32 to vector<8x32xf32>
    %392 = arith.addf %391, %390 : vector<8x32xf32>
    %393 = arith.divf %391, %392 : vector<8x32xf32>
    %394 = vector.extract_strided_slice %381 {offsets = [0, 64], sizes = [8, 32], strides = [1, 1]} : vector<8x128xf32> to vector<8x32xf32>
    %395 = math.tanh %394 : vector<8x32xf32>
    %396 = vector.extract_strided_slice %381 {offsets = [0, 96], sizes = [8, 32], strides = [1, 1]} : vector<8x128xf32> to vector<8x32xf32>
    %397 = arith.negf %396 : vector<8x32xf32>
    %398 = math.exp %397 : vector<8x32xf32>
    %cst_96 = arith.constant 1.000000e+00 : f32
    %399 = vector.broadcast %cst_96 : f32 to vector<8x32xf32>
    %400 = arith.addf %399, %398 : vector<8x32xf32>
    %401 = arith.divf %399, %400 : vector<8x32xf32>
    %402 = arith.mulf %393, %325 : vector<8x32xf32>
    %403 = arith.mulf %387, %395 : vector<8x32xf32>
    %404 = arith.addf %402, %403 : vector<8x32xf32>
    %405 = math.tanh %404 : vector<8x32xf32>
    %406 = arith.mulf %401, %405 : vector<8x32xf32>
    %407 = vector.broadcast %c4_i32 : i32 to vector<8x1xi32>
    %408 = arith.cmpi sgt, %0, %407 : vector<8x1xi32>
    %409 = vector.shape_cast %408 : vector<8x1xi1> to vector<8x1xi1>
    %410 = vector.broadcast %409 : vector<8x1xi1> to vector<8x32xi1>
    %411 = arith.select %410, %406, %322 : vector<8x32xi1>, vector<8x32xf32>
    %412 = vector.shape_cast %408 : vector<8x1xi1> to vector<8x1xi1>
    %413 = vector.broadcast %412 : vector<8x1xi1> to vector<8x32xi1>
    %414 = arith.select %413, %404, %325 : vector<8x32xi1>, vector<8x32xf32>
    %415 = arith.truncf %411 : vector<8x32xf32> to vector<8x32xbf16>
    %416 = arith.index_cast %c4_i32 : i32 to index
    %c0_97 = arith.constant 0 : index
    %c0_98 = arith.constant 0 : index
    %417 = vector.load %arg20[%416, %c0_97, %c0_98] : memref<8x8x32xbf16, #tpu.memory_space<vmem>>, vector<1x8x32xbf16>
    %418 = vector.shape_cast %417 : vector<1x8x32xbf16> to vector<8x32xbf16>
    %419 = vector.shape_cast %415 : vector<8x32xbf16> to vector<1x8x32xbf16>
    tpu.vector_store %arg20[%416, %c0_97, %c0_98], %419 {strides = array<i32>} : memref<8x8x32xbf16, #tpu.memory_space<vmem>>, vector<1x8x32xbf16>,
    %420 = arith.index_cast %375 : i32 to index
    %c0_99 = arith.constant 0 : index
    %c0_100 = arith.constant 0 : index
    %421 = vector.load %arg19[%420, %c0_99, %c0_100] : memref<8x8x128xf32, #tpu.memory_space<vmem>>, vector<1x8x128xf32>
    %422 = vector.shape_cast %421 : vector<1x8x128xf32> to vector<8x128xf32>
    %423 = arith.truncf %366 : vector<8x32xf32> to vector<8x32xbf16>
    %cst_101 = arith.constant dense<0.000000e+00> : vector<8x128xf32>
    %424 = tpu.matmul %423, %3, %cst_101 {dimension_numbers = #tpu.dot_dimension_numbers<[1], [0], [0], [1], [0, 0, 1, 1], [], []>} : vector<8x32xbf16>, vector<32x128xbf16>, vector<8x128xf32> -> vector<8x128xf32>
    %425 = arith.addf %422, %424 : vector<8x128xf32>
    %426 = vector.extract_strided_slice %425 {offsets = [0, 0], sizes = [8, 32], strides = [1, 1]} : vector<8x128xf32> to vector<8x32xf32>
    %427 = arith.negf %426 : vector<8x32xf32>
    %428 = math.exp %427 : vector<8x32xf32>
    %cst_102 = arith.constant 1.000000e+00 : f32
    %429 = vector.broadcast %cst_102 : f32 to vector<8x32xf32>
    %430 = arith.addf %429, %428 : vector<8x32xf32>
    %431 = arith.divf %429, %430 : vector<8x32xf32>
    %432 = vector.extract_strided_slice %425 {offsets = [0, 32], sizes = [8, 32], strides = [1, 1]} : vector<8x128xf32> to vector<8x32xf32>
    %433 = arith.negf %432 : vector<8x32xf32>
    %434 = math.exp %433 : vector<8x32xf32>
    %cst_103 = arith.constant 1.000000e+00 : f32
    %435 = vector.broadcast %cst_103 : f32 to vector<8x32xf32>
    %436 = arith.addf %435, %434 : vector<8x32xf32>
    %437 = arith.divf %435, %436 : vector<8x32xf32>
    %438 = vector.extract_strided_slice %425 {offsets = [0, 64], sizes = [8, 32], strides = [1, 1]} : vector<8x128xf32> to vector<8x32xf32>
    %439 = math.tanh %438 : vector<8x32xf32>
    %440 = vector.extract_strided_slice %425 {offsets = [0, 96], sizes = [8, 32], strides = [1, 1]} : vector<8x128xf32> to vector<8x32xf32>
    %441 = arith.negf %440 : vector<8x32xf32>
    %442 = math.exp %441 : vector<8x32xf32>
    %cst_104 = arith.constant 1.000000e+00 : f32
    %443 = vector.broadcast %cst_104 : f32 to vector<8x32xf32>
    %444 = arith.addf %443, %442 : vector<8x32xf32>
    %445 = arith.divf %443, %444 : vector<8x32xf32>
    %446 = arith.mulf %437, %369 : vector<8x32xf32>
    %447 = arith.mulf %431, %439 : vector<8x32xf32>
    %448 = arith.addf %446, %447 : vector<8x32xf32>
    %449 = math.tanh %448 : vector<8x32xf32>
    %450 = arith.mulf %445, %449 : vector<8x32xf32>
    %451 = vector.broadcast %375 : i32 to vector<8x1xi32>
    %452 = arith.cmpi sgt, %0, %451 : vector<8x1xi32>
    %453 = vector.shape_cast %452 : vector<8x1xi1> to vector<8x1xi1>
    %454 = vector.broadcast %453 : vector<8x1xi1> to vector<8x32xi1>
    %455 = arith.select %454, %450, %366 : vector<8x32xi1>, vector<8x32xf32>
    %456 = vector.shape_cast %452 : vector<8x1xi1> to vector<8x1xi1>
    %457 = vector.broadcast %456 : vector<8x1xi1> to vector<8x32xi1>
    %458 = arith.select %457, %448, %369 : vector<8x32xi1>, vector<8x32xf32>
    %459 = arith.truncf %455 : vector<8x32xf32> to vector<8x32xbf16>
    %460 = arith.index_cast %375 : i32 to index
    %c0_105 = arith.constant 0 : index
    %c0_106 = arith.constant 0 : index
    %461 = vector.load %arg21[%460, %c0_105, %c0_106] : memref<8x8x32xbf16, #tpu.memory_space<vmem>>, vector<1x8x32xbf16>
    %462 = vector.shape_cast %461 : vector<1x8x32xbf16> to vector<8x32xbf16>
    %463 = vector.shape_cast %459 : vector<8x32xbf16> to vector<1x8x32xbf16>
    tpu.vector_store %arg21[%460, %c0_105, %c0_106], %463 {strides = array<i32>} : memref<8x8x32xbf16, #tpu.memory_space<vmem>>, vector<1x8x32xbf16>,
    %c5_i32 = arith.constant 5 : i32
    %c7_i32_107 = arith.constant 7 : i32
    %464 = arith.subi %c7_i32_107, %c5_i32 : i32
    %465 = arith.index_cast %c5_i32 : i32 to index
    %c0_108 = arith.constant 0 : index
    %c0_109 = arith.constant 0 : index
    %466 = vector.load %arg18[%465, %c0_108, %c0_109] : memref<8x8x128xf32, #tpu.memory_space<vmem>>, vector<1x8x128xf32>
    %467 = vector.shape_cast %466 : vector<1x8x128xf32> to vector<8x128xf32>
    %468 = arith.truncf %411 : vector<8x32xf32> to vector<8x32xbf16>
    %cst_110 = arith.constant dense<0.000000e+00> : vector<8x128xf32>
    %469 = tpu.matmul %468, %2, %cst_110 {dimension_numbers = #tpu.dot_dimension_numbers<[1], [0], [0], [1], [0, 0, 1, 1], [], []>} : vector<8x32xbf16>, vector<32x128xbf16>, vector<8x128xf32> -> vector<8x128xf32>
    %470 = arith.addf %467, %469 : vector<8x128xf32>
    %471 = vector.extract_strided_slice %470 {offsets = [0, 0], sizes = [8, 32], strides = [1, 1]} : vector<8x128xf32> to vector<8x32xf32>
    %472 = arith.negf %471 : vector<8x32xf32>
    %473 = math.exp %472 : vector<8x32xf32>
    %cst_111 = arith.constant 1.000000e+00 : f32
    %474 = vector.broadcast %cst_111 : f32 to vector<8x32xf32>
    %475 = arith.addf %474, %473 : vector<8x32xf32>
    %476 = arith.divf %474, %475 : vector<8x32xf32>
    %477 = vector.extract_strided_slice %470 {offsets = [0, 32], sizes = [8, 32], strides = [1, 1]} : vector<8x128xf32> to vector<8x32xf32>
    %478 = arith.negf %477 : vector<8x32xf32>
    %479 = math.exp %478 : vector<8x32xf32>
    %cst_112 = arith.constant 1.000000e+00 : f32
    %480 = vector.broadcast %cst_112 : f32 to vector<8x32xf32>
    %481 = arith.addf %480, %479 : vector<8x32xf32>
    %482 = arith.divf %480, %481 : vector<8x32xf32>
    %483 = vector.extract_strided_slice %470 {offsets = [0, 64], sizes = [8, 32], strides = [1, 1]} : vector<8x128xf32> to vector<8x32xf32>
    %484 = math.tanh %483 : vector<8x32xf32>
    %485 = vector.extract_strided_slice %470 {offsets = [0, 96], sizes = [8, 32], strides = [1, 1]} : vector<8x128xf32> to vector<8x32xf32>
    %486 = arith.negf %485 : vector<8x32xf32>
    %487 = math.exp %486 : vector<8x32xf32>
    %cst_113 = arith.constant 1.000000e+00 : f32
    %488 = vector.broadcast %cst_113 : f32 to vector<8x32xf32>
    %489 = arith.addf %488, %487 : vector<8x32xf32>
    %490 = arith.divf %488, %489 : vector<8x32xf32>
    %491 = arith.mulf %482, %414 : vector<8x32xf32>
    %492 = arith.mulf %476, %484 : vector<8x32xf32>
    %493 = arith.addf %491, %492 : vector<8x32xf32>
    %494 = math.tanh %493 : vector<8x32xf32>
    %495 = arith.mulf %490, %494 : vector<8x32xf32>
    %496 = vector.broadcast %c5_i32 : i32 to vector<8x1xi32>
    %497 = arith.cmpi sgt, %0, %496 : vector<8x1xi32>
    %498 = vector.shape_cast %497 : vector<8x1xi1> to vector<8x1xi1>
    %499 = vector.broadcast %498 : vector<8x1xi1> to vector<8x32xi1>
    %500 = arith.select %499, %495, %411 : vector<8x32xi1>, vector<8x32xf32>
    %501 = vector.shape_cast %497 : vector<8x1xi1> to vector<8x1xi1>
    %502 = vector.broadcast %501 : vector<8x1xi1> to vector<8x32xi1>
    %503 = arith.select %502, %493, %414 : vector<8x32xi1>, vector<8x32xf32>
    %504 = arith.truncf %500 : vector<8x32xf32> to vector<8x32xbf16>
    %505 = arith.index_cast %c5_i32 : i32 to index
    %c0_114 = arith.constant 0 : index
    %c0_115 = arith.constant 0 : index
    %506 = vector.load %arg20[%505, %c0_114, %c0_115] : memref<8x8x32xbf16, #tpu.memory_space<vmem>>, vector<1x8x32xbf16>
    %507 = vector.shape_cast %506 : vector<1x8x32xbf16> to vector<8x32xbf16>
    %508 = vector.shape_cast %504 : vector<8x32xbf16> to vector<1x8x32xbf16>
    tpu.vector_store %arg20[%505, %c0_114, %c0_115], %508 {strides = array<i32>} : memref<8x8x32xbf16, #tpu.memory_space<vmem>>, vector<1x8x32xbf16>,
    %509 = arith.index_cast %464 : i32 to index
    %c0_116 = arith.constant 0 : index
    %c0_117 = arith.constant 0 : index
    %510 = vector.load %arg19[%509, %c0_116, %c0_117] : memref<8x8x128xf32, #tpu.memory_space<vmem>>, vector<1x8x128xf32>
    %511 = vector.shape_cast %510 : vector<1x8x128xf32> to vector<8x128xf32>
    %512 = arith.truncf %455 : vector<8x32xf32> to vector<8x32xbf16>
    %cst_118 = arith.constant dense<0.000000e+00> : vector<8x128xf32>
    %513 = tpu.matmul %512, %3, %cst_118 {dimension_numbers = #tpu.dot_dimension_numbers<[1], [0], [0], [1], [0, 0, 1, 1], [], []>} : vector<8x32xbf16>, vector<32x128xbf16>, vector<8x128xf32> -> vector<8x128xf32>
    %514 = arith.addf %511, %513 : vector<8x128xf32>
    %515 = vector.extract_strided_slice %514 {offsets = [0, 0], sizes = [8, 32], strides = [1, 1]} : vector<8x128xf32> to vector<8x32xf32>
    %516 = arith.negf %515 : vector<8x32xf32>
    %517 = math.exp %516 : vector<8x32xf32>
    %cst_119 = arith.constant 1.000000e+00 : f32
    %518 = vector.broadcast %cst_119 : f32 to vector<8x32xf32>
    %519 = arith.addf %518, %517 : vector<8x32xf32>
    %520 = arith.divf %518, %519 : vector<8x32xf32>
    %521 = vector.extract_strided_slice %514 {offsets = [0, 32], sizes = [8, 32], strides = [1, 1]} : vector<8x128xf32> to vector<8x32xf32>
    %522 = arith.negf %521 : vector<8x32xf32>
    %523 = math.exp %522 : vector<8x32xf32>
    %cst_120 = arith.constant 1.000000e+00 : f32
    %524 = vector.broadcast %cst_120 : f32 to vector<8x32xf32>
    %525 = arith.addf %524, %523 : vector<8x32xf32>
    %526 = arith.divf %524, %525 : vector<8x32xf32>
    %527 = vector.extract_strided_slice %514 {offsets = [0, 64], sizes = [8, 32], strides = [1, 1]} : vector<8x128xf32> to vector<8x32xf32>
    %528 = math.tanh %527 : vector<8x32xf32>
    %529 = vector.extract_strided_slice %514 {offsets = [0, 96], sizes = [8, 32], strides = [1, 1]} : vector<8x128xf32> to vector<8x32xf32>
    %530 = arith.negf %529 : vector<8x32xf32>
    %531 = math.exp %530 : vector<8x32xf32>
    %cst_121 = arith.constant 1.000000e+00 : f32
    %532 = vector.broadcast %cst_121 : f32 to vector<8x32xf32>
    %533 = arith.addf %532, %531 : vector<8x32xf32>
    %534 = arith.divf %532, %533 : vector<8x32xf32>
    %535 = arith.mulf %526, %458 : vector<8x32xf32>
    %536 = arith.mulf %520, %528 : vector<8x32xf32>
    %537 = arith.addf %535, %536 : vector<8x32xf32>
    %538 = math.tanh %537 : vector<8x32xf32>
    %539 = arith.mulf %534, %538 : vector<8x32xf32>
    %540 = vector.broadcast %464 : i32 to vector<8x1xi32>
    %541 = arith.cmpi sgt, %0, %540 : vector<8x1xi32>
    %542 = vector.shape_cast %541 : vector<8x1xi1> to vector<8x1xi1>
    %543 = vector.broadcast %542 : vector<8x1xi1> to vector<8x32xi1>
    %544 = arith.select %543, %539, %455 : vector<8x32xi1>, vector<8x32xf32>
    %545 = vector.shape_cast %541 : vector<8x1xi1> to vector<8x1xi1>
    %546 = vector.broadcast %545 : vector<8x1xi1> to vector<8x32xi1>
    %547 = arith.select %546, %537, %458 : vector<8x32xi1>, vector<8x32xf32>
    %548 = arith.truncf %544 : vector<8x32xf32> to vector<8x32xbf16>
    %549 = arith.index_cast %464 : i32 to index
    %c0_122 = arith.constant 0 : index
    %c0_123 = arith.constant 0 : index
    %550 = vector.load %arg21[%549, %c0_122, %c0_123] : memref<8x8x32xbf16, #tpu.memory_space<vmem>>, vector<1x8x32xbf16>
    %551 = vector.shape_cast %550 : vector<1x8x32xbf16> to vector<8x32xbf16>
    %552 = vector.shape_cast %548 : vector<8x32xbf16> to vector<1x8x32xbf16>
    tpu.vector_store %arg21[%549, %c0_122, %c0_123], %552 {strides = array<i32>} : memref<8x8x32xbf16, #tpu.memory_space<vmem>>, vector<1x8x32xbf16>,
    %c6_i32 = arith.constant 6 : i32
    %c7_i32_124 = arith.constant 7 : i32
    %553 = arith.subi %c7_i32_124, %c6_i32 : i32
    %554 = arith.index_cast %c6_i32 : i32 to index
    %c0_125 = arith.constant 0 : index
    %c0_126 = arith.constant 0 : index
    %555 = vector.load %arg18[%554, %c0_125, %c0_126] : memref<8x8x128xf32, #tpu.memory_space<vmem>>, vector<1x8x128xf32>
    %556 = vector.shape_cast %555 : vector<1x8x128xf32> to vector<8x128xf32>
    %557 = arith.truncf %500 : vector<8x32xf32> to vector<8x32xbf16>
    %cst_127 = arith.constant dense<0.000000e+00> : vector<8x128xf32>
    %558 = tpu.matmul %557, %2, %cst_127 {dimension_numbers = #tpu.dot_dimension_numbers<[1], [0], [0], [1], [0, 0, 1, 1], [], []>} : vector<8x32xbf16>, vector<32x128xbf16>, vector<8x128xf32> -> vector<8x128xf32>
    %559 = arith.addf %556, %558 : vector<8x128xf32>
    %560 = vector.extract_strided_slice %559 {offsets = [0, 0], sizes = [8, 32], strides = [1, 1]} : vector<8x128xf32> to vector<8x32xf32>
    %561 = arith.negf %560 : vector<8x32xf32>
    %562 = math.exp %561 : vector<8x32xf32>
    %cst_128 = arith.constant 1.000000e+00 : f32
    %563 = vector.broadcast %cst_128 : f32 to vector<8x32xf32>
    %564 = arith.addf %563, %562 : vector<8x32xf32>
    %565 = arith.divf %563, %564 : vector<8x32xf32>
    %566 = vector.extract_strided_slice %559 {offsets = [0, 32], sizes = [8, 32], strides = [1, 1]} : vector<8x128xf32> to vector<8x32xf32>
    %567 = arith.negf %566 : vector<8x32xf32>
    %568 = math.exp %567 : vector<8x32xf32>
    %cst_129 = arith.constant 1.000000e+00 : f32
    %569 = vector.broadcast %cst_129 : f32 to vector<8x32xf32>
    %570 = arith.addf %569, %568 : vector<8x32xf32>
    %571 = arith.divf %569, %570 : vector<8x32xf32>
    %572 = vector.extract_strided_slice %559 {offsets = [0, 64], sizes = [8, 32], strides = [1, 1]} : vector<8x128xf32> to vector<8x32xf32>
    %573 = math.tanh %572 : vector<8x32xf32>
    %574 = vector.extract_strided_slice %559 {offsets = [0, 96], sizes = [8, 32], strides = [1, 1]} : vector<8x128xf32> to vector<8x32xf32>
    %575 = arith.negf %574 : vector<8x32xf32>
    %576 = math.exp %575 : vector<8x32xf32>
    %cst_130 = arith.constant 1.000000e+00 : f32
    %577 = vector.broadcast %cst_130 : f32 to vector<8x32xf32>
    %578 = arith.addf %577, %576 : vector<8x32xf32>
    %579 = arith.divf %577, %578 : vector<8x32xf32>
    %580 = arith.mulf %571, %503 : vector<8x32xf32>
    %581 = arith.mulf %565, %573 : vector<8x32xf32>
    %582 = arith.addf %580, %581 : vector<8x32xf32>
    %583 = math.tanh %582 : vector<8x32xf32>
    %584 = arith.mulf %579, %583 : vector<8x32xf32>
    %585 = vector.broadcast %c6_i32 : i32 to vector<8x1xi32>
    %586 = arith.cmpi sgt, %0, %585 : vector<8x1xi32>
    %587 = vector.shape_cast %586 : vector<8x1xi1> to vector<8x1xi1>
    %588 = vector.broadcast %587 : vector<8x1xi1> to vector<8x32xi1>
    %589 = arith.select %588, %584, %500 : vector<8x32xi1>, vector<8x32xf32>
    %590 = vector.shape_cast %586 : vector<8x1xi1> to vector<8x1xi1>
    %591 = vector.broadcast %590 : vector<8x1xi1> to vector<8x32xi1>
    %592 = arith.select %591, %582, %503 : vector<8x32xi1>, vector<8x32xf32>
    %593 = arith.truncf %589 : vector<8x32xf32> to vector<8x32xbf16>
    %594 = arith.index_cast %c6_i32 : i32 to index
    %c0_131 = arith.constant 0 : index
    %c0_132 = arith.constant 0 : index
    %595 = vector.load %arg20[%594, %c0_131, %c0_132] : memref<8x8x32xbf16, #tpu.memory_space<vmem>>, vector<1x8x32xbf16>
    %596 = vector.shape_cast %595 : vector<1x8x32xbf16> to vector<8x32xbf16>
    %597 = vector.shape_cast %593 : vector<8x32xbf16> to vector<1x8x32xbf16>
    tpu.vector_store %arg20[%594, %c0_131, %c0_132], %597 {strides = array<i32>} : memref<8x8x32xbf16, #tpu.memory_space<vmem>>, vector<1x8x32xbf16>,
    %598 = arith.index_cast %553 : i32 to index
    %c0_133 = arith.constant 0 : index
    %c0_134 = arith.constant 0 : index
    %599 = vector.load %arg19[%598, %c0_133, %c0_134] : memref<8x8x128xf32, #tpu.memory_space<vmem>>, vector<1x8x128xf32>
    %600 = vector.shape_cast %599 : vector<1x8x128xf32> to vector<8x128xf32>
    %601 = arith.truncf %544 : vector<8x32xf32> to vector<8x32xbf16>
    %cst_135 = arith.constant dense<0.000000e+00> : vector<8x128xf32>
    %602 = tpu.matmul %601, %3, %cst_135 {dimension_numbers = #tpu.dot_dimension_numbers<[1], [0], [0], [1], [0, 0, 1, 1], [], []>} : vector<8x32xbf16>, vector<32x128xbf16>, vector<8x128xf32> -> vector<8x128xf32>
    %603 = arith.addf %600, %602 : vector<8x128xf32>
    %604 = vector.extract_strided_slice %603 {offsets = [0, 0], sizes = [8, 32], strides = [1, 1]} : vector<8x128xf32> to vector<8x32xf32>
    %605 = arith.negf %604 : vector<8x32xf32>
    %606 = math.exp %605 : vector<8x32xf32>
    %cst_136 = arith.constant 1.000000e+00 : f32
    %607 = vector.broadcast %cst_136 : f32 to vector<8x32xf32>
    %608 = arith.addf %607, %606 : vector<8x32xf32>
    %609 = arith.divf %607, %608 : vector<8x32xf32>
    %610 = vector.extract_strided_slice %603 {offsets = [0, 32], sizes = [8, 32], strides = [1, 1]} : vector<8x128xf32> to vector<8x32xf32>
    %611 = arith.negf %610 : vector<8x32xf32>
    %612 = math.exp %611 : vector<8x32xf32>
    %cst_137 = arith.constant 1.000000e+00 : f32
    %613 = vector.broadcast %cst_137 : f32 to vector<8x32xf32>
    %614 = arith.addf %613, %612 : vector<8x32xf32>
    %615 = arith.divf %613, %614 : vector<8x32xf32>
    %616 = vector.extract_strided_slice %603 {offsets = [0, 64], sizes = [8, 32], strides = [1, 1]} : vector<8x128xf32> to vector<8x32xf32>
    %617 = math.tanh %616 : vector<8x32xf32>
    %618 = vector.extract_strided_slice %603 {offsets = [0, 96], sizes = [8, 32], strides = [1, 1]} : vector<8x128xf32> to vector<8x32xf32>
    %619 = arith.negf %618 : vector<8x32xf32>
    %620 = math.exp %619 : vector<8x32xf32>
    %cst_138 = arith.constant 1.000000e+00 : f32
    %621 = vector.broadcast %cst_138 : f32 to vector<8x32xf32>
    %622 = arith.addf %621, %620 : vector<8x32xf32>
    %623 = arith.divf %621, %622 : vector<8x32xf32>
    %624 = arith.mulf %615, %547 : vector<8x32xf32>
    %625 = arith.mulf %609, %617 : vector<8x32xf32>
    %626 = arith.addf %624, %625 : vector<8x32xf32>
    %627 = math.tanh %626 : vector<8x32xf32>
    %628 = arith.mulf %623, %627 : vector<8x32xf32>
    %629 = vector.broadcast %553 : i32 to vector<8x1xi32>
    %630 = arith.cmpi sgt, %0, %629 : vector<8x1xi32>
    %631 = vector.shape_cast %630 : vector<8x1xi1> to vector<8x1xi1>
    %632 = vector.broadcast %631 : vector<8x1xi1> to vector<8x32xi1>
    %633 = arith.select %632, %628, %544 : vector<8x32xi1>, vector<8x32xf32>
    %634 = vector.shape_cast %630 : vector<8x1xi1> to vector<8x1xi1>
    %635 = vector.broadcast %634 : vector<8x1xi1> to vector<8x32xi1>
    %636 = arith.select %635, %626, %547 : vector<8x32xi1>, vector<8x32xf32>
    %637 = arith.truncf %633 : vector<8x32xf32> to vector<8x32xbf16>
    %638 = arith.index_cast %553 : i32 to index
    %c0_139 = arith.constant 0 : index
    %c0_140 = arith.constant 0 : index
    %639 = vector.load %arg21[%638, %c0_139, %c0_140] : memref<8x8x32xbf16, #tpu.memory_space<vmem>>, vector<1x8x32xbf16>
    %640 = vector.shape_cast %639 : vector<1x8x32xbf16> to vector<8x32xbf16>
    %641 = vector.shape_cast %637 : vector<8x32xbf16> to vector<1x8x32xbf16>
    tpu.vector_store %arg21[%638, %c0_139, %c0_140], %641 {strides = array<i32>} : memref<8x8x32xbf16, #tpu.memory_space<vmem>>, vector<1x8x32xbf16>,
    %c7_i32_141 = arith.constant 7 : i32
    %c7_i32_142 = arith.constant 7 : i32
    %642 = arith.subi %c7_i32_142, %c7_i32_141 : i32
    %643 = arith.index_cast %c7_i32_141 : i32 to index
    %c0_143 = arith.constant 0 : index
    %c0_144 = arith.constant 0 : index
    %644 = vector.load %arg18[%643, %c0_143, %c0_144] : memref<8x8x128xf32, #tpu.memory_space<vmem>>, vector<1x8x128xf32>
    %645 = vector.shape_cast %644 : vector<1x8x128xf32> to vector<8x128xf32>
    %646 = arith.truncf %589 : vector<8x32xf32> to vector<8x32xbf16>
    %cst_145 = arith.constant dense<0.000000e+00> : vector<8x128xf32>
    %647 = tpu.matmul %646, %2, %cst_145 {dimension_numbers = #tpu.dot_dimension_numbers<[1], [0], [0], [1], [0, 0, 1, 1], [], []>} : vector<8x32xbf16>, vector<32x128xbf16>, vector<8x128xf32> -> vector<8x128xf32>
    %648 = arith.addf %645, %647 : vector<8x128xf32>
    %649 = vector.extract_strided_slice %648 {offsets = [0, 0], sizes = [8, 32], strides = [1, 1]} : vector<8x128xf32> to vector<8x32xf32>
    %650 = arith.negf %649 : vector<8x32xf32>
    %651 = math.exp %650 : vector<8x32xf32>
    %cst_146 = arith.constant 1.000000e+00 : f32
    %652 = vector.broadcast %cst_146 : f32 to vector<8x32xf32>
    %653 = arith.addf %652, %651 : vector<8x32xf32>
    %654 = arith.divf %652, %653 : vector<8x32xf32>
    %655 = vector.extract_strided_slice %648 {offsets = [0, 32], sizes = [8, 32], strides = [1, 1]} : vector<8x128xf32> to vector<8x32xf32>
    %656 = arith.negf %655 : vector<8x32xf32>
    %657 = math.exp %656 : vector<8x32xf32>
    %cst_147 = arith.constant 1.000000e+00 : f32
    %658 = vector.broadcast %cst_147 : f32 to vector<8x32xf32>
    %659 = arith.addf %658, %657 : vector<8x32xf32>
    %660 = arith.divf %658, %659 : vector<8x32xf32>
    %661 = vector.extract_strided_slice %648 {offsets = [0, 64], sizes = [8, 32], strides = [1, 1]} : vector<8x128xf32> to vector<8x32xf32>
    %662 = math.tanh %661 : vector<8x32xf32>
    %663 = vector.extract_strided_slice %648 {offsets = [0, 96], sizes = [8, 32], strides = [1, 1]} : vector<8x128xf32> to vector<8x32xf32>
    %664 = arith.negf %663 : vector<8x32xf32>
    %665 = math.exp %664 : vector<8x32xf32>
    %cst_148 = arith.constant 1.000000e+00 : f32
    %666 = vector.broadcast %cst_148 : f32 to vector<8x32xf32>
    %667 = arith.addf %666, %665 : vector<8x32xf32>
    %668 = arith.divf %666, %667 : vector<8x32xf32>
    %669 = arith.mulf %660, %592 : vector<8x32xf32>
    %670 = arith.mulf %654, %662 : vector<8x32xf32>
    %671 = arith.addf %669, %670 : vector<8x32xf32>
    %672 = math.tanh %671 : vector<8x32xf32>
    %673 = arith.mulf %668, %672 : vector<8x32xf32>
    %674 = vector.broadcast %c7_i32_141 : i32 to vector<8x1xi32>
    %675 = arith.cmpi sgt, %0, %674 : vector<8x1xi32>
    %676 = vector.shape_cast %675 : vector<8x1xi1> to vector<8x1xi1>
    %677 = vector.broadcast %676 : vector<8x1xi1> to vector<8x32xi1>
    %678 = arith.select %677, %673, %589 : vector<8x32xi1>, vector<8x32xf32>
    %679 = vector.shape_cast %675 : vector<8x1xi1> to vector<8x1xi1>
    %680 = vector.broadcast %679 : vector<8x1xi1> to vector<8x32xi1>
    %681 = arith.select %680, %671, %592 : vector<8x32xi1>, vector<8x32xf32>
    %682 = arith.truncf %678 : vector<8x32xf32> to vector<8x32xbf16>
    %683 = arith.index_cast %c7_i32_141 : i32 to index
    %c0_149 = arith.constant 0 : index
    %c0_150 = arith.constant 0 : index
    %684 = vector.load %arg20[%683, %c0_149, %c0_150] : memref<8x8x32xbf16, #tpu.memory_space<vmem>>, vector<1x8x32xbf16>
    %685 = vector.shape_cast %684 : vector<1x8x32xbf16> to vector<8x32xbf16>
    %686 = vector.shape_cast %682 : vector<8x32xbf16> to vector<1x8x32xbf16>
    tpu.vector_store %arg20[%683, %c0_149, %c0_150], %686 {strides = array<i32>} : memref<8x8x32xbf16, #tpu.memory_space<vmem>>, vector<1x8x32xbf16>,
    %687 = arith.index_cast %642 : i32 to index
    %c0_151 = arith.constant 0 : index
    %c0_152 = arith.constant 0 : index
    %688 = vector.load %arg19[%687, %c0_151, %c0_152] : memref<8x8x128xf32, #tpu.memory_space<vmem>>, vector<1x8x128xf32>
    %689 = vector.shape_cast %688 : vector<1x8x128xf32> to vector<8x128xf32>
    %690 = arith.truncf %633 : vector<8x32xf32> to vector<8x32xbf16>
    %cst_153 = arith.constant dense<0.000000e+00> : vector<8x128xf32>
    %691 = tpu.matmul %690, %3, %cst_153 {dimension_numbers = #tpu.dot_dimension_numbers<[1], [0], [0], [1], [0, 0, 1, 1], [], []>} : vector<8x32xbf16>, vector<32x128xbf16>, vector<8x128xf32> -> vector<8x128xf32>
    %692 = arith.addf %689, %691 : vector<8x128xf32>
    %693 = vector.extract_strided_slice %692 {offsets = [0, 0], sizes = [8, 32], strides = [1, 1]} : vector<8x128xf32> to vector<8x32xf32>
    %694 = arith.negf %693 : vector<8x32xf32>
    %695 = math.exp %694 : vector<8x32xf32>
    %cst_154 = arith.constant 1.000000e+00 : f32
    %696 = vector.broadcast %cst_154 : f32 to vector<8x32xf32>
    %697 = arith.addf %696, %695 : vector<8x32xf32>
    %698 = arith.divf %696, %697 : vector<8x32xf32>
    %699 = vector.extract_strided_slice %692 {offsets = [0, 32], sizes = [8, 32], strides = [1, 1]} : vector<8x128xf32> to vector<8x32xf32>
    %700 = arith.negf %699 : vector<8x32xf32>
    %701 = math.exp %700 : vector<8x32xf32>
    %cst_155 = arith.constant 1.000000e+00 : f32
    %702 = vector.broadcast %cst_155 : f32 to vector<8x32xf32>
    %703 = arith.addf %702, %701 : vector<8x32xf32>
    %704 = arith.divf %702, %703 : vector<8x32xf32>
    %705 = vector.extract_strided_slice %692 {offsets = [0, 64], sizes = [8, 32], strides = [1, 1]} : vector<8x128xf32> to vector<8x32xf32>
    %706 = math.tanh %705 : vector<8x32xf32>
    %707 = vector.extract_strided_slice %692 {offsets = [0, 96], sizes = [8, 32], strides = [1, 1]} : vector<8x128xf32> to vector<8x32xf32>
    %708 = arith.negf %707 : vector<8x32xf32>
    %709 = math.exp %708 : vector<8x32xf32>
    %cst_156 = arith.constant 1.000000e+00 : f32
    %710 = vector.broadcast %cst_156 : f32 to vector<8x32xf32>
    %711 = arith.addf %710, %709 : vector<8x32xf32>
    %712 = arith.divf %710, %711 : vector<8x32xf32>
    %713 = arith.mulf %704, %636 : vector<8x32xf32>
    %714 = arith.mulf %698, %706 : vector<8x32xf32>
    %715 = arith.addf %713, %714 : vector<8x32xf32>
    %716 = math.tanh %715 : vector<8x32xf32>
    %717 = arith.mulf %712, %716 : vector<8x32xf32>
    %718 = vector.broadcast %642 : i32 to vector<8x1xi32>
    %719 = arith.cmpi sgt, %0, %718 : vector<8x1xi32>
    %720 = vector.shape_cast %719 : vector<8x1xi1> to vector<8x1xi1>
    %721 = vector.broadcast %720 : vector<8x1xi1> to vector<8x32xi1>
    %722 = arith.select %721, %717, %633 : vector<8x32xi1>, vector<8x32xf32>
    %723 = vector.shape_cast %719 : vector<8x1xi1> to vector<8x1xi1>
    %724 = vector.broadcast %723 : vector<8x1xi1> to vector<8x32xi1>
    %725 = arith.select %724, %715, %636 : vector<8x32xi1>, vector<8x32xf32>
    %726 = arith.truncf %722 : vector<8x32xf32> to vector<8x32xbf16>
    %727 = arith.index_cast %642 : i32 to index
    %c0_157 = arith.constant 0 : index
    %c0_158 = arith.constant 0 : index
    %728 = vector.load %arg21[%727, %c0_157, %c0_158] : memref<8x8x32xbf16, #tpu.memory_space<vmem>>, vector<1x8x32xbf16>
    %729 = vector.shape_cast %728 : vector<1x8x32xbf16> to vector<8x32xbf16>
    %730 = vector.shape_cast %726 : vector<8x32xbf16> to vector<1x8x32xbf16>
    tpu.vector_store %arg21[%727, %c0_157, %c0_158], %730 {strides = array<i32>} : memref<8x8x32xbf16, #tpu.memory_space<vmem>>, vector<1x8x32xbf16>,
    %c8_i32 = arith.constant 8 : i32
    %c0_159 = arith.constant 0 : index
    %c0_160 = arith.constant 0 : index
    %c0_161 = arith.constant 0 : index
    %731 = vector.load %arg20[%c0_159, %c0_160, %c0_161] : memref<8x8x32xbf16, #tpu.memory_space<vmem>>, vector<8x8x32xbf16>
    %732 = vector.shape_cast %731 : vector<8x8x32xbf16> to vector<64x32xbf16>
    %c0_162 = arith.constant 0 : index
    %c0_163 = arith.constant 0 : index
    %c0_164 = arith.constant 0 : index
    %733 = vector.load %arg21[%c0_162, %c0_163, %c0_164] : memref<8x8x32xbf16, #tpu.memory_space<vmem>>, vector<8x8x32xbf16>
    %734 = vector.shape_cast %733 : vector<8x8x32xbf16> to vector<64x32xbf16>
    %c0_165 = arith.constant 0 : index
    %c0_166 = arith.constant 0 : index
    %735 = vector.load %arg8[%c0_165, %c0_166] : memref<32x256xbf16, #tpu.memory_space<vmem>>, vector<32x256xbf16>
    %cst_167 = arith.constant dense<0.000000e+00> : vector<64x256xf32>
    %736 = tpu.matmul %732, %735, %cst_167 {dimension_numbers = #tpu.dot_dimension_numbers<[1], [0], [0], [1], [0, 0, 1, 1], [], []>} : vector<64x32xbf16>, vector<32x256xbf16>, vector<64x256xf32> -> vector<64x256xf32>
    %c0_168 = arith.constant 0 : index
    %c0_169 = arith.constant 0 : index
    %737 = vector.load %arg9[%c0_168, %c0_169] : memref<32x256xbf16, #tpu.memory_space<vmem>>, vector<32x256xbf16>
    %cst_170 = arith.constant dense<0.000000e+00> : vector<64x256xf32>
    %738 = tpu.matmul %734, %737, %cst_170 {dimension_numbers = #tpu.dot_dimension_numbers<[1], [0], [0], [1], [0, 0, 1, 1], [], []>} : vector<64x32xbf16>, vector<32x256xbf16>, vector<64x256xf32> -> vector<64x256xf32>
    %739 = arith.addf %736, %738 : vector<64x256xf32>
    %c0_171 = arith.constant 0 : index
    %c0_172 = arith.constant 0 : index
    %740 = vector.load %arg10[%c0_171, %c0_172] : memref<1x256xf32, #tpu.memory_space<vmem>>, vector<1x256xf32>
    %741 = vector.broadcast %740 : vector<1x256xf32> to vector<64x256xf32>
    %742 = arith.addf %739, %741 : vector<64x256xf32>
    %743 = vector.extract_strided_slice %742 {offsets = [0, 0], sizes = [64, 128], strides = [1, 1]} : vector<64x256xf32> to vector<64x128xf32>
    %744 = vector.shape_cast %743 : vector<64x128xf32> to vector<8x8x128xf32>
    %c0_173 = arith.constant 0 : index
    %c0_174 = arith.constant 0 : index
    %c0_175 = arith.constant 0 : index
    %745 = vector.load %arg18[%c0_173, %c0_174, %c0_175] : memref<8x8x128xf32, #tpu.memory_space<vmem>>, vector<8x8x128xf32>
    tpu.vector_store %arg18[%c0_173, %c0_174, %c0_175], %744 {strides = array<i32>} : memref<8x8x128xf32, #tpu.memory_space<vmem>>, vector<8x8x128xf32>,
    %746 = vector.extract_strided_slice %742 {offsets = [0, 128], sizes = [64, 128], strides = [1, 1]} : vector<64x256xf32> to vector<64x128xf32>
    %747 = vector.shape_cast %746 : vector<64x128xf32> to vector<8x8x128xf32>
    %c0_176 = arith.constant 0 : index
    %c0_177 = arith.constant 0 : index
    %c0_178 = arith.constant 0 : index
    %748 = vector.load %arg19[%c0_176, %c0_177, %c0_178] : memref<8x8x128xf32, #tpu.memory_space<vmem>>, vector<8x8x128xf32>
    tpu.vector_store %arg19[%c0_176, %c0_177, %c0_178], %747 {strides = array<i32>} : memref<8x8x128xf32, #tpu.memory_space<vmem>>, vector<8x8x128xf32>,
    %c0_i32_179 = arith.constant 0 : i32
    %c7_i32_180 = arith.constant 7 : i32
    %749 = arith.subi %c7_i32_180, %c0_i32_179 : i32
    %750 = arith.index_cast %c0_i32_179 : i32 to index
    %c0_181 = arith.constant 0 : index
    %c0_182 = arith.constant 0 : index
    %751 = vector.load %arg18[%750, %c0_181, %c0_182] : memref<8x8x128xf32, #tpu.memory_space<vmem>>, vector<1x8x128xf32>
    %752 = vector.shape_cast %751 : vector<1x8x128xf32> to vector<8x128xf32>
    %753 = arith.truncf %1 : vector<8x32xf32> to vector<8x32xbf16>
    %cst_183 = arith.constant dense<0.000000e+00> : vector<8x128xf32>
    %754 = tpu.matmul %753, %4, %cst_183 {dimension_numbers = #tpu.dot_dimension_numbers<[1], [0], [0], [1], [0, 0, 1, 1], [], []>} : vector<8x32xbf16>, vector<32x128xbf16>, vector<8x128xf32> -> vector<8x128xf32>
    %755 = arith.addf %752, %754 : vector<8x128xf32>
    %756 = vector.extract_strided_slice %755 {offsets = [0, 0], sizes = [8, 32], strides = [1, 1]} : vector<8x128xf32> to vector<8x32xf32>
    %757 = arith.negf %756 : vector<8x32xf32>
    %758 = math.exp %757 : vector<8x32xf32>
    %cst_184 = arith.constant 1.000000e+00 : f32
    %759 = vector.broadcast %cst_184 : f32 to vector<8x32xf32>
    %760 = arith.addf %759, %758 : vector<8x32xf32>
    %761 = arith.divf %759, %760 : vector<8x32xf32>
    %762 = vector.extract_strided_slice %755 {offsets = [0, 32], sizes = [8, 32], strides = [1, 1]} : vector<8x128xf32> to vector<8x32xf32>
    %763 = arith.negf %762 : vector<8x32xf32>
    %764 = math.exp %763 : vector<8x32xf32>
    %cst_185 = arith.constant 1.000000e+00 : f32
    %765 = vector.broadcast %cst_185 : f32 to vector<8x32xf32>
    %766 = arith.addf %765, %764 : vector<8x32xf32>
    %767 = arith.divf %765, %766 : vector<8x32xf32>
    %768 = vector.extract_strided_slice %755 {offsets = [0, 64], sizes = [8, 32], strides = [1, 1]} : vector<8x128xf32> to vector<8x32xf32>
    %769 = math.tanh %768 : vector<8x32xf32>
    %770 = vector.extract_strided_slice %755 {offsets = [0, 96], sizes = [8, 32], strides = [1, 1]} : vector<8x128xf32> to vector<8x32xf32>
    %771 = arith.negf %770 : vector<8x32xf32>
    %772 = math.exp %771 : vector<8x32xf32>
    %cst_186 = arith.constant 1.000000e+00 : f32
    %773 = vector.broadcast %cst_186 : f32 to vector<8x32xf32>
    %774 = arith.addf %773, %772 : vector<8x32xf32>
    %775 = arith.divf %773, %774 : vector<8x32xf32>
    %776 = arith.mulf %767, %1 : vector<8x32xf32>
    %777 = arith.mulf %761, %769 : vector<8x32xf32>
    %778 = arith.addf %776, %777 : vector<8x32xf32>
    %779 = math.tanh %778 : vector<8x32xf32>
    %780 = arith.mulf %775, %779 : vector<8x32xf32>
    %781 = vector.broadcast %c0_i32_179 : i32 to vector<8x1xi32>
    %782 = arith.cmpi sgt, %0, %781 : vector<8x1xi32>
    %783 = vector.shape_cast %782 : vector<8x1xi1> to vector<8x1xi1>
    %784 = vector.broadcast %783 : vector<8x1xi1> to vector<8x32xi1>
    %785 = arith.select %784, %780, %1 : vector<8x32xi1>, vector<8x32xf32>
    %786 = vector.shape_cast %782 : vector<8x1xi1> to vector<8x1xi1>
    %787 = vector.broadcast %786 : vector<8x1xi1> to vector<8x32xi1>
    %788 = arith.select %787, %778, %1 : vector<8x32xi1>, vector<8x32xf32>
    %789 = arith.index_cast %749 : i32 to index
    %c0_187 = arith.constant 0 : index
    %c0_188 = arith.constant 0 : index
    %790 = vector.load %arg19[%789, %c0_187, %c0_188] : memref<8x8x128xf32, #tpu.memory_space<vmem>>, vector<1x8x128xf32>
    %791 = vector.shape_cast %790 : vector<1x8x128xf32> to vector<8x128xf32>
    %792 = arith.truncf %1 : vector<8x32xf32> to vector<8x32xbf16>
    %cst_189 = arith.constant dense<0.000000e+00> : vector<8x128xf32>
    %793 = tpu.matmul %792, %5, %cst_189 {dimension_numbers = #tpu.dot_dimension_numbers<[1], [0], [0], [1], [0, 0, 1, 1], [], []>} : vector<8x32xbf16>, vector<32x128xbf16>, vector<8x128xf32> -> vector<8x128xf32>
    %794 = arith.addf %791, %793 : vector<8x128xf32>
    %795 = vector.extract_strided_slice %794 {offsets = [0, 0], sizes = [8, 32], strides = [1, 1]} : vector<8x128xf32> to vector<8x32xf32>
    %796 = arith.negf %795 : vector<8x32xf32>
    %797 = math.exp %796 : vector<8x32xf32>
    %cst_190 = arith.constant 1.000000e+00 : f32
    %798 = vector.broadcast %cst_190 : f32 to vector<8x32xf32>
    %799 = arith.addf %798, %797 : vector<8x32xf32>
    %800 = arith.divf %798, %799 : vector<8x32xf32>
    %801 = vector.extract_strided_slice %794 {offsets = [0, 32], sizes = [8, 32], strides = [1, 1]} : vector<8x128xf32> to vector<8x32xf32>
    %802 = arith.negf %801 : vector<8x32xf32>
    %803 = math.exp %802 : vector<8x32xf32>
    %cst_191 = arith.constant 1.000000e+00 : f32
    %804 = vector.broadcast %cst_191 : f32 to vector<8x32xf32>
    %805 = arith.addf %804, %803 : vector<8x32xf32>
    %806 = arith.divf %804, %805 : vector<8x32xf32>
    %807 = vector.extract_strided_slice %794 {offsets = [0, 64], sizes = [8, 32], strides = [1, 1]} : vector<8x128xf32> to vector<8x32xf32>
    %808 = math.tanh %807 : vector<8x32xf32>
    %809 = vector.extract_strided_slice %794 {offsets = [0, 96], sizes = [8, 32], strides = [1, 1]} : vector<8x128xf32> to vector<8x32xf32>
    %810 = arith.negf %809 : vector<8x32xf32>
    %811 = math.exp %810 : vector<8x32xf32>
    %cst_192 = arith.constant 1.000000e+00 : f32
    %812 = vector.broadcast %cst_192 : f32 to vector<8x32xf32>
    %813 = arith.addf %812, %811 : vector<8x32xf32>
    %814 = arith.divf %812, %813 : vector<8x32xf32>
    %815 = arith.mulf %806, %1 : vector<8x32xf32>
    %816 = arith.mulf %800, %808 : vector<8x32xf32>
    %817 = arith.addf %815, %816 : vector<8x32xf32>
    %818 = math.tanh %817 : vector<8x32xf32>
    %819 = arith.mulf %814, %818 : vector<8x32xf32>
    %820 = vector.broadcast %749 : i32 to vector<8x1xi32>
    %821 = arith.cmpi sgt, %0, %820 : vector<8x1xi32>
    %822 = vector.shape_cast %821 : vector<8x1xi1> to vector<8x1xi1>
    %823 = vector.broadcast %822 : vector<8x1xi1> to vector<8x32xi1>
    %824 = arith.select %823, %819, %1 : vector<8x32xi1>, vector<8x32xf32>
    %825 = vector.shape_cast %821 : vector<8x1xi1> to vector<8x1xi1>
    %826 = vector.broadcast %825 : vector<8x1xi1> to vector<8x32xi1>
    %827 = arith.select %826, %817, %1 : vector<8x32xi1>, vector<8x32xf32>
    %c1_i32_193 = arith.constant 1 : i32
    %c7_i32_194 = arith.constant 7 : i32
    %828 = arith.subi %c7_i32_194, %c1_i32_193 : i32
    %829 = arith.index_cast %c1_i32_193 : i32 to index
    %c0_195 = arith.constant 0 : index
    %c0_196 = arith.constant 0 : index
    %830 = vector.load %arg18[%829, %c0_195, %c0_196] : memref<8x8x128xf32, #tpu.memory_space<vmem>>, vector<1x8x128xf32>
    %831 = vector.shape_cast %830 : vector<1x8x128xf32> to vector<8x128xf32>
    %832 = arith.truncf %785 : vector<8x32xf32> to vector<8x32xbf16>
    %cst_197 = arith.constant dense<0.000000e+00> : vector<8x128xf32>
    %833 = tpu.matmul %832, %4, %cst_197 {dimension_numbers = #tpu.dot_dimension_numbers<[1], [0], [0], [1], [0, 0, 1, 1], [], []>} : vector<8x32xbf16>, vector<32x128xbf16>, vector<8x128xf32> -> vector<8x128xf32>
    %834 = arith.addf %831, %833 : vector<8x128xf32>
    %835 = vector.extract_strided_slice %834 {offsets = [0, 0], sizes = [8, 32], strides = [1, 1]} : vector<8x128xf32> to vector<8x32xf32>
    %836 = arith.negf %835 : vector<8x32xf32>
    %837 = math.exp %836 : vector<8x32xf32>
    %cst_198 = arith.constant 1.000000e+00 : f32
    %838 = vector.broadcast %cst_198 : f32 to vector<8x32xf32>
    %839 = arith.addf %838, %837 : vector<8x32xf32>
    %840 = arith.divf %838, %839 : vector<8x32xf32>
    %841 = vector.extract_strided_slice %834 {offsets = [0, 32], sizes = [8, 32], strides = [1, 1]} : vector<8x128xf32> to vector<8x32xf32>
    %842 = arith.negf %841 : vector<8x32xf32>
    %843 = math.exp %842 : vector<8x32xf32>
    %cst_199 = arith.constant 1.000000e+00 : f32
    %844 = vector.broadcast %cst_199 : f32 to vector<8x32xf32>
    %845 = arith.addf %844, %843 : vector<8x32xf32>
    %846 = arith.divf %844, %845 : vector<8x32xf32>
    %847 = vector.extract_strided_slice %834 {offsets = [0, 64], sizes = [8, 32], strides = [1, 1]} : vector<8x128xf32> to vector<8x32xf32>
    %848 = math.tanh %847 : vector<8x32xf32>
    %849 = vector.extract_strided_slice %834 {offsets = [0, 96], sizes = [8, 32], strides = [1, 1]} : vector<8x128xf32> to vector<8x32xf32>
    %850 = arith.negf %849 : vector<8x32xf32>
    %851 = math.exp %850 : vector<8x32xf32>
    %cst_200 = arith.constant 1.000000e+00 : f32
    %852 = vector.broadcast %cst_200 : f32 to vector<8x32xf32>
    %853 = arith.addf %852, %851 : vector<8x32xf32>
    %854 = arith.divf %852, %853 : vector<8x32xf32>
    %855 = arith.mulf %846, %788 : vector<8x32xf32>
    %856 = arith.mulf %840, %848 : vector<8x32xf32>
    %857 = arith.addf %855, %856 : vector<8x32xf32>
    %858 = math.tanh %857 : vector<8x32xf32>
    %859 = arith.mulf %854, %858 : vector<8x32xf32>
    %860 = vector.broadcast %c1_i32_193 : i32 to vector<8x1xi32>
    %861 = arith.cmpi sgt, %0, %860 : vector<8x1xi32>
    %862 = vector.shape_cast %861 : vector<8x1xi1> to vector<8x1xi1>
    %863 = vector.broadcast %862 : vector<8x1xi1> to vector<8x32xi1>
    %864 = arith.select %863, %859, %785 : vector<8x32xi1>, vector<8x32xf32>
    %865 = vector.shape_cast %861 : vector<8x1xi1> to vector<8x1xi1>
    %866 = vector.broadcast %865 : vector<8x1xi1> to vector<8x32xi1>
    %867 = arith.select %866, %857, %788 : vector<8x32xi1>, vector<8x32xf32>
    %868 = arith.index_cast %828 : i32 to index
    %c0_201 = arith.constant 0 : index
    %c0_202 = arith.constant 0 : index
    %869 = vector.load %arg19[%868, %c0_201, %c0_202] : memref<8x8x128xf32, #tpu.memory_space<vmem>>, vector<1x8x128xf32>
    %870 = vector.shape_cast %869 : vector<1x8x128xf32> to vector<8x128xf32>
    %871 = arith.truncf %824 : vector<8x32xf32> to vector<8x32xbf16>
    %cst_203 = arith.constant dense<0.000000e+00> : vector<8x128xf32>
    %872 = tpu.matmul %871, %5, %cst_203 {dimension_numbers = #tpu.dot_dimension_numbers<[1], [0], [0], [1], [0, 0, 1, 1], [], []>} : vector<8x32xbf16>, vector<32x128xbf16>, vector<8x128xf32> -> vector<8x128xf32>
    %873 = arith.addf %870, %872 : vector<8x128xf32>
    %874 = vector.extract_strided_slice %873 {offsets = [0, 0], sizes = [8, 32], strides = [1, 1]} : vector<8x128xf32> to vector<8x32xf32>
    %875 = arith.negf %874 : vector<8x32xf32>
    %876 = math.exp %875 : vector<8x32xf32>
    %cst_204 = arith.constant 1.000000e+00 : f32
    %877 = vector.broadcast %cst_204 : f32 to vector<8x32xf32>
    %878 = arith.addf %877, %876 : vector<8x32xf32>
    %879 = arith.divf %877, %878 : vector<8x32xf32>
    %880 = vector.extract_strided_slice %873 {offsets = [0, 32], sizes = [8, 32], strides = [1, 1]} : vector<8x128xf32> to vector<8x32xf32>
    %881 = arith.negf %880 : vector<8x32xf32>
    %882 = math.exp %881 : vector<8x32xf32>
    %cst_205 = arith.constant 1.000000e+00 : f32
    %883 = vector.broadcast %cst_205 : f32 to vector<8x32xf32>
    %884 = arith.addf %883, %882 : vector<8x32xf32>
    %885 = arith.divf %883, %884 : vector<8x32xf32>
    %886 = vector.extract_strided_slice %873 {offsets = [0, 64], sizes = [8, 32], strides = [1, 1]} : vector<8x128xf32> to vector<8x32xf32>
    %887 = math.tanh %886 : vector<8x32xf32>
    %888 = vector.extract_strided_slice %873 {offsets = [0, 96], sizes = [8, 32], strides = [1, 1]} : vector<8x128xf32> to vector<8x32xf32>
    %889 = arith.negf %888 : vector<8x32xf32>
    %890 = math.exp %889 : vector<8x32xf32>
    %cst_206 = arith.constant 1.000000e+00 : f32
    %891 = vector.broadcast %cst_206 : f32 to vector<8x32xf32>
    %892 = arith.addf %891, %890 : vector<8x32xf32>
    %893 = arith.divf %891, %892 : vector<8x32xf32>
    %894 = arith.mulf %885, %827 : vector<8x32xf32>
    %895 = arith.mulf %879, %887 : vector<8x32xf32>
    %896 = arith.addf %894, %895 : vector<8x32xf32>
    %897 = math.tanh %896 : vector<8x32xf32>
    %898 = arith.mulf %893, %897 : vector<8x32xf32>
    %899 = vector.broadcast %828 : i32 to vector<8x1xi32>
    %900 = arith.cmpi sgt, %0, %899 : vector<8x1xi32>
    %901 = vector.shape_cast %900 : vector<8x1xi1> to vector<8x1xi1>
    %902 = vector.broadcast %901 : vector<8x1xi1> to vector<8x32xi1>
    %903 = arith.select %902, %898, %824 : vector<8x32xi1>, vector<8x32xf32>
    %904 = vector.shape_cast %900 : vector<8x1xi1> to vector<8x1xi1>
    %905 = vector.broadcast %904 : vector<8x1xi1> to vector<8x32xi1>
    %906 = arith.select %905, %896, %827 : vector<8x32xi1>, vector<8x32xf32>
    %c2_i32_207 = arith.constant 2 : i32
    %c7_i32_208 = arith.constant 7 : i32
    %907 = arith.subi %c7_i32_208, %c2_i32_207 : i32
    %908 = arith.index_cast %c2_i32_207 : i32 to index
    %c0_209 = arith.constant 0 : index
    %c0_210 = arith.constant 0 : index
    %909 = vector.load %arg18[%908, %c0_209, %c0_210] : memref<8x8x128xf32, #tpu.memory_space<vmem>>, vector<1x8x128xf32>
    %910 = vector.shape_cast %909 : vector<1x8x128xf32> to vector<8x128xf32>
    %911 = arith.truncf %864 : vector<8x32xf32> to vector<8x32xbf16>
    %cst_211 = arith.constant dense<0.000000e+00> : vector<8x128xf32>
    %912 = tpu.matmul %911, %4, %cst_211 {dimension_numbers = #tpu.dot_dimension_numbers<[1], [0], [0], [1], [0, 0, 1, 1], [], []>} : vector<8x32xbf16>, vector<32x128xbf16>, vector<8x128xf32> -> vector<8x128xf32>
    %913 = arith.addf %910, %912 : vector<8x128xf32>
    %914 = vector.extract_strided_slice %913 {offsets = [0, 0], sizes = [8, 32], strides = [1, 1]} : vector<8x128xf32> to vector<8x32xf32>
    %915 = arith.negf %914 : vector<8x32xf32>
    %916 = math.exp %915 : vector<8x32xf32>
    %cst_212 = arith.constant 1.000000e+00 : f32
    %917 = vector.broadcast %cst_212 : f32 to vector<8x32xf32>
    %918 = arith.addf %917, %916 : vector<8x32xf32>
    %919 = arith.divf %917, %918 : vector<8x32xf32>
    %920 = vector.extract_strided_slice %913 {offsets = [0, 32], sizes = [8, 32], strides = [1, 1]} : vector<8x128xf32> to vector<8x32xf32>
    %921 = arith.negf %920 : vector<8x32xf32>
    %922 = math.exp %921 : vector<8x32xf32>
    %cst_213 = arith.constant 1.000000e+00 : f32
    %923 = vector.broadcast %cst_213 : f32 to vector<8x32xf32>
    %924 = arith.addf %923, %922 : vector<8x32xf32>
    %925 = arith.divf %923, %924 : vector<8x32xf32>
    %926 = vector.extract_strided_slice %913 {offsets = [0, 64], sizes = [8, 32], strides = [1, 1]} : vector<8x128xf32> to vector<8x32xf32>
    %927 = math.tanh %926 : vector<8x32xf32>
    %928 = vector.extract_strided_slice %913 {offsets = [0, 96], sizes = [8, 32], strides = [1, 1]} : vector<8x128xf32> to vector<8x32xf32>
    %929 = arith.negf %928 : vector<8x32xf32>
    %930 = math.exp %929 : vector<8x32xf32>
    %cst_214 = arith.constant 1.000000e+00 : f32
    %931 = vector.broadcast %cst_214 : f32 to vector<8x32xf32>
    %932 = arith.addf %931, %930 : vector<8x32xf32>
    %933 = arith.divf %931, %932 : vector<8x32xf32>
    %934 = arith.mulf %925, %867 : vector<8x32xf32>
    %935 = arith.mulf %919, %927 : vector<8x32xf32>
    %936 = arith.addf %934, %935 : vector<8x32xf32>
    %937 = math.tanh %936 : vector<8x32xf32>
    %938 = arith.mulf %933, %937 : vector<8x32xf32>
    %939 = vector.broadcast %c2_i32_207 : i32 to vector<8x1xi32>
    %940 = arith.cmpi sgt, %0, %939 : vector<8x1xi32>
    %941 = vector.shape_cast %940 : vector<8x1xi1> to vector<8x1xi1>
    %942 = vector.broadcast %941 : vector<8x1xi1> to vector<8x32xi1>
    %943 = arith.select %942, %938, %864 : vector<8x32xi1>, vector<8x32xf32>
    %944 = vector.shape_cast %940 : vector<8x1xi1> to vector<8x1xi1>
    %945 = vector.broadcast %944 : vector<8x1xi1> to vector<8x32xi1>
    %946 = arith.select %945, %936, %867 : vector<8x32xi1>, vector<8x32xf32>
    %947 = arith.index_cast %907 : i32 to index
    %c0_215 = arith.constant 0 : index
    %c0_216 = arith.constant 0 : index
    %948 = vector.load %arg19[%947, %c0_215, %c0_216] : memref<8x8x128xf32, #tpu.memory_space<vmem>>, vector<1x8x128xf32>
    %949 = vector.shape_cast %948 : vector<1x8x128xf32> to vector<8x128xf32>
    %950 = arith.truncf %903 : vector<8x32xf32> to vector<8x32xbf16>
    %cst_217 = arith.constant dense<0.000000e+00> : vector<8x128xf32>
    %951 = tpu.matmul %950, %5, %cst_217 {dimension_numbers = #tpu.dot_dimension_numbers<[1], [0], [0], [1], [0, 0, 1, 1], [], []>} : vector<8x32xbf16>, vector<32x128xbf16>, vector<8x128xf32> -> vector<8x128xf32>
    %952 = arith.addf %949, %951 : vector<8x128xf32>
    %953 = vector.extract_strided_slice %952 {offsets = [0, 0], sizes = [8, 32], strides = [1, 1]} : vector<8x128xf32> to vector<8x32xf32>
    %954 = arith.negf %953 : vector<8x32xf32>
    %955 = math.exp %954 : vector<8x32xf32>
    %cst_218 = arith.constant 1.000000e+00 : f32
    %956 = vector.broadcast %cst_218 : f32 to vector<8x32xf32>
    %957 = arith.addf %956, %955 : vector<8x32xf32>
    %958 = arith.divf %956, %957 : vector<8x32xf32>
    %959 = vector.extract_strided_slice %952 {offsets = [0, 32], sizes = [8, 32], strides = [1, 1]} : vector<8x128xf32> to vector<8x32xf32>
    %960 = arith.negf %959 : vector<8x32xf32>
    %961 = math.exp %960 : vector<8x32xf32>
    %cst_219 = arith.constant 1.000000e+00 : f32
    %962 = vector.broadcast %cst_219 : f32 to vector<8x32xf32>
    %963 = arith.addf %962, %961 : vector<8x32xf32>
    %964 = arith.divf %962, %963 : vector<8x32xf32>
    %965 = vector.extract_strided_slice %952 {offsets = [0, 64], sizes = [8, 32], strides = [1, 1]} : vector<8x128xf32> to vector<8x32xf32>
    %966 = math.tanh %965 : vector<8x32xf32>
    %967 = vector.extract_strided_slice %952 {offsets = [0, 96], sizes = [8, 32], strides = [1, 1]} : vector<8x128xf32> to vector<8x32xf32>
    %968 = arith.negf %967 : vector<8x32xf32>
    %969 = math.exp %968 : vector<8x32xf32>
    %cst_220 = arith.constant 1.000000e+00 : f32
    %970 = vector.broadcast %cst_220 : f32 to vector<8x32xf32>
    %971 = arith.addf %970, %969 : vector<8x32xf32>
    %972 = arith.divf %970, %971 : vector<8x32xf32>
    %973 = arith.mulf %964, %906 : vector<8x32xf32>
    %974 = arith.mulf %958, %966 : vector<8x32xf32>
    %975 = arith.addf %973, %974 : vector<8x32xf32>
    %976 = math.tanh %975 : vector<8x32xf32>
    %977 = arith.mulf %972, %976 : vector<8x32xf32>
    %978 = vector.broadcast %907 : i32 to vector<8x1xi32>
    %979 = arith.cmpi sgt, %0, %978 : vector<8x1xi32>
    %980 = vector.shape_cast %979 : vector<8x1xi1> to vector<8x1xi1>
    %981 = vector.broadcast %980 : vector<8x1xi1> to vector<8x32xi1>
    %982 = arith.select %981, %977, %903 : vector<8x32xi1>, vector<8x32xf32>
    %983 = vector.shape_cast %979 : vector<8x1xi1> to vector<8x1xi1>
    %984 = vector.broadcast %983 : vector<8x1xi1> to vector<8x32xi1>
    %985 = arith.select %984, %975, %906 : vector<8x32xi1>, vector<8x32xf32>
    %c3_i32_221 = arith.constant 3 : i32
    %c7_i32_222 = arith.constant 7 : i32
    %986 = arith.subi %c7_i32_222, %c3_i32_221 : i32
    %987 = arith.index_cast %c3_i32_221 : i32 to index
    %c0_223 = arith.constant 0 : index
    %c0_224 = arith.constant 0 : index
    %988 = vector.load %arg18[%987, %c0_223, %c0_224] : memref<8x8x128xf32, #tpu.memory_space<vmem>>, vector<1x8x128xf32>
    %989 = vector.shape_cast %988 : vector<1x8x128xf32> to vector<8x128xf32>
    %990 = arith.truncf %943 : vector<8x32xf32> to vector<8x32xbf16>
    %cst_225 = arith.constant dense<0.000000e+00> : vector<8x128xf32>
    %991 = tpu.matmul %990, %4, %cst_225 {dimension_numbers = #tpu.dot_dimension_numbers<[1], [0], [0], [1], [0, 0, 1, 1], [], []>} : vector<8x32xbf16>, vector<32x128xbf16>, vector<8x128xf32> -> vector<8x128xf32>
    %992 = arith.addf %989, %991 : vector<8x128xf32>
    %993 = vector.extract_strided_slice %992 {offsets = [0, 0], sizes = [8, 32], strides = [1, 1]} : vector<8x128xf32> to vector<8x32xf32>
    %994 = arith.negf %993 : vector<8x32xf32>
    %995 = math.exp %994 : vector<8x32xf32>
    %cst_226 = arith.constant 1.000000e+00 : f32
    %996 = vector.broadcast %cst_226 : f32 to vector<8x32xf32>
    %997 = arith.addf %996, %995 : vector<8x32xf32>
    %998 = arith.divf %996, %997 : vector<8x32xf32>
    %999 = vector.extract_strided_slice %992 {offsets = [0, 32], sizes = [8, 32], strides = [1, 1]} : vector<8x128xf32> to vector<8x32xf32>
    %1000 = arith.negf %999 : vector<8x32xf32>
    %1001 = math.exp %1000 : vector<8x32xf32>
    %cst_227 = arith.constant 1.000000e+00 : f32
    %1002 = vector.broadcast %cst_227 : f32 to vector<8x32xf32>
    %1003 = arith.addf %1002, %1001 : vector<8x32xf32>
    %1004 = arith.divf %1002, %1003 : vector<8x32xf32>
    %1005 = vector.extract_strided_slice %992 {offsets = [0, 64], sizes = [8, 32], strides = [1, 1]} : vector<8x128xf32> to vector<8x32xf32>
    %1006 = math.tanh %1005 : vector<8x32xf32>
    %1007 = vector.extract_strided_slice %992 {offsets = [0, 96], sizes = [8, 32], strides = [1, 1]} : vector<8x128xf32> to vector<8x32xf32>
    %1008 = arith.negf %1007 : vector<8x32xf32>
    %1009 = math.exp %1008 : vector<8x32xf32>
    %cst_228 = arith.constant 1.000000e+00 : f32
    %1010 = vector.broadcast %cst_228 : f32 to vector<8x32xf32>
    %1011 = arith.addf %1010, %1009 : vector<8x32xf32>
    %1012 = arith.divf %1010, %1011 : vector<8x32xf32>
    %1013 = arith.mulf %1004, %946 : vector<8x32xf32>
    %1014 = arith.mulf %998, %1006 : vector<8x32xf32>
    %1015 = arith.addf %1013, %1014 : vector<8x32xf32>
    %1016 = math.tanh %1015 : vector<8x32xf32>
    %1017 = arith.mulf %1012, %1016 : vector<8x32xf32>
    %1018 = vector.broadcast %c3_i32_221 : i32 to vector<8x1xi32>
    %1019 = arith.cmpi sgt, %0, %1018 : vector<8x1xi32>
    %1020 = vector.shape_cast %1019 : vector<8x1xi1> to vector<8x1xi1>
    %1021 = vector.broadcast %1020 : vector<8x1xi1> to vector<8x32xi1>
    %1022 = arith.select %1021, %1017, %943 : vector<8x32xi1>, vector<8x32xf32>
    %1023 = vector.shape_cast %1019 : vector<8x1xi1> to vector<8x1xi1>
    %1024 = vector.broadcast %1023 : vector<8x1xi1> to vector<8x32xi1>
    %1025 = arith.select %1024, %1015, %946 : vector<8x32xi1>, vector<8x32xf32>
    %1026 = arith.index_cast %986 : i32 to index
    %c0_229 = arith.constant 0 : index
    %c0_230 = arith.constant 0 : index
    %1027 = vector.load %arg19[%1026, %c0_229, %c0_230] : memref<8x8x128xf32, #tpu.memory_space<vmem>>, vector<1x8x128xf32>
    %1028 = vector.shape_cast %1027 : vector<1x8x128xf32> to vector<8x128xf32>
    %1029 = arith.truncf %982 : vector<8x32xf32> to vector<8x32xbf16>
    %cst_231 = arith.constant dense<0.000000e+00> : vector<8x128xf32>
    %1030 = tpu.matmul %1029, %5, %cst_231 {dimension_numbers = #tpu.dot_dimension_numbers<[1], [0], [0], [1], [0, 0, 1, 1], [], []>} : vector<8x32xbf16>, vector<32x128xbf16>, vector<8x128xf32> -> vector<8x128xf32>
    %1031 = arith.addf %1028, %1030 : vector<8x128xf32>
    %1032 = vector.extract_strided_slice %1031 {offsets = [0, 0], sizes = [8, 32], strides = [1, 1]} : vector<8x128xf32> to vector<8x32xf32>
    %1033 = arith.negf %1032 : vector<8x32xf32>
    %1034 = math.exp %1033 : vector<8x32xf32>
    %cst_232 = arith.constant 1.000000e+00 : f32
    %1035 = vector.broadcast %cst_232 : f32 to vector<8x32xf32>
    %1036 = arith.addf %1035, %1034 : vector<8x32xf32>
    %1037 = arith.divf %1035, %1036 : vector<8x32xf32>
    %1038 = vector.extract_strided_slice %1031 {offsets = [0, 32], sizes = [8, 32], strides = [1, 1]} : vector<8x128xf32> to vector<8x32xf32>
    %1039 = arith.negf %1038 : vector<8x32xf32>
    %1040 = math.exp %1039 : vector<8x32xf32>
    %cst_233 = arith.constant 1.000000e+00 : f32
    %1041 = vector.broadcast %cst_233 : f32 to vector<8x32xf32>
    %1042 = arith.addf %1041, %1040 : vector<8x32xf32>
    %1043 = arith.divf %1041, %1042 : vector<8x32xf32>
    %1044 = vector.extract_strided_slice %1031 {offsets = [0, 64], sizes = [8, 32], strides = [1, 1]} : vector<8x128xf32> to vector<8x32xf32>
    %1045 = math.tanh %1044 : vector<8x32xf32>
    %1046 = vector.extract_strided_slice %1031 {offsets = [0, 96], sizes = [8, 32], strides = [1, 1]} : vector<8x128xf32> to vector<8x32xf32>
    %1047 = arith.negf %1046 : vector<8x32xf32>
    %1048 = math.exp %1047 : vector<8x32xf32>
    %cst_234 = arith.constant 1.000000e+00 : f32
    %1049 = vector.broadcast %cst_234 : f32 to vector<8x32xf32>
    %1050 = arith.addf %1049, %1048 : vector<8x32xf32>
    %1051 = arith.divf %1049, %1050 : vector<8x32xf32>
    %1052 = arith.mulf %1043, %985 : vector<8x32xf32>
    %1053 = arith.mulf %1037, %1045 : vector<8x32xf32>
    %1054 = arith.addf %1052, %1053 : vector<8x32xf32>
    %1055 = math.tanh %1054 : vector<8x32xf32>
    %1056 = arith.mulf %1051, %1055 : vector<8x32xf32>
    %1057 = vector.broadcast %986 : i32 to vector<8x1xi32>
    %1058 = arith.cmpi sgt, %0, %1057 : vector<8x1xi32>
    %1059 = vector.shape_cast %1058 : vector<8x1xi1> to vector<8x1xi1>
    %1060 = vector.broadcast %1059 : vector<8x1xi1> to vector<8x32xi1>
    %1061 = arith.select %1060, %1056, %982 : vector<8x32xi1>, vector<8x32xf32>
    %1062 = vector.shape_cast %1058 : vector<8x1xi1> to vector<8x1xi1>
    %1063 = vector.broadcast %1062 : vector<8x1xi1> to vector<8x32xi1>
    %1064 = arith.select %1063, %1054, %985 : vector<8x32xi1>, vector<8x32xf32>
    %c4_i32_235 = arith.constant 4 : i32
    %c7_i32_236 = arith.constant 7 : i32
    %1065 = arith.subi %c7_i32_236, %c4_i32_235 : i32
    %1066 = arith.index_cast %c4_i32_235 : i32 to index
    %c0_237 = arith.constant 0 : index
    %c0_238 = arith.constant 0 : index
    %1067 = vector.load %arg18[%1066, %c0_237, %c0_238] : memref<8x8x128xf32, #tpu.memory_space<vmem>>, vector<1x8x128xf32>
    %1068 = vector.shape_cast %1067 : vector<1x8x128xf32> to vector<8x128xf32>
    %1069 = arith.truncf %1022 : vector<8x32xf32> to vector<8x32xbf16>
    %cst_239 = arith.constant dense<0.000000e+00> : vector<8x128xf32>
    %1070 = tpu.matmul %1069, %4, %cst_239 {dimension_numbers = #tpu.dot_dimension_numbers<[1], [0], [0], [1], [0, 0, 1, 1], [], []>} : vector<8x32xbf16>, vector<32x128xbf16>, vector<8x128xf32> -> vector<8x128xf32>
    %1071 = arith.addf %1068, %1070 : vector<8x128xf32>
    %1072 = vector.extract_strided_slice %1071 {offsets = [0, 0], sizes = [8, 32], strides = [1, 1]} : vector<8x128xf32> to vector<8x32xf32>
    %1073 = arith.negf %1072 : vector<8x32xf32>
    %1074 = math.exp %1073 : vector<8x32xf32>
    %cst_240 = arith.constant 1.000000e+00 : f32
    %1075 = vector.broadcast %cst_240 : f32 to vector<8x32xf32>
    %1076 = arith.addf %1075, %1074 : vector<8x32xf32>
    %1077 = arith.divf %1075, %1076 : vector<8x32xf32>
    %1078 = vector.extract_strided_slice %1071 {offsets = [0, 32], sizes = [8, 32], strides = [1, 1]} : vector<8x128xf32> to vector<8x32xf32>
    %1079 = arith.negf %1078 : vector<8x32xf32>
    %1080 = math.exp %1079 : vector<8x32xf32>
    %cst_241 = arith.constant 1.000000e+00 : f32
    %1081 = vector.broadcast %cst_241 : f32 to vector<8x32xf32>
    %1082 = arith.addf %1081, %1080 : vector<8x32xf32>
    %1083 = arith.divf %1081, %1082 : vector<8x32xf32>
    %1084 = vector.extract_strided_slice %1071 {offsets = [0, 64], sizes = [8, 32], strides = [1, 1]} : vector<8x128xf32> to vector<8x32xf32>
    %1085 = math.tanh %1084 : vector<8x32xf32>
    %1086 = vector.extract_strided_slice %1071 {offsets = [0, 96], sizes = [8, 32], strides = [1, 1]} : vector<8x128xf32> to vector<8x32xf32>
    %1087 = arith.negf %1086 : vector<8x32xf32>
    %1088 = math.exp %1087 : vector<8x32xf32>
    %cst_242 = arith.constant 1.000000e+00 : f32
    %1089 = vector.broadcast %cst_242 : f32 to vector<8x32xf32>
    %1090 = arith.addf %1089, %1088 : vector<8x32xf32>
    %1091 = arith.divf %1089, %1090 : vector<8x32xf32>
    %1092 = arith.mulf %1083, %1025 : vector<8x32xf32>
    %1093 = arith.mulf %1077, %1085 : vector<8x32xf32>
    %1094 = arith.addf %1092, %1093 : vector<8x32xf32>
    %1095 = math.tanh %1094 : vector<8x32xf32>
    %1096 = arith.mulf %1091, %1095 : vector<8x32xf32>
    %1097 = vector.broadcast %c4_i32_235 : i32 to vector<8x1xi32>
    %1098 = arith.cmpi sgt, %0, %1097 : vector<8x1xi32>
    %1099 = vector.shape_cast %1098 : vector<8x1xi1> to vector<8x1xi1>
    %1100 = vector.broadcast %1099 : vector<8x1xi1> to vector<8x32xi1>
    %1101 = arith.select %1100, %1096, %1022 : vector<8x32xi1>, vector<8x32xf32>
    %1102 = vector.shape_cast %1098 : vector<8x1xi1> to vector<8x1xi1>
    %1103 = vector.broadcast %1102 : vector<8x1xi1> to vector<8x32xi1>
    %1104 = arith.select %1103, %1094, %1025 : vector<8x32xi1>, vector<8x32xf32>
    %1105 = arith.index_cast %1065 : i32 to index
    %c0_243 = arith.constant 0 : index
    %c0_244 = arith.constant 0 : index
    %1106 = vector.load %arg19[%1105, %c0_243, %c0_244] : memref<8x8x128xf32, #tpu.memory_space<vmem>>, vector<1x8x128xf32>
    %1107 = vector.shape_cast %1106 : vector<1x8x128xf32> to vector<8x128xf32>
    %1108 = arith.truncf %1061 : vector<8x32xf32> to vector<8x32xbf16>
    %cst_245 = arith.constant dense<0.000000e+00> : vector<8x128xf32>
    %1109 = tpu.matmul %1108, %5, %cst_245 {dimension_numbers = #tpu.dot_dimension_numbers<[1], [0], [0], [1], [0, 0, 1, 1], [], []>} : vector<8x32xbf16>, vector<32x128xbf16>, vector<8x128xf32> -> vector<8x128xf32>
    %1110 = arith.addf %1107, %1109 : vector<8x128xf32>
    %1111 = vector.extract_strided_slice %1110 {offsets = [0, 0], sizes = [8, 32], strides = [1, 1]} : vector<8x128xf32> to vector<8x32xf32>
    %1112 = arith.negf %1111 : vector<8x32xf32>
    %1113 = math.exp %1112 : vector<8x32xf32>
    %cst_246 = arith.constant 1.000000e+00 : f32
    %1114 = vector.broadcast %cst_246 : f32 to vector<8x32xf32>
    %1115 = arith.addf %1114, %1113 : vector<8x32xf32>
    %1116 = arith.divf %1114, %1115 : vector<8x32xf32>
    %1117 = vector.extract_strided_slice %1110 {offsets = [0, 32], sizes = [8, 32], strides = [1, 1]} : vector<8x128xf32> to vector<8x32xf32>
    %1118 = arith.negf %1117 : vector<8x32xf32>
    %1119 = math.exp %1118 : vector<8x32xf32>
    %cst_247 = arith.constant 1.000000e+00 : f32
    %1120 = vector.broadcast %cst_247 : f32 to vector<8x32xf32>
    %1121 = arith.addf %1120, %1119 : vector<8x32xf32>
    %1122 = arith.divf %1120, %1121 : vector<8x32xf32>
    %1123 = vector.extract_strided_slice %1110 {offsets = [0, 64], sizes = [8, 32], strides = [1, 1]} : vector<8x128xf32> to vector<8x32xf32>
    %1124 = math.tanh %1123 : vector<8x32xf32>
    %1125 = vector.extract_strided_slice %1110 {offsets = [0, 96], sizes = [8, 32], strides = [1, 1]} : vector<8x128xf32> to vector<8x32xf32>
    %1126 = arith.negf %1125 : vector<8x32xf32>
    %1127 = math.exp %1126 : vector<8x32xf32>
    %cst_248 = arith.constant 1.000000e+00 : f32
    %1128 = vector.broadcast %cst_248 : f32 to vector<8x32xf32>
    %1129 = arith.addf %1128, %1127 : vector<8x32xf32>
    %1130 = arith.divf %1128, %1129 : vector<8x32xf32>
    %1131 = arith.mulf %1122, %1064 : vector<8x32xf32>
    %1132 = arith.mulf %1116, %1124 : vector<8x32xf32>
    %1133 = arith.addf %1131, %1132 : vector<8x32xf32>
    %1134 = math.tanh %1133 : vector<8x32xf32>
    %1135 = arith.mulf %1130, %1134 : vector<8x32xf32>
    %1136 = vector.broadcast %1065 : i32 to vector<8x1xi32>
    %1137 = arith.cmpi sgt, %0, %1136 : vector<8x1xi32>
    %1138 = vector.shape_cast %1137 : vector<8x1xi1> to vector<8x1xi1>
    %1139 = vector.broadcast %1138 : vector<8x1xi1> to vector<8x32xi1>
    %1140 = arith.select %1139, %1135, %1061 : vector<8x32xi1>, vector<8x32xf32>
    %1141 = vector.shape_cast %1137 : vector<8x1xi1> to vector<8x1xi1>
    %1142 = vector.broadcast %1141 : vector<8x1xi1> to vector<8x32xi1>
    %1143 = arith.select %1142, %1133, %1064 : vector<8x32xi1>, vector<8x32xf32>
    %c5_i32_249 = arith.constant 5 : i32
    %c7_i32_250 = arith.constant 7 : i32
    %1144 = arith.subi %c7_i32_250, %c5_i32_249 : i32
    %1145 = arith.index_cast %c5_i32_249 : i32 to index
    %c0_251 = arith.constant 0 : index
    %c0_252 = arith.constant 0 : index
    %1146 = vector.load %arg18[%1145, %c0_251, %c0_252] : memref<8x8x128xf32, #tpu.memory_space<vmem>>, vector<1x8x128xf32>
    %1147 = vector.shape_cast %1146 : vector<1x8x128xf32> to vector<8x128xf32>
    %1148 = arith.truncf %1101 : vector<8x32xf32> to vector<8x32xbf16>
    %cst_253 = arith.constant dense<0.000000e+00> : vector<8x128xf32>
    %1149 = tpu.matmul %1148, %4, %cst_253 {dimension_numbers = #tpu.dot_dimension_numbers<[1], [0], [0], [1], [0, 0, 1, 1], [], []>} : vector<8x32xbf16>, vector<32x128xbf16>, vector<8x128xf32> -> vector<8x128xf32>
    %1150 = arith.addf %1147, %1149 : vector<8x128xf32>
    %1151 = vector.extract_strided_slice %1150 {offsets = [0, 0], sizes = [8, 32], strides = [1, 1]} : vector<8x128xf32> to vector<8x32xf32>
    %1152 = arith.negf %1151 : vector<8x32xf32>
    %1153 = math.exp %1152 : vector<8x32xf32>
    %cst_254 = arith.constant 1.000000e+00 : f32
    %1154 = vector.broadcast %cst_254 : f32 to vector<8x32xf32>
    %1155 = arith.addf %1154, %1153 : vector<8x32xf32>
    %1156 = arith.divf %1154, %1155 : vector<8x32xf32>
    %1157 = vector.extract_strided_slice %1150 {offsets = [0, 32], sizes = [8, 32], strides = [1, 1]} : vector<8x128xf32> to vector<8x32xf32>
    %1158 = arith.negf %1157 : vector<8x32xf32>
    %1159 = math.exp %1158 : vector<8x32xf32>
    %cst_255 = arith.constant 1.000000e+00 : f32
    %1160 = vector.broadcast %cst_255 : f32 to vector<8x32xf32>
    %1161 = arith.addf %1160, %1159 : vector<8x32xf32>
    %1162 = arith.divf %1160, %1161 : vector<8x32xf32>
    %1163 = vector.extract_strided_slice %1150 {offsets = [0, 64], sizes = [8, 32], strides = [1, 1]} : vector<8x128xf32> to vector<8x32xf32>
    %1164 = math.tanh %1163 : vector<8x32xf32>
    %1165 = vector.extract_strided_slice %1150 {offsets = [0, 96], sizes = [8, 32], strides = [1, 1]} : vector<8x128xf32> to vector<8x32xf32>
    %1166 = arith.negf %1165 : vector<8x32xf32>
    %1167 = math.exp %1166 : vector<8x32xf32>
    %cst_256 = arith.constant 1.000000e+00 : f32
    %1168 = vector.broadcast %cst_256 : f32 to vector<8x32xf32>
    %1169 = arith.addf %1168, %1167 : vector<8x32xf32>
    %1170 = arith.divf %1168, %1169 : vector<8x32xf32>
    %1171 = arith.mulf %1162, %1104 : vector<8x32xf32>
    %1172 = arith.mulf %1156, %1164 : vector<8x32xf32>
    %1173 = arith.addf %1171, %1172 : vector<8x32xf32>
    %1174 = math.tanh %1173 : vector<8x32xf32>
    %1175 = arith.mulf %1170, %1174 : vector<8x32xf32>
    %1176 = vector.broadcast %c5_i32_249 : i32 to vector<8x1xi32>
    %1177 = arith.cmpi sgt, %0, %1176 : vector<8x1xi32>
    %1178 = vector.shape_cast %1177 : vector<8x1xi1> to vector<8x1xi1>
    %1179 = vector.broadcast %1178 : vector<8x1xi1> to vector<8x32xi1>
    %1180 = arith.select %1179, %1175, %1101 : vector<8x32xi1>, vector<8x32xf32>
    %1181 = vector.shape_cast %1177 : vector<8x1xi1> to vector<8x1xi1>
    %1182 = vector.broadcast %1181 : vector<8x1xi1> to vector<8x32xi1>
    %1183 = arith.select %1182, %1173, %1104 : vector<8x32xi1>, vector<8x32xf32>
    %1184 = arith.index_cast %1144 : i32 to index
    %c0_257 = arith.constant 0 : index
    %c0_258 = arith.constant 0 : index
    %1185 = vector.load %arg19[%1184, %c0_257, %c0_258] : memref<8x8x128xf32, #tpu.memory_space<vmem>>, vector<1x8x128xf32>
    %1186 = vector.shape_cast %1185 : vector<1x8x128xf32> to vector<8x128xf32>
    %1187 = arith.truncf %1140 : vector<8x32xf32> to vector<8x32xbf16>
    %cst_259 = arith.constant dense<0.000000e+00> : vector<8x128xf32>
    %1188 = tpu.matmul %1187, %5, %cst_259 {dimension_numbers = #tpu.dot_dimension_numbers<[1], [0], [0], [1], [0, 0, 1, 1], [], []>} : vector<8x32xbf16>, vector<32x128xbf16>, vector<8x128xf32> -> vector<8x128xf32>
    %1189 = arith.addf %1186, %1188 : vector<8x128xf32>
    %1190 = vector.extract_strided_slice %1189 {offsets = [0, 0], sizes = [8, 32], strides = [1, 1]} : vector<8x128xf32> to vector<8x32xf32>
    %1191 = arith.negf %1190 : vector<8x32xf32>
    %1192 = math.exp %1191 : vector<8x32xf32>
    %cst_260 = arith.constant 1.000000e+00 : f32
    %1193 = vector.broadcast %cst_260 : f32 to vector<8x32xf32>
    %1194 = arith.addf %1193, %1192 : vector<8x32xf32>
    %1195 = arith.divf %1193, %1194 : vector<8x32xf32>
    %1196 = vector.extract_strided_slice %1189 {offsets = [0, 32], sizes = [8, 32], strides = [1, 1]} : vector<8x128xf32> to vector<8x32xf32>
    %1197 = arith.negf %1196 : vector<8x32xf32>
    %1198 = math.exp %1197 : vector<8x32xf32>
    %cst_261 = arith.constant 1.000000e+00 : f32
    %1199 = vector.broadcast %cst_261 : f32 to vector<8x32xf32>
    %1200 = arith.addf %1199, %1198 : vector<8x32xf32>
    %1201 = arith.divf %1199, %1200 : vector<8x32xf32>
    %1202 = vector.extract_strided_slice %1189 {offsets = [0, 64], sizes = [8, 32], strides = [1, 1]} : vector<8x128xf32> to vector<8x32xf32>
    %1203 = math.tanh %1202 : vector<8x32xf32>
    %1204 = vector.extract_strided_slice %1189 {offsets = [0, 96], sizes = [8, 32], strides = [1, 1]} : vector<8x128xf32> to vector<8x32xf32>
    %1205 = arith.negf %1204 : vector<8x32xf32>
    %1206 = math.exp %1205 : vector<8x32xf32>
    %cst_262 = arith.constant 1.000000e+00 : f32
    %1207 = vector.broadcast %cst_262 : f32 to vector<8x32xf32>
    %1208 = arith.addf %1207, %1206 : vector<8x32xf32>
    %1209 = arith.divf %1207, %1208 : vector<8x32xf32>
    %1210 = arith.mulf %1201, %1143 : vector<8x32xf32>
    %1211 = arith.mulf %1195, %1203 : vector<8x32xf32>
    %1212 = arith.addf %1210, %1211 : vector<8x32xf32>
    %1213 = math.tanh %1212 : vector<8x32xf32>
    %1214 = arith.mulf %1209, %1213 : vector<8x32xf32>
    %1215 = vector.broadcast %1144 : i32 to vector<8x1xi32>
    %1216 = arith.cmpi sgt, %0, %1215 : vector<8x1xi32>
    %1217 = vector.shape_cast %1216 : vector<8x1xi1> to vector<8x1xi1>
    %1218 = vector.broadcast %1217 : vector<8x1xi1> to vector<8x32xi1>
    %1219 = arith.select %1218, %1214, %1140 : vector<8x32xi1>, vector<8x32xf32>
    %1220 = vector.shape_cast %1216 : vector<8x1xi1> to vector<8x1xi1>
    %1221 = vector.broadcast %1220 : vector<8x1xi1> to vector<8x32xi1>
    %1222 = arith.select %1221, %1212, %1143 : vector<8x32xi1>, vector<8x32xf32>
    %c6_i32_263 = arith.constant 6 : i32
    %c7_i32_264 = arith.constant 7 : i32
    %1223 = arith.subi %c7_i32_264, %c6_i32_263 : i32
    %1224 = arith.index_cast %c6_i32_263 : i32 to index
    %c0_265 = arith.constant 0 : index
    %c0_266 = arith.constant 0 : index
    %1225 = vector.load %arg18[%1224, %c0_265, %c0_266] : memref<8x8x128xf32, #tpu.memory_space<vmem>>, vector<1x8x128xf32>
    %1226 = vector.shape_cast %1225 : vector<1x8x128xf32> to vector<8x128xf32>
    %1227 = arith.truncf %1180 : vector<8x32xf32> to vector<8x32xbf16>
    %cst_267 = arith.constant dense<0.000000e+00> : vector<8x128xf32>
    %1228 = tpu.matmul %1227, %4, %cst_267 {dimension_numbers = #tpu.dot_dimension_numbers<[1], [0], [0], [1], [0, 0, 1, 1], [], []>} : vector<8x32xbf16>, vector<32x128xbf16>, vector<8x128xf32> -> vector<8x128xf32>
    %1229 = arith.addf %1226, %1228 : vector<8x128xf32>
    %1230 = vector.extract_strided_slice %1229 {offsets = [0, 0], sizes = [8, 32], strides = [1, 1]} : vector<8x128xf32> to vector<8x32xf32>
    %1231 = arith.negf %1230 : vector<8x32xf32>
    %1232 = math.exp %1231 : vector<8x32xf32>
    %cst_268 = arith.constant 1.000000e+00 : f32
    %1233 = vector.broadcast %cst_268 : f32 to vector<8x32xf32>
    %1234 = arith.addf %1233, %1232 : vector<8x32xf32>
    %1235 = arith.divf %1233, %1234 : vector<8x32xf32>
    %1236 = vector.extract_strided_slice %1229 {offsets = [0, 32], sizes = [8, 32], strides = [1, 1]} : vector<8x128xf32> to vector<8x32xf32>
    %1237 = arith.negf %1236 : vector<8x32xf32>
    %1238 = math.exp %1237 : vector<8x32xf32>
    %cst_269 = arith.constant 1.000000e+00 : f32
    %1239 = vector.broadcast %cst_269 : f32 to vector<8x32xf32>
    %1240 = arith.addf %1239, %1238 : vector<8x32xf32>
    %1241 = arith.divf %1239, %1240 : vector<8x32xf32>
    %1242 = vector.extract_strided_slice %1229 {offsets = [0, 64], sizes = [8, 32], strides = [1, 1]} : vector<8x128xf32> to vector<8x32xf32>
    %1243 = math.tanh %1242 : vector<8x32xf32>
    %1244 = vector.extract_strided_slice %1229 {offsets = [0, 96], sizes = [8, 32], strides = [1, 1]} : vector<8x128xf32> to vector<8x32xf32>
    %1245 = arith.negf %1244 : vector<8x32xf32>
    %1246 = math.exp %1245 : vector<8x32xf32>
    %cst_270 = arith.constant 1.000000e+00 : f32
    %1247 = vector.broadcast %cst_270 : f32 to vector<8x32xf32>
    %1248 = arith.addf %1247, %1246 : vector<8x32xf32>
    %1249 = arith.divf %1247, %1248 : vector<8x32xf32>
    %1250 = arith.mulf %1241, %1183 : vector<8x32xf32>
    %1251 = arith.mulf %1235, %1243 : vector<8x32xf32>
    %1252 = arith.addf %1250, %1251 : vector<8x32xf32>
    %1253 = math.tanh %1252 : vector<8x32xf32>
    %1254 = arith.mulf %1249, %1253 : vector<8x32xf32>
    %1255 = vector.broadcast %c6_i32_263 : i32 to vector<8x1xi32>
    %1256 = arith.cmpi sgt, %0, %1255 : vector<8x1xi32>
    %1257 = vector.shape_cast %1256 : vector<8x1xi1> to vector<8x1xi1>
    %1258 = vector.broadcast %1257 : vector<8x1xi1> to vector<8x32xi1>
    %1259 = arith.select %1258, %1254, %1180 : vector<8x32xi1>, vector<8x32xf32>
    %1260 = vector.shape_cast %1256 : vector<8x1xi1> to vector<8x1xi1>
    %1261 = vector.broadcast %1260 : vector<8x1xi1> to vector<8x32xi1>
    %1262 = arith.select %1261, %1252, %1183 : vector<8x32xi1>, vector<8x32xf32>
    %1263 = arith.index_cast %1223 : i32 to index
    %c0_271 = arith.constant 0 : index
    %c0_272 = arith.constant 0 : index
    %1264 = vector.load %arg19[%1263, %c0_271, %c0_272] : memref<8x8x128xf32, #tpu.memory_space<vmem>>, vector<1x8x128xf32>
    %1265 = vector.shape_cast %1264 : vector<1x8x128xf32> to vector<8x128xf32>
    %1266 = arith.truncf %1219 : vector<8x32xf32> to vector<8x32xbf16>
    %cst_273 = arith.constant dense<0.000000e+00> : vector<8x128xf32>
    %1267 = tpu.matmul %1266, %5, %cst_273 {dimension_numbers = #tpu.dot_dimension_numbers<[1], [0], [0], [1], [0, 0, 1, 1], [], []>} : vector<8x32xbf16>, vector<32x128xbf16>, vector<8x128xf32> -> vector<8x128xf32>
    %1268 = arith.addf %1265, %1267 : vector<8x128xf32>
    %1269 = vector.extract_strided_slice %1268 {offsets = [0, 0], sizes = [8, 32], strides = [1, 1]} : vector<8x128xf32> to vector<8x32xf32>
    %1270 = arith.negf %1269 : vector<8x32xf32>
    %1271 = math.exp %1270 : vector<8x32xf32>
    %cst_274 = arith.constant 1.000000e+00 : f32
    %1272 = vector.broadcast %cst_274 : f32 to vector<8x32xf32>
    %1273 = arith.addf %1272, %1271 : vector<8x32xf32>
    %1274 = arith.divf %1272, %1273 : vector<8x32xf32>
    %1275 = vector.extract_strided_slice %1268 {offsets = [0, 32], sizes = [8, 32], strides = [1, 1]} : vector<8x128xf32> to vector<8x32xf32>
    %1276 = arith.negf %1275 : vector<8x32xf32>
    %1277 = math.exp %1276 : vector<8x32xf32>
    %cst_275 = arith.constant 1.000000e+00 : f32
    %1278 = vector.broadcast %cst_275 : f32 to vector<8x32xf32>
    %1279 = arith.addf %1278, %1277 : vector<8x32xf32>
    %1280 = arith.divf %1278, %1279 : vector<8x32xf32>
    %1281 = vector.extract_strided_slice %1268 {offsets = [0, 64], sizes = [8, 32], strides = [1, 1]} : vector<8x128xf32> to vector<8x32xf32>
    %1282 = math.tanh %1281 : vector<8x32xf32>
    %1283 = vector.extract_strided_slice %1268 {offsets = [0, 96], sizes = [8, 32], strides = [1, 1]} : vector<8x128xf32> to vector<8x32xf32>
    %1284 = arith.negf %1283 : vector<8x32xf32>
    %1285 = math.exp %1284 : vector<8x32xf32>
    %cst_276 = arith.constant 1.000000e+00 : f32
    %1286 = vector.broadcast %cst_276 : f32 to vector<8x32xf32>
    %1287 = arith.addf %1286, %1285 : vector<8x32xf32>
    %1288 = arith.divf %1286, %1287 : vector<8x32xf32>
    %1289 = arith.mulf %1280, %1222 : vector<8x32xf32>
    %1290 = arith.mulf %1274, %1282 : vector<8x32xf32>
    %1291 = arith.addf %1289, %1290 : vector<8x32xf32>
    %1292 = math.tanh %1291 : vector<8x32xf32>
    %1293 = arith.mulf %1288, %1292 : vector<8x32xf32>
    %1294 = vector.broadcast %1223 : i32 to vector<8x1xi32>
    %1295 = arith.cmpi sgt, %0, %1294 : vector<8x1xi32>
    %1296 = vector.shape_cast %1295 : vector<8x1xi1> to vector<8x1xi1>
    %1297 = vector.broadcast %1296 : vector<8x1xi1> to vector<8x32xi1>
    %1298 = arith.select %1297, %1293, %1219 : vector<8x32xi1>, vector<8x32xf32>
    %1299 = vector.shape_cast %1295 : vector<8x1xi1> to vector<8x1xi1>
    %1300 = vector.broadcast %1299 : vector<8x1xi1> to vector<8x32xi1>
    %1301 = arith.select %1300, %1291, %1222 : vector<8x32xi1>, vector<8x32xf32>
    %c7_i32_277 = arith.constant 7 : i32
    %c7_i32_278 = arith.constant 7 : i32
    %1302 = arith.subi %c7_i32_278, %c7_i32_277 : i32
    %1303 = arith.index_cast %c7_i32_277 : i32 to index
    %c0_279 = arith.constant 0 : index
    %c0_280 = arith.constant 0 : index
    %1304 = vector.load %arg18[%1303, %c0_279, %c0_280] : memref<8x8x128xf32, #tpu.memory_space<vmem>>, vector<1x8x128xf32>
    %1305 = vector.shape_cast %1304 : vector<1x8x128xf32> to vector<8x128xf32>
    %1306 = arith.truncf %1259 : vector<8x32xf32> to vector<8x32xbf16>
    %cst_281 = arith.constant dense<0.000000e+00> : vector<8x128xf32>
    %1307 = tpu.matmul %1306, %4, %cst_281 {dimension_numbers = #tpu.dot_dimension_numbers<[1], [0], [0], [1], [0, 0, 1, 1], [], []>} : vector<8x32xbf16>, vector<32x128xbf16>, vector<8x128xf32> -> vector<8x128xf32>
    %1308 = arith.addf %1305, %1307 : vector<8x128xf32>
    %1309 = vector.extract_strided_slice %1308 {offsets = [0, 0], sizes = [8, 32], strides = [1, 1]} : vector<8x128xf32> to vector<8x32xf32>
    %1310 = arith.negf %1309 : vector<8x32xf32>
    %1311 = math.exp %1310 : vector<8x32xf32>
    %cst_282 = arith.constant 1.000000e+00 : f32
    %1312 = vector.broadcast %cst_282 : f32 to vector<8x32xf32>
    %1313 = arith.addf %1312, %1311 : vector<8x32xf32>
    %1314 = arith.divf %1312, %1313 : vector<8x32xf32>
    %1315 = vector.extract_strided_slice %1308 {offsets = [0, 32], sizes = [8, 32], strides = [1, 1]} : vector<8x128xf32> to vector<8x32xf32>
    %1316 = arith.negf %1315 : vector<8x32xf32>
    %1317 = math.exp %1316 : vector<8x32xf32>
    %cst_283 = arith.constant 1.000000e+00 : f32
    %1318 = vector.broadcast %cst_283 : f32 to vector<8x32xf32>
    %1319 = arith.addf %1318, %1317 : vector<8x32xf32>
    %1320 = arith.divf %1318, %1319 : vector<8x32xf32>
    %1321 = vector.extract_strided_slice %1308 {offsets = [0, 64], sizes = [8, 32], strides = [1, 1]} : vector<8x128xf32> to vector<8x32xf32>
    %1322 = math.tanh %1321 : vector<8x32xf32>
    %1323 = vector.extract_strided_slice %1308 {offsets = [0, 96], sizes = [8, 32], strides = [1, 1]} : vector<8x128xf32> to vector<8x32xf32>
    %1324 = arith.negf %1323 : vector<8x32xf32>
    %1325 = math.exp %1324 : vector<8x32xf32>
    %cst_284 = arith.constant 1.000000e+00 : f32
    %1326 = vector.broadcast %cst_284 : f32 to vector<8x32xf32>
    %1327 = arith.addf %1326, %1325 : vector<8x32xf32>
    %1328 = arith.divf %1326, %1327 : vector<8x32xf32>
    %1329 = arith.mulf %1320, %1262 : vector<8x32xf32>
    %1330 = arith.mulf %1314, %1322 : vector<8x32xf32>
    %1331 = arith.addf %1329, %1330 : vector<8x32xf32>
    %1332 = math.tanh %1331 : vector<8x32xf32>
    %1333 = arith.mulf %1328, %1332 : vector<8x32xf32>
    %1334 = vector.broadcast %c7_i32_277 : i32 to vector<8x1xi32>
    %1335 = arith.cmpi sgt, %0, %1334 : vector<8x1xi32>
    %1336 = vector.shape_cast %1335 : vector<8x1xi1> to vector<8x1xi1>
    %1337 = vector.broadcast %1336 : vector<8x1xi1> to vector<8x32xi1>
    %1338 = arith.select %1337, %1333, %1259 : vector<8x32xi1>, vector<8x32xf32>
    %1339 = vector.shape_cast %1335 : vector<8x1xi1> to vector<8x1xi1>
    %1340 = vector.broadcast %1339 : vector<8x1xi1> to vector<8x32xi1>
    %1341 = arith.select %1340, %1331, %1262 : vector<8x32xi1>, vector<8x32xf32>
    %1342 = arith.index_cast %1302 : i32 to index
    %c0_285 = arith.constant 0 : index
    %c0_286 = arith.constant 0 : index
    %1343 = vector.load %arg19[%1342, %c0_285, %c0_286] : memref<8x8x128xf32, #tpu.memory_space<vmem>>, vector<1x8x128xf32>
    %1344 = vector.shape_cast %1343 : vector<1x8x128xf32> to vector<8x128xf32>
    %1345 = arith.truncf %1298 : vector<8x32xf32> to vector<8x32xbf16>
    %cst_287 = arith.constant dense<0.000000e+00> : vector<8x128xf32>
    %1346 = tpu.matmul %1345, %5, %cst_287 {dimension_numbers = #tpu.dot_dimension_numbers<[1], [0], [0], [1], [0, 0, 1, 1], [], []>} : vector<8x32xbf16>, vector<32x128xbf16>, vector<8x128xf32> -> vector<8x128xf32>
    %1347 = arith.addf %1344, %1346 : vector<8x128xf32>
    %1348 = vector.extract_strided_slice %1347 {offsets = [0, 0], sizes = [8, 32], strides = [1, 1]} : vector<8x128xf32> to vector<8x32xf32>
    %1349 = arith.negf %1348 : vector<8x32xf32>
    %1350 = math.exp %1349 : vector<8x32xf32>
    %cst_288 = arith.constant 1.000000e+00 : f32
    %1351 = vector.broadcast %cst_288 : f32 to vector<8x32xf32>
    %1352 = arith.addf %1351, %1350 : vector<8x32xf32>
    %1353 = arith.divf %1351, %1352 : vector<8x32xf32>
    %1354 = vector.extract_strided_slice %1347 {offsets = [0, 32], sizes = [8, 32], strides = [1, 1]} : vector<8x128xf32> to vector<8x32xf32>
    %1355 = arith.negf %1354 : vector<8x32xf32>
    %1356 = math.exp %1355 : vector<8x32xf32>
    %cst_289 = arith.constant 1.000000e+00 : f32
    %1357 = vector.broadcast %cst_289 : f32 to vector<8x32xf32>
    %1358 = arith.addf %1357, %1356 : vector<8x32xf32>
    %1359 = arith.divf %1357, %1358 : vector<8x32xf32>
    %1360 = vector.extract_strided_slice %1347 {offsets = [0, 64], sizes = [8, 32], strides = [1, 1]} : vector<8x128xf32> to vector<8x32xf32>
    %1361 = math.tanh %1360 : vector<8x32xf32>
    %1362 = vector.extract_strided_slice %1347 {offsets = [0, 96], sizes = [8, 32], strides = [1, 1]} : vector<8x128xf32> to vector<8x32xf32>
    %1363 = arith.negf %1362 : vector<8x32xf32>
    %1364 = math.exp %1363 : vector<8x32xf32>
    %cst_290 = arith.constant 1.000000e+00 : f32
    %1365 = vector.broadcast %cst_290 : f32 to vector<8x32xf32>
    %1366 = arith.addf %1365, %1364 : vector<8x32xf32>
    %1367 = arith.divf %1365, %1366 : vector<8x32xf32>
    %1368 = arith.mulf %1359, %1301 : vector<8x32xf32>
    %1369 = arith.mulf %1353, %1361 : vector<8x32xf32>
    %1370 = arith.addf %1368, %1369 : vector<8x32xf32>
    %1371 = math.tanh %1370 : vector<8x32xf32>
    %1372 = arith.mulf %1367, %1371 : vector<8x32xf32>
    %1373 = vector.broadcast %1302 : i32 to vector<8x1xi32>
    %1374 = arith.cmpi sgt, %0, %1373 : vector<8x1xi32>
    %1375 = vector.shape_cast %1374 : vector<8x1xi1> to vector<8x1xi1>
    %1376 = vector.broadcast %1375 : vector<8x1xi1> to vector<8x32xi1>
    %1377 = arith.select %1376, %1372, %1298 : vector<8x32xi1>, vector<8x32xf32>
    %1378 = vector.shape_cast %1374 : vector<8x1xi1> to vector<8x1xi1>
    %1379 = vector.broadcast %1378 : vector<8x1xi1> to vector<8x32xi1>
    %1380 = arith.select %1379, %1370, %1301 : vector<8x32xi1>, vector<8x32xf32>
    %c8_i32_291 = arith.constant 8 : i32
    %1381 = arith.truncf %1338 : vector<8x32xf32> to vector<8x32xbf16>
    %c0_292 = arith.constant 0 : index
    %c0_293 = arith.constant 0 : index
    %1382 = vector.load %arg13[%c0_292, %c0_293] : memref<32x32xbf16, #tpu.memory_space<vmem>>, vector<32x32xbf16>
    %cst_294 = arith.constant dense<0.000000e+00> : vector<8x32xf32>
    %1383 = tpu.matmul %1381, %1382, %cst_294 {dimension_numbers = #tpu.dot_dimension_numbers<[1], [0], [0], [1], [0, 0, 1, 1], [], []>} : vector<8x32xbf16>, vector<32x32xbf16>, vector<8x32xf32> -> vector<8x32xf32>
    %1384 = arith.truncf %1377 : vector<8x32xf32> to vector<8x32xbf16>
    %c0_295 = arith.constant 0 : index
    %c0_296 = arith.constant 0 : index
    %1385 = vector.load %arg14[%c0_295, %c0_296] : memref<32x32xbf16, #tpu.memory_space<vmem>>, vector<32x32xbf16>
    %cst_297 = arith.constant dense<0.000000e+00> : vector<8x32xf32>
    %1386 = tpu.matmul %1384, %1385, %cst_297 {dimension_numbers = #tpu.dot_dimension_numbers<[1], [0], [0], [1], [0, 0, 1, 1], [], []>} : vector<8x32xbf16>, vector<32x32xbf16>, vector<8x32xf32> -> vector<8x32xf32>
    %1387 = arith.addf %1383, %1386 : vector<8x32xf32>
    %c0_298 = arith.constant 0 : index
    %c0_299 = arith.constant 0 : index
    %1388 = vector.load %arg15[%c0_298, %c0_299] : memref<1x32xf32, #tpu.memory_space<vmem>>, vector<1x32xf32>
    %1389 = vector.broadcast %1388 : vector<1x32xf32> to vector<8x32xf32>
    %1390 = arith.addf %1387, %1389 : vector<8x32xf32>
    %c0_i32_300 = arith.constant 0 : i32
    %1391 = vector.broadcast %c0_i32_300 : i32 to vector<8x1xi32>
    %1392 = arith.cmpi sgt, %0, %1391 : vector<8x1xi32>
    %c0_301 = arith.constant 0 : index
    %c0_302 = arith.constant 0 : index
    %1393 = vector.load %arg16[%c0_301, %c0_302] : memref<1x32xf32, #tpu.memory_space<vmem>>, vector<1x32xf32>
    %1394 = vector.shape_cast %1392 : vector<8x1xi1> to vector<8x1xi1>
    %1395 = vector.broadcast %1394 : vector<8x1xi1> to vector<8x32xi1>
    %1396 = vector.shape_cast %1393 : vector<1x32xf32> to vector<1x32xf32>
    %1397 = vector.broadcast %1396 : vector<1x32xf32> to vector<8x32xf32>
    %1398 = arith.select %1395, %1390, %1397 : vector<8x32xi1>, vector<8x32xf32>
    %c0_303 = arith.constant 0 : index
    %c0_304 = arith.constant 0 : index
    %1399 = vector.load %arg3[%c0_303, %c0_304] : memref<8x32xf32, #tpu.memory_space<vmem>>, vector<8x32xf32>
    %1400 = arith.mulf %1398, %1399 : vector<8x32xf32>
    %cst_305 = arith.constant dense<0.000000e+00> : vector<8xf32>
    %1401 = vector.multi_reduction <add>, %1400, %cst_305 [1] : vector<8x32xf32> to vector<8xf32>
    %1402 = vector.shape_cast %1401 : vector<8xf32> to vector<8x1xf32>
    %c0_306 = arith.constant 0 : index
    %c0_307 = arith.constant 0 : index
    %1403 = vector.load %arg17[%c0_306, %c0_307] : memref<8x1xf32, #tpu.memory_space<vmem>>, vector<8x1xf32>
    tpu.vector_store %arg17[%c0_306, %c0_307], %1402 {strides = array<i32>} : memref<8x1xf32, #tpu.memory_space<vmem>>, vector<8x1xf32>,
    return
  }
  func.func @transform_0(%arg0: i32) -> (i32, i32, i32) {
    %c0_i32 = arith.constant 0 : i32
    %c0_i32_0 = arith.constant 0 : i32
    %c0_i32_1 = arith.constant 0 : i32
    return %c0_i32, %arg0, %c0_i32_0 : i32, i32, i32
  }
  func.func @transform_1(%arg0: i32) -> (i32, i32) {
    %c0_i32 = arith.constant 0 : i32
    %c0_i32_0 = arith.constant 0 : i32
    return %arg0, %c0_i32 : i32, i32
  }
  func.func @transform_2(%arg0: i32) -> (i32, i32) {
    %c0_i32 = arith.constant 0 : i32
    %c0_i32_0 = arith.constant 0 : i32
    return %arg0, %c0_i32 : i32, i32
  }
  func.func @transform_3(%arg0: i32) -> (i32, i32) {
    %c0_i32 = arith.constant 0 : i32
    %c0_i32_0 = arith.constant 0 : i32
    %c0_i32_1 = arith.constant 0 : i32
    return %c0_i32, %c0_i32_0 : i32, i32
  }
  func.func @transform_4(%arg0: i32) -> (i32, i32) {
    %c0_i32 = arith.constant 0 : i32
    %c0_i32_0 = arith.constant 0 : i32
    %c0_i32_1 = arith.constant 0 : i32
    return %c0_i32, %c0_i32_0 : i32, i32
  }
  func.func @transform_5(%arg0: i32) -> (i32, i32) {
    %c0_i32 = arith.constant 0 : i32
    %c0_i32_0 = arith.constant 0 : i32
    %c0_i32_1 = arith.constant 0 : i32
    return %c0_i32, %c0_i32_0 : i32, i32
  }
  func.func @transform_6(%arg0: i32) -> (i32, i32) {
    %c0_i32 = arith.constant 0 : i32
    %c0_i32_0 = arith.constant 0 : i32
    %c0_i32_1 = arith.constant 0 : i32
    return %c0_i32, %c0_i32_0 : i32, i32
  }
  func.func @transform_7(%arg0: i32) -> (i32, i32) {
    %c0_i32 = arith.constant 0 : i32
    %c0_i32_0 = arith.constant 0 : i32
    %c0_i32_1 = arith.constant 0 : i32
    return %c0_i32, %c0_i32_0 : i32, i32
  }
  func.func @transform_8(%arg0: i32) -> (i32, i32) {
    %c0_i32 = arith.constant 0 : i32
    %c0_i32_0 = arith.constant 0 : i32
    %c0_i32_1 = arith.constant 0 : i32
    return %c0_i32, %c0_i32_0 : i32, i32
  }
  func.func @transform_9(%arg0: i32) -> (i32, i32) {
    %c0_i32 = arith.constant 0 : i32
    %c0_i32_0 = arith.constant 0 : i32
    %c0_i32_1 = arith.constant 0 : i32
    return %c0_i32, %c0_i32_0 : i32, i32
  }
  func.func @transform_10(%arg0: i32) -> (i32, i32) {
    %c0_i32 = arith.constant 0 : i32
    %c0_i32_0 = arith.constant 0 : i32
    %c0_i32_1 = arith.constant 0 : i32
    return %c0_i32, %c0_i32_0 : i32, i32
  }
  func.func @transform_11(%arg0: i32) -> (i32, i32) {
    %c0_i32 = arith.constant 0 : i32
    %c0_i32_0 = arith.constant 0 : i32
    %c0_i32_1 = arith.constant 0 : i32
    return %c0_i32, %c0_i32_0 : i32, i32
  }
  func.func @transform_12(%arg0: i32) -> (i32, i32) {
    %c0_i32 = arith.constant 0 : i32
    %c0_i32_0 = arith.constant 0 : i32
    %c0_i32_1 = arith.constant 0 : i32
    return %c0_i32, %c0_i32_0 : i32, i32
  }
  func.func @transform_13(%arg0: i32) -> (i32, i32) {
    %c0_i32 = arith.constant 0 : i32
    %c0_i32_0 = arith.constant 0 : i32
    %c0_i32_1 = arith.constant 0 : i32
    return %c0_i32, %c0_i32_0 : i32, i32
  }
  func.func @transform_14(%arg0: i32) -> (i32, i32) {
    %c0_i32 = arith.constant 0 : i32
    %c0_i32_0 = arith.constant 0 : i32
    %c0_i32_1 = arith.constant 0 : i32
    return %c0_i32, %c0_i32_0 : i32, i32
  }
  func.func @transform_15(%arg0: i32) -> (i32, i32) {
    %c0_i32 = arith.constant 0 : i32
    %c0_i32_0 = arith.constant 0 : i32
    %c0_i32_1 = arith.constant 0 : i32
    return %c0_i32, %c0_i32_0 : i32, i32
  }
  func.func @transform_16(%arg0: i32) -> (i32, i32) {
    %c0_i32 = arith.constant 0 : i32
    %c0_i32_0 = arith.constant 0 : i32
    return %arg0, %c0_i32 : i32, i32
  }
}

</mosaic_0001>

<bundles_post_ra>
// kernel: tpu_custom_call.1
= control target key start
LH: loop header
LB: loop body
LE: loop exit
PB: predicated region body
PF: predicated region fallthrough
CT: control target
= control target key end

     0   :  { %s6154_s0 = inlined_call_operand.hbm [shape: bf16[8,24,32], index: 0, kind: input, shape index: {}]   ;;  %s6155_s1 = inlined_call_operand.vmem [shape: s32[24,1], index: 1, kind: input, shape index: {}]   ;;  %s6156_s2 = inlined_call_operand.hbm [shape: f32[24,32], index: 2, kind: input, shape index: {}]   ;;  %s6157_s3 = inlined_call_operand.hbm [shape: bf16[32,256], index: 3, kind: input, shape index: {}]   ;;  %s6158_s4 = inlined_call_operand.hbm [shape: f32[1,256], index: 4, kind: input, shape index: {}]   ;;  %s6159_s5 = inlined_call_operand.hbm [shape: bf16[32,128], index: 5, kind: input, shape index: {}]   ;;  %s6160_s6 = inlined_call_operand.hbm [shape: bf16[32,128], index: 6, kind: input, shape index: {}]   ;;  %s6161_s7 = inlined_call_operand.hbm [shape: bf16[32,256], index: 7, kind: input, shape index: {}]   ;;  %s6162_s8 = inlined_call_operand.vmem [shape: bf16[32,256], index: 8, kind: input, shape index: {}]   ;;  %s6163_s9 = inlined_call_operand.hbm [shape: f32[1,256], index: 9, kind: input, shape index: {}]   ;;  %s6164_s10 = inlined_call_operand.hbm [shape: bf16[32,128], index: 10, kind: input, shape index: {}]   ;;  %s6165_s11 = inlined_call_operand.hbm [shape: bf16[32,128], index: 11, kind: input, shape index: {}]   ;;  %s6166_s12 = inlined_call_operand.hbm [shape: bf16[32,32], index: 12, kind: input, shape index: {}]   ;;  %s6167_s13 = inlined_call_operand.hbm [shape: bf16[32,32], index: 13, kind: input, shape index: {}]   ;;  %s6168_s14 = inlined_call_operand.vmem [shape: f32[1,32], index: 14, kind: input, shape index: {}]   ;;  %s6169_s15 = inlined_call_operand.vmem [shape: f32[1,32], index: 15, kind: input, shape index: {}]   ;;  %s6170_s16 = inlined_call_operand.vmem [shape: f32[24,1], index: 16, kind: output, shape index: {}]  }
   0x1   :  { %6178 = sst [smem:[#allocation34_spill]] %s6154_s0 }
   0x2   :  { %6179 = sst [smem:[#allocation35_spill]] %s6155_s1 }
   0x3   :  { %6180 = sst [smem:[#allocation36_spill]] %s6157_s3 }
   0x4   :  { %6181 = sst [smem:[#allocation37_spill]] %s6158_s4 }
   0x5   :  { %6182 = sst [smem:[#allocation38_spill]] %s6159_s5 }
   0x6   :  { %6183 = sst [smem:[#allocation39_spill]] %s6160_s6 }
   0x7   :  { %6184 = sst [smem:[#allocation40_spill]] %s6161_s7 }
   0x8   :  { %6185 = sst [smem:[#allocation41_spill]] %s6162_s8 }
   0x9   :  { %6186 = sst [smem:[#allocation42_spill]] %s6163_s9 }
   0xa   :  { %6187 = sst [smem:[#allocation43_spill]] %s6164_s10 }
   0xb   :  { %6188 = sst [smem:[#allocation44_spill]] %s6168_s14 }
   0xc   :  { %6189 = sst [smem:[#allocation45_spill]] %s6169_s15 }
   0xd   :  { %6190 = sst [smem:[#allocation46_spill]] %s6170_s16 }
   0xe   :  { %21 = vsyncpa [#allocation7], 0 }
   0xf   :  { %23 = vsyncpa [#allocation7 + $0x1], 0 }
  0x10   :  { %24 = vsyncpa [#allocation9], 0 }
  0x11   :  { %26 = vsyncpa [#allocation9 + $0x1], 0 }
  0x12   :  { %27 = vsyncpa [#allocation12], 0 }
  0x13   :  { %28 = vsyncpa [#allocation15], 0 }
  0x14   :  { %29 = vsyncpa [#allocation18], 0 }
  0x15   :  { %30 = vsyncpa [#allocation21], 0 }
  0x16   :  { %31 = vsyncpa [#allocation24], 0  ;;  %s4872_s21 = smov 0   ;;  %s4874_s22 = smov 0  }
  0x17   :  { %s4876_s23 = smov 0   ;;  %s4878_s24 = smov 0  }
  0x18 LB: > { %s6191_s3 = sld [smem:[#allocation36_spill]]  ;;  %s4896_s28 = sadd.s32 4294967295, %s4767_s24   ;;  %s4767_s24 = sphi %s4878_s24, %s6221_s24   ;;  %s4763_s23 = sphi %s4876_s23, %s6220_s23   ;;  %s4759_s22 = sphi %s4874_s22, %s6219_s22   ;;  %s4755_s21 = sphi %s4872_s21, %s6218_s21  }
  0x19   : > { %p3632_p0 = scmp.ge.s32.totalorder %s4767_s24, 1  ;;  %p58_p1 = scmp.eq.s32.totalorder %s4896_s28, 0 }
  0x1a   : > { %p419_p2 = scmp.lt.s32.totalorder %s4767_s24, 4  ;;  %s4769_s30 = smov [#allocation10]  }
  0x1b   : > { %s432_s0 = sshll.u32 %s4769_s30, 4  ;;  %s6194_s4 = sld [smem:[#allocation37_spill]]  ;;  %s433_s0 = int_to_ptr.vmem [resolvable:$true] %s432_s0 }
  0x1c   : > { %p4901_p3 = pnand %p3632_p0, %p419_p2  ;;  %s4770_s25 = smov [#allocation11]  }
  0x1d   : > { %s447_s26 = sshll.u32 %s4770_s25, 4  ;;  %s4772_s30 = smov 8   ;;  %s448_s26 = int_to_ptr.vmem [resolvable:$true] %s447_s26 }
  0x1e   : > { %s430_s27 = sshll.u32 %s6191_s3, 4  ;;  %p3975_p4 = pneg %p4901_p3  ;;  %s431_s27 = int_to_ptr.hbm [resolvable:$true] %s430_s27 }
  0x1f   : > { %s6192_s29 = scalar_select %p4901_p3, 1, 0 }
  0x20   : > { %p4912_p5 = pnand %p3975_p4, %p58_p1  ;;  %s6174_s3 = smov 128  }
  0x21   : > { %6193 = sst [smem:[#allocation33_spill]] %s6192_s29  ;;  %s445_s19 = sshll.u32 %s6194_s4, 4  ;;  %s446_s19 = int_to_ptr.hbm [resolvable:$true] %s445_s19 }
  0x22   : > { %3978 = dma.hbm_to_vmem [thread:$0]  (!%p4912_p5), %s431_s27, 512, %s433_s0, [#allocation9], %s6174_s3, %s6174_s3, %s4772_s30  }
  0x23   : > { %3981 = dma.hbm_to_vmem [thread:$0]  (!%p4912_p5), %s446_s19, 32, %s448_s26, [#allocation12]  }
  0x24   : > { %s6196_s6 = sld [smem:[#allocation39_spill]]  ;;  %s4773_s16 = smov [#allocation14]  }
  0x25   : > { %s472_s15 = sshll.u32 %s4773_s16, 4  ;;  %s6197_s9 = sld [smem:[#allocation42_spill]]  ;;  %s473_s15 = int_to_ptr.vmem [resolvable:$true] %s472_s15 }
  0x26   : > { %s6175_s1 = smov 64   ;;  %s6176_s29 = smov 4  }
  0x27   : > { %s4776_s27 = smov [#allocation17]   ;;  %s527_s16 = sshll.u32 %s6165_s11, 4  ;;  %s528_s16 = int_to_ptr.hbm [resolvable:$true] %s527_s16 }
  0x28   : > { %s504_s0 = sshll.u32 %s4776_s27, 4  ;;  %s6198_s5 = sld [smem:[#allocation38_spill]]  ;;  %s505_s0 = int_to_ptr.vmem [resolvable:$true] %s504_s0 }
  0x29   : > { %s4777_s25 = smov [#allocation20]   ;;  %s6199_s7 = sld [smem:[#allocation40_spill]] }
  0x2a   : > { %s470_s4 = sshll.u32 %s6196_s6, 4  ;;  %s529_s3 = sshll.u32 %s4777_s25, 4  ;;  %s471_s4 = int_to_ptr.hbm [resolvable:$true] %s470_s4  ;;  %s530_s3 = int_to_ptr.vmem [resolvable:$true] %s529_s3 }
  0x2b   : > { %s502_s8 = sshll.u32 %s6197_s9, 4  ;;  %s6200_s10 = sld [smem:[#allocation43_spill]]  ;;  %s503_s8 = int_to_ptr.hbm [resolvable:$true] %s502_s8 }
  0x2c   : > { %3987 = dma.hbm_to_vmem [thread:$0]  (!%p4912_p5), %s471_s4, 256, %s473_s15, [#allocation15], %s6175_s1, %s6175_s1, %s6176_s29  }
  0x2d   : > { %3993 = dma.hbm_to_vmem [thread:$0]  (!%p4912_p5), %s503_s8, 32, %s505_s0, [#allocation18]  }
  0x2e   : > { %s456_s18 = sshll.u32 %s6198_s5, 4  ;;  %s4778_s4 = smov [#allocation13]   ;;  %s457_s18 = int_to_ptr.hbm [resolvable:$true] %s456_s18 }
  0x2f   : > { %3999 = dma.hbm_to_vmem [thread:$0]  (!%p4912_p5), %s528_s16, 256, %s530_s3, [#allocation21], %s6175_s1, %s6175_s1, %s6176_s29  }
  0x30   : > { %s458_s15 = sshll.u32 %s4778_s4, 4  ;;  %s484_s8 = sshll.u32 %s6199_s7, 4  ;;  %s459_s15 = int_to_ptr.vmem [resolvable:$true] %s458_s15  ;;  %s485_s8 = int_to_ptr.hbm [resolvable:$true] %s484_s8 }
  0x31   : > { %3984 = dma.hbm_to_vmem [thread:$0]  (!%p4912_p5), %s457_s18, 256, %s459_s15, [#allocation12], %s6175_s1, %s6175_s1, %s6176_s29  }
  0x32   : > { %s513_s14 = sshll.u32 %s6200_s10, 4  ;;  %s4779_s17 = smov [#allocation16]   ;;  %s514_s14 = int_to_ptr.hbm [resolvable:$true] %s513_s14 }
  0x33   : > { %s486_s3 = sshll.u32 %s4779_s17, 4  ;;  %s6201_s16 = smov 128   ;;  %s487_s3 = int_to_ptr.vmem [resolvable:$true] %s486_s3 }
  0x34   : > { %3990 = dma.hbm_to_vmem [thread:$0]  (!%p4912_p5), %s485_s8, 512, %s487_s3, [#allocation15], %s6201_s16, %s6201_s16, %s4772_s30  }
  0x35   : > { %s4780_s25 = smov [#allocation19]   ;;  %s541_s15 = sshll.u32 %s6166_s12, 4  ;;  %s542_s15 = int_to_ptr.hbm [resolvable:$true] %s541_s15 }
  0x36   : > { %s515_s4 = sshll.u32 %s4780_s25, 4  ;;  %s555_s8 = sshll.u32 %s6167_s13, 4  ;;  %s516_s4 = int_to_ptr.vmem [resolvable:$true] %s515_s4  ;;  %s556_s8 = int_to_ptr.hbm [resolvable:$true] %s555_s8 }
  0x37   : > { %3996 = dma.hbm_to_vmem [thread:$0]  (!%p4912_p5), %s514_s14, 256, %s516_s4, [#allocation18], %s6175_s1, %s6175_s1, %s6176_s29  }
  0x38   : > { %s4781_s0 = smov [#allocation22]   ;;  %s4782_s14 = smov [#allocation23]  }
  0x39   : > { %s543_s26 = sshll.u32 %s4781_s0, 4  ;;  %s557_s17 = sshll.u32 %s4782_s14, 4  ;;  %s544_s26 = int_to_ptr.vmem [resolvable:$true] %s543_s26  ;;  %s558_s17 = int_to_ptr.vmem [resolvable:$true] %s557_s17 }
  0x3a   : > { %4002 = dma.hbm_to_vmem [thread:$0]  (!%p4912_p5), %s542_s15, 256, %s544_s26, [#allocation21], %s6175_s1, %s6175_s1, %s6176_s29  }
  0x3b   : > { %4005 = dma.hbm_to_vmem [thread:$0]  (!%p4912_p5), %s556_s8, 256, %s558_s17, [#allocation24], %s6175_s1, %s6175_s1, %s6176_s29  }
  0x3c   : > { %s4985_s3 = sadd.s32 1, %s4767_s24   ;;  %s44_s16 = sadd.s32 1, %s4763_s23 }
  0x3d   : > { %s41_s25 = ssub.s32 %s4767_s24, %s4985_s3  ;;  %p51_p6 = scmp.ne.s32.totalorder %s4763_s23, %s4759_s22 }
  0x3e   : > { %p42_p7 = scmp.eq.s32.totalorder %s41_s25, 0  ;;  %p52_p8 = scmp.eq.s32.totalorder %s4767_s24, 0 }
  0x3f   : > { %p57_p9 = scmp.ne.s32.totalorder %s4759_s22, %s4755_s21  ;;  %p4023_p10 = scmp.lt.s32.totalorder %s4767_s24, 3 }
  0x40   : > { %s4997_s4 = scalar_select %p42_p7, %s4763_s23, %s44_s16  }
  0x41   : > { %p53_p11 = por %p52_p8, %p51_p6  ;;  %p5001_p12 = por %p58_p1, %p57_p9 }
  0x42   : > { %s5006_s27 = sand.u32 1, %s4763_s23   ;;  %s3645_s18 = sshll.u32 %s4767_s24, 2 }
  0x43   : > { %s3644_s15 = sshll.u32 %s5006_s27, 5  ;;  %s6203_s8 = sld [smem:[#allocation34_spill]] }
  0x44   : > { %s581_s26 = scalar_lea.vmem [#allocation6], %s3644_s15  ;;  %p5015_p13 = pnand %p4023_p10, %p53_p11 }
  0x45   : > { %s588_s14 = sshll.u32 %s581_s26, 4  ;;  %s605_s16 = sand.u32 1, %s4767_s24   ;;  %s589_s14 = int_to_ptr.vmem [resolvable:$true] %s588_s14 }
  0x46   : > { %s3646_s25 = sshll.u32 %s5006_s27, 3  ;;  %s578_s1 = scalar_lea.sflag [#allocation7], %s5006_s27 }
  0x47   : > { %p4649_p2 = pneg %p5015_p13 }
  0x49   : > { %s585_s21 = scalar_lea.hbm %s6203_s8, %s3645_s18  ;;  %s4652_s30 = scalar_lea.hbm %s6203_s8, 96 }
  0x4a   : > { %s586_s0 = sshll.u32 %s585_s21, 4  ;;  %s587_s0 = int_to_ptr.hbm [resolvable:$true] %s586_s0 }
  0x4b   : > { %s4645_s29 = sshra.s32 %s587_s0, 4  ;;  %s4646_s29 = int_to_ptr.hbm [resolvable:$true] %s4645_s29 }
  0x4c   : > { %s4647_s5 = scalar_lea.hbm %s4646_s29, 32  ;;  %p4653_p6 = scmp.lt.s32.totalorder %s4646_s29, %s6203_s8 }
  0x4d   : > { %p4648_p0 = scmp.ne.s32.totalorder %s4646_s29, %s4647_s5  ;;  %p4654_p7 = scmp.lt.s32.totalorder %s4652_s30, %s4647_s5 }
  0x4f   : > { %p4650_p4 = pnand %p4649_p2, %p4648_p0  ;;  %p4655_p8 = por %p4654_p7, %p4653_p6 }
  0x51   : > { %p4651_p5 = pneg %p4650_p4 }
  0x53   : > { %p4656_p9 = pnand %p4655_p8, %p4651_p5 }
  0x55   : > { %4659 = shalt.err (!%p4656_p9)
}
  0x56   : > { %s4783_s27 = smov 192   ;;  %s6205_s26 = smov 4  }
  0x57   : > { %s6206_s6 = smov 64   ;;  %s3647_s7 = sshll.u32 %s4767_s24, 3 }
  0x58   : > { %4009 = dma.hbm_to_vmem [thread:$0]  (!%p5015_p13), %s587_s0, 512, %s589_s14, %s578_s1, %s4783_s27, %s6206_s6, %s6205_s26  }
  0x59   : > { %s613_s15 = scalar_lea.hbm %s6156_s2, %s3647_s7  ;;  %s609_s10 = scalar_lea.vmem [#allocation8], %s3646_s25 }
  0x5a   : > { %s617_s19 = sshll.u32 %s609_s10, 4  ;;  %s615_s29 = sshll.u32 %s613_s15, 4  ;;  %s618_s19 = int_to_ptr.vmem [resolvable:$true] %s617_s19  ;;  %s616_s29 = int_to_ptr.hbm [resolvable:$true] %s615_s29 }
  0x5b   : > { %s606_s5 = scalar_lea.sflag [#allocation9], %s605_s16  ;;  %s4675_s30 = sshra.s32 %s616_s29, 4  ;;  %s4676_s30 = int_to_ptr.hbm [resolvable:$true] %s4675_s30 }
  0x5c   : > { %s4677_s21 = scalar_lea.hbm %s4676_s30, 8  ;;  %s4682_s24 = scalar_lea.hbm %s6156_s2, 24 }
  0x5d   : > { %p4678_p10 = scmp.ne.s32.totalorder %s4676_s30, %s4677_s21  ;;  %p4683_p4 = scmp.lt.s32.totalorder %s4676_s30, %s6156_s2 }
  0x5e   : > { %p4684_p5 = scmp.lt.s32.totalorder %s4682_s24, %s4677_s21 }
  0x5f   : > { %p4680_p11 = pnand %p4678_p10, %p4649_p2 }
  0x60   : > { %p4685_p6 = por %p4684_p5, %p4683_p4 }
  0x61   : > { %p4681_p0 = pneg %p4680_p11 }
  0x63   : > { %p4686_p7 = pnand %p4685_p6, %p4681_p0 }
  0x65   : > { %4689 = shalt.err (!%p4686_p7)
}
  0x66   : > { %4012 = dma.hbm_to_vmem [thread:$0]  (!%p5015_p13), %s616_s29, 128, %s618_s19, %s606_s5  }
  0x67   : > { %626 = sbr.rel (%p4901_p3) target bundleno = 9853 (0x267d), region = 84  ;;  %s628_s0 = sand.u32 (!%p4901_p3), 1, %s4759_s22  }
  0x68   : > { %s3649_s14 = sshll.u32 (!%p4901_p3), %s628_s0, 5  ;;  %s629_s16 = scalar_lea.sflag (!%p4901_p3), [#allocation7], %s628_s0 }
  0x69   : > { %s5055_s25 = scalar_lea.vmem (!%p4901_p3), [#allocation6], %s3649_s14 }
  0x6c   : > { %4722 = dma.done.wait (%p5001_p12), %s629_s16, 512  }
  0x6d   : > { %4724 = vsyncadd (%p5001_p12), %s629_s16, 4294966784  ;;  %s638_s27 = sand.u32 1, %s4896_s28   ;;  %s3650_s17 = sshll.u32 %s628_s0, 3 }
  0x6e   : > { %s639_s26 = scalar_lea.sflag [#allocation9], %s638_s27  ;;  %s5062_s18 = scalar_lea.vmem [#allocation8], %s3650_s17 }
  0x6f   : > { %4726 = dma.done.wait (%p5001_p12), %s639_s26, 128  }
  0x70   : > { %4728 = vsyncadd (%p5001_p12), %s639_s26, 4294967168 }
  0x71   : > { %4730 = dma.done.wait (%p58_p1), [#allocation9], 512  }
  0x72   : > { %4732 = vsyncadd (%p58_p1), [#allocation9], 4294966784 }
  0x73   : > { %4734 = dma.done.wait (%p58_p1), [#allocation12], 288  }
  0x74   : > { %4736 = vsyncadd (%p58_p1), [#allocation12], 4294967008 }
  0x75   : > { %4738 = dma.done.wait (%p58_p1), [#allocation15], 768  }
  0x76   : > { %4740 = vsyncadd (%p58_p1), [#allocation15], 4294966528 }
  0x77   : > { %4742 = dma.done.wait (%p58_p1), [#allocation18], 288  }
  0x78   : > { %4744 = vsyncadd (%p58_p1), [#allocation18], 4294967008 }
  0x79   : > { %4746 = dma.done.wait (%p58_p1), [#allocation21], 512  }
  0x7a   : > { %4748 = vsyncadd (%p58_p1), [#allocation21], 4294966784 }
  0x7b   : > { %4750 = dma.done.wait (%p58_p1), [#allocation24], 256  }
  0x7c   : > { %4752 = vsyncadd (%p58_p1), [#allocation24], 4294967040  ;;  %v4784_v0 = vmov 0   ;;  %v3909_v1 = vld [vmem:[#allocation10 + $0x14] sm:$0xf]  ;;  %v5095_v3 = vld [vmem:[#allocation13 + $0x8] sm:$0xff] }
  0x7d   : > { %4085 = vset.pattern.permute.xlu1 %v4784_v0  ;;  %4084 = vset.pattern.permute.xlu2 %v4784_v0  ;;  %v3691_v2 = vld [vmem:[#allocation10 + $0x18] sm:$0xf0]  ;;  %v3689_v5 = vld [vmem:[#allocation10 + $0x10] sm:$0xf]  ;;  %v3910_v6 = vld [vmem:[#allocation10 + $0x14] sm:$0xf0] }
  0x7e   : > { %4086 = vset.pattern.permute.xlu0 %v4784_v0  ;;  %v3694_v4 = vor.u32 %v3909_v1, %v3691_v2  ;;  %v3907_v7 = vld [vmem:[#allocation10 + $0x4] sm:$0xf]  ;;  %943 = vmatpush.bf16.msra.mxu2 %v5095_v3  ;;  %v3690_v8 = vor.u32 %v3910_v6, %v3689_v5  ;;  %v3683_v9 = vld [vmem:[#allocation10 + $0x8] sm:$0xf0]  ;;  %v3681_v12 = vld [vmem:[#allocation10] sm:$0xf] }
  0x7f   : > { %v5098_v10 = vld [vmem:[#allocation13] sm:$0xff]  ;;  %v3686_v11 = vor.u32 %v3907_v7, %v3683_v9  ;;  %v3903_v15 = vld [vmem:[%s5055_s25] sm:$0xff]  ;;  %vm834_vm0 = vcmask 261120   ;;  %v5106_v16 = vld [vmem:[#allocation14 + $0x8] sm:$0xff]  ;;  %s4785_s20 = smov 64   ;;  %p750_p1 = scmp.lt.s32.totalorder %s4896_s28, 2 }
  0x80   : > { %882 = vmatpush.bf16.msra.mxu1 %v3694_v4  ;;  %v3908_v13 = vld [vmem:[#allocation10 + $0x4] sm:$0xf0]  ;;  %853 = vmatpush.bf16.msra.mxu0 %v3690_v8  ;;  %v5111_v17 = vld [vmem:[#allocation14] sm:$0xff]  ;;  %v3905_v19 = vld [vmem:[%s5055_s25 + $0x10] sm:$0xff]  ;;  %s6208_s5 = sld [smem:[#allocation35_spill]]  ;;  %s4786_s21 = smov 32  }
  0x81   : > { %v3682_v14 = vor.u32 %v3908_v13, %v3681_v12  ;;  %1023 = vmatpush.bf16.msra.mxu3 %v5106_v16  ;;  %v3904_v18 = vld [vmem:[%s5055_s25 + $0x8] sm:$0xff]  ;;  %v3906_v20 = vld [vmem:[%s5055_s25 + $0x18] sm:$0xff]  ;;  %v788_v21 = vld [vmem:[#allocation11] sm:$0x3]  ;;  %s6223_s28 = smov (!%p750_p1, %s4896_s28), 2  ;;  %s6209_s24 = sld [smem:[#allocation41_spill]] }
  0x82   : > { %944 = vmatpush.bf16.msra.mxu2 %v5098_v10  ;;  %v5137_v22 = vperm.slane %v788_v21, 1  ;;  %v5139_v23 = vperm.slane %v788_v21, 0  ;;  %s3661_s15 = sshll.u32 %s6223_s28, 3  ;;  %s6217_s16 = sld [smem:[#allocation46_spill]] }
  0x84   : > { %883 = vmatpush.bf16.msra.mxu1 %v3686_v11  ;;  %854 = vmatpush.bf16.msra.mxu0 %v3682_v14 }
  0x85   : > { %945 = vmatmul.bf16.vlgmr.msra.gmra.mxu2 %v4784_v0  ;;  %1024 = vmatpush.bf16.msra.mxu3 %v5111_v17 }
  0x86   : > { %1098 = vmatpush.bf16.msrb.mxu2 %v5095_v3  ;;  %s753_s30 = scalar_lea.vmem %s6208_s5, %s3661_s15 }
  0x87   : > { %3699 = vmatmul.msk.bf16.vlgmr.msra.gmra.mxu1 %vm834_vm0, %v3903_v15  ;;  %3695 = vmatmul.msk.bf16.vlgmr.msra.gmra.mxu0 %vm834_vm0, %v3903_v15  ;;  %v5173_v62 = vld [vmem:[%s753_s30] sm:$0xff]  ;;  %s6210_s9 = smov %s6209_s24 }
  0x88   : > { %1548 = vmatpush.bf16.msrb.mxu0 %v5095_v3  ;;  %1617 = vmatpush.bf16.msrb.mxu1 %v5106_v16  ;;  %vm988_vm5 = vcmp.gt.s32.totalorder %v5173_v62, 0  ;;  %vm1068_vm10 = vcmp.gt.s32.totalorder %v5173_v62, 7  ;;  %vm1218_vm13 = vcmp.gt.s32.totalorder %v5173_v62, 6  ;;  %s757_s25 = scalar_lea.vmem %s6217_s16, %s3661_s15 }
  0x89   : > { %1173 = vmatpush.bf16.msrb.mxu3 %v5106_v16  ;;  %v989_v1 = vsel %vm988_vm5, 1, %v4784_v0 }
  0x8a   : > { %1099 = vmatpush.bf16.msrb.mxu2 %v5098_v10  ;;  %1025 = vmatmul.bf16.vlgmr.msra.gmra.mxu3 %v4784_v0 }
  0x8c   : > { %1549 = vmatpush.bf16.msrb.mxu0 %v5098_v10  ;;  %1618 = vmatpush.bf16.msrb.mxu1 %v5111_v17 }
  0x8d   : > { %1174 = vmatpush.bf16.msrb.mxu3 %v5111_v17 }
  0x8e   : > { %1248 = vmatpush.bf16.msra.mxu2 %v5095_v3 }
  0x90   : > { %1824 = vmatpush.bf16.msra.mxu0 %v5095_v3  ;;  %1893 = vmatpush.bf16.msra.mxu1 %v5106_v16 }
  0x91   : > { %1323 = vmatpush.bf16.msra.mxu3 %v5106_v16 }
  0x92   : > { %1249 = vmatpush.bf16.msra.mxu2 %v5098_v10 }
  0x94   : > { %1825 = vmatpush.bf16.msra.mxu0 %v5098_v10  ;;  %1894 = vmatpush.bf16.msra.mxu1 %v5111_v17 }
  0x95   : > { %1324 = vmatpush.bf16.msra.mxu3 %v5111_v17 }
  0x97   : > { %3700 = vmatmul.msk.bf16.gmra.mxu1 %vm834_vm0, %v3904_v18  ;;  %3696 = vmatmul.msk.bf16.gmra.mxu0 %vm834_vm0, %v3904_v18 }
  0xa7   : > { %3701 = vmatmul.msk.bf16.gmra.mxu1 %vm834_vm0, %v3905_v19  ;;  %3697 = vmatmul.msk.bf16.gmra.mxu0 %vm834_vm0, %v3905_v19 }
  0xb7   : > { %3702 = vmatmul.msk.bf16.gmra.mxu1 %vm834_vm0, %v3906_v20  ;;  %3698 = vmatmul.msk.bf16.gmra.mxu0 %vm834_vm0, %v3906_v20 }
 0x104   : > { %v885_v24 = vpop.f32.mrf.mxu1  ;;  %v856_v26 = vpop.f32.mrf.mxu0 }
 0x105   : > { %v5142_v25 = vadd.f32 %v885_v24, %v5137_v22  ;;  %v857_v27 = vadd.f32 %v856_v26, %v5139_v23 }
 0x108   : > { %v946_v28 = vpop.f32.mrf.mxu2 }
 0x109   : > { %v950_v29 = vadd.f32 %v946_v28, %v857_v27 }
 0x10b   : > { %4089 = vtanh.f32 %v950_v29  ;;  %v3711_v47 = vmul.f32 -1.442695, %v950_v29 }
 0x10c   : > { %v5145_v30 = vpop.f32.mrf.mxu1 }
 0x10d   : > { %v1026_v35 = vpop.f32.mrf.mxu3 }
 0x110   : > { %v948_v31 = vpop.f32.mrf.mxu2 }
 0x111   : > { %v4090_v32 = vpop.eup %4089 }
 0x112   : > { %973 = vrot.lane.b32.xlu1 %v4090_v32, %s4785_s20  ;;  %v1069_v32 = vsel %vm1068_vm10, 1, %v4784_v0  ;;  %vm1368_vm10 = vcmp.gt.s32.totalorder %v5173_v62, 5 }
 0x114   : > { %v890_v33 = vpop.f32.mrf.mxu1 }
 0x115   : > { %v5149_v34 = vadd.f32 %v890_v33, %v5137_v22  ;;  %v1028_v37 = vpop.f32.mrf.mxu3 }
 0x11c   : > { %v5151_v36 = vpop.f32.mrf.mxu1 }
 0x124   : > { %v895_v38 = vpop.f32.mrf.mxu1 }
 0x125   : > { %v5154_v39 = vadd.f32 %v895_v38, %v5137_v22 }
 0x12c   : > { %v5156_v40 = vpop.f32.mrf.mxu1 }
 0x134   : > { %v900_v41 = vpop.f32.mrf.mxu1 }
 0x135   : > { %v5159_v42 = vadd.f32 %v900_v41, %v5137_v22 }
 0x13c   : > { %v902_v43 = vpop.f32.mrf.mxu1 }
 0x13d   : > { %v903_v44 = vadd.f32 %v902_v43, %v5137_v22 }
 0x13f   : > { %v1030_v45 = vadd.f32 %v1026_v35, %v903_v44 }
 0x141   : > { %4091 = vtanh.f32 %v1030_v45  ;;  %v3720_v63 = vmul.f32 -1.442695, %v1030_v45 }
 0x142   : > { %4093 = vpow2.f32 %v3711_v47 }
 0x147   : > { %v4092_v46 = vpop.eup %4091 }
 0x148   : > { %1053 = vrot.lane.b32.xlu0 %v4092_v46, %s4785_s20  ;;  %v4094_v48 = vpop.eup %4093 }
 0x149   : > { %v954_v49 = vadd.f32 1.0, %v4094_v48 }
 0x14b   : > { %4095 = vrcp.f32 %v954_v49  ;;  %vm960_vm1 = vweird.f32 %v954_v49  ;;  %v966_v54 = vand.u32 2147483648, %v954_v49  ;;  %v964_v56 = vand.u32 2147483647, %v954_v49 }
 0x14c   : > { %4097 = vpow2.f32 %v3720_v63  ;;  %v1219_v63 = vsel %vm1218_vm13, 1, %v4784_v0 }
 0x14d   : > { %v967_v57 = vor.u32 1.1754944e-38, %v966_v54  ;;  %vm965_vm4 = vcmp.eq.f32.partialorder %v964_v56, 8.507059e+37  ;;  %v858_v54 = vpop.f32.mrf.mxu0 }
 0x151   : > { %v4096_v50 = vpop.eup %4095 }
 0x152   : > { %v956_v51 = vmul.f32 %v4096_v50, %v954_v49  ;;  %vm961_vm2 = vweird.f32 %v4096_v50  ;;  %v4098_v2 = vpop.eup %4097 }
 0x153   : > { %vm962_vm3 = vmor %vm960_vm1, %vm961_vm2  ;;  %v1034_v4 = vadd.f32 1.0, %v4098_v2 }
 0x154   : > { %v957_v52 = vsub.f32 1.0, %v956_v51 }
 0x155   : > { %4099 = vrcp.f32 %v1034_v4  ;;  %v1046_v11 = vand.u32 2147483648, %v1034_v4  ;;  %vm1040_vm7 = vweird.f32 %v1034_v4  ;;  %v1044_v12 = vand.u32 2147483647, %v1034_v4 }
 0x156   : > { %v958_v53 = vmul.f32 %v4096_v50, %v957_v52 }
 0x157   : > { %v1047_v14 = vor.u32 1.1754944e-38, %v1046_v11  ;;  %vm1045_vm9 = vcmp.eq.f32.partialorder %v1044_v12, 8.507059e+37 }
 0x158   : > { %v959_v55 = vadd.f32 %v4096_v50, %v958_v53 }
 0x15a   : > { %v963_v58 = vsel %vm962_vm3, %v4096_v50, %v959_v55  ;;  %v859_v55 = vadd.f32 %v858_v54, %v5139_v23 }
 0x15b   : > { %v968_v60 = vsel %vm965_vm4, %v967_v57, %v963_v58  ;;  %v4100_v5 = vpop.eup %4099 }
 0x15c   : > { %v1036_v6 = vmul.f32 %v4100_v5, %v1034_v4  ;;  %vm1041_vm6 = vweird.f32 %v4100_v5  ;;  %v971_v20 = vmul.f32 0.0, %v968_v60 }
 0x15d   : > { %vm1042_vm8 = vmor %vm1040_vm7, %vm1041_vm6  ;;  %vm1143_vm7 = vcmp.gt.s32.totalorder %v5173_v62, 1 }
 0x15e   : > { %v1037_v7 = vsub.f32 1.0, %v1036_v6 }
 0x160   : > { %v1038_v8 = vmul.f32 %v4100_v5, %v1037_v7 }
 0x162   : > { %v1039_v9 = vadd.f32 %v4100_v5, %v1038_v8 }
 0x164   : > { %v1043_v13 = vsel %vm1042_vm8, %v4100_v5, %v1039_v9 }
 0x165   : > { %v1048_v18 = vsel %vm1045_vm9, %v1047_v14, %v1043_v13 }
 0x166   : > { %v1051_v27 = vmul.f32 0.0, %v1048_v18 }
 0x184   : > { %v974_v59 = vpop.permute.xlu1 %973 }
 0x185   : > { %v976_v61 = vmul.f32 %v974_v59, %v968_v60 }
 0x187   : > { %978 = vrot.lane.b32.xlu1 %v976_v61, %s4786_s21 }
 0x18f   : > { %991 = vperm.xlu1 %4085, %v989_v1  }
 0x1ba   : > { %v1054_v15 = vpop.permute.xlu0 %1053 }
 0x1bb   : > { %v1056_v19 = vmul.f32 %v1054_v15, %v1048_v18 }
 0x1bd   : > { %1058 = vrot.lane.b32.xlu0 %v1056_v19, %s4786_s21 }
 0x1f9   : > { %v979_v21 = vpop.permute.xlu1 %978 }
 0x1fa   : > { %v5179_v24 = vadd.f32 %v979_v21, %v971_v20 }
 0x1fc   : > { %4101 = vtanh.f32 %v5179_v24 }
 0x201   : > { %v5189_v33 = vpop.permute.xlu1 %991 }
 0x202   : > { %v4102_v26 = vpop.eup %4101  ;;  %vm993_vm11 = vcmp.eq.s32.totalorder %v5189_v33, 1 }
 0x203   : > { %984 = vrot.lane.b32.xlu0 %v4102_v26, %s4785_s20 }
 0x22f   : > { %v1059_v28 = vpop.permute.xlu0 %1058 }
 0x230   : > { %v5183_v29 = vadd.f32 %v1059_v28, %v1051_v27 }
 0x232   : > { %4103 = vtanh.f32 %v5183_v29 }
 0x238   : > { %v4104_v31 = vpop.eup %4103 }
 0x239   : > { %1064 = vrot.lane.b32.xlu2 %v4104_v31, %s4785_s20 }
 0x241   : > { %1071 = vperm.xlu2 %4084, %v1069_v32  }
 0x275   : > { %v985_v35 = vpop.permute.xlu0 %984 }
 0x276   : > { %v987_v37 = vmul.f32 %v985_v35, %v968_v60 }
 0x278   : > { %v5194_v38 = vsel %vm993_vm11, %v987_v37, 0.0 }
 0x279   : > { %v5198_v41 = vpack.c.bf16 %v5194_v38, %v5194_v38 }
 0x27b   : > { %v1085_v43 = vunpack.c.l.b16 %v5198_v41 }
 0x27d   : > { %v1086_v44 = vpack.c.b16 %v1085_v43, %v1085_v43 }
 0x27f   : > { %1087 = vrot.lane.b32.xlu0 %v1086_v44, %s4786_s21 }
 0x293   : > { %v1065_v45 = vpop.permute.xlu2 %1064 }
 0x294   : > { %v1067_v46 = vmul.f32 %v1065_v45, %v1048_v18 }
 0x29b   : > { %v5202_v47 = vpop.permute.xlu2 %1071 }
 0x29c   : > { %vm1073_vm12 = vcmp.eq.s32.totalorder %v5202_v47, 1 }
 0x29d   : > { %v5207_v48 = vsel %vm1073_vm12, %v1067_v46, 0.0 }
 0x29e   : > { %v5211_v49 = vpack.c.bf16 %v5207_v48, %v5207_v48 }
 0x2a0   : > { %v1160_v50 = vunpack.c.l.b16 %v5211_v49 }
 0x2a2   : > { %v1161_v51 = vpack.c.b16 %v1160_v50, %v1160_v50 }
 0x2a4   : > { %1162 = vrot.lane.b32.xlu2 %v1161_v51, %s4786_s21 }
 0x2f1   : > { %v1088_v52 = vpop.permute.xlu0 %1087 }
 0x2f2   : > { %3721 = vmatmul.msk.bf16.vlgmr.msrb.gmra.mxu2 %vm834_vm0, %v1088_v52 }
 0x2f3   : > { %1398 = vmatpush.bf16.msrb.mxu2 %v5095_v3 }
 0x2f7   : > { %1399 = vmatpush.bf16.msrb.mxu2 %v5098_v10 }
 0x2fe   : > { %v1163_v53 = vpop.permute.xlu2 %1162 }
 0x2ff   : > { %3723 = vmatmul.msk.bf16.vlgmr.msrb.gmra.mxu3 %vm834_vm0, %v1163_v53  ;;  %v5232_v53 = vsel %vm1073_vm12, %v5183_v29, 0.0 }
 0x300   : > { %1473 = vmatpush.bf16.msrb.mxu3 %v5106_v16 }
 0x304   : > { %1474 = vmatpush.bf16.msrb.mxu3 %v5111_v17 }
 0x375   : > { %v1101_v56 = vpop.f32.mrf.mxu2 }
 0x376   : > { %v1105_v57 = vadd.f32 %v1101_v56, %v859_v55 }
 0x378   : > { %4105 = vtanh.f32 %v1105_v57  ;;  %v3722_v4 = vmul.f32 -1.442695, %v1105_v57 }
 0x37d   : > { %v1103_v58 = vpop.f32.mrf.mxu2 }
 0x37e   : > { %v4106_v59 = vpop.eup %4105  ;;  %v5242_v58 = vsel %vm993_vm11, %v5179_v24, 0.0 }
 0x37f   : > { %1128 = vrot.lane.b32.xlu0 %v4106_v59, %s4785_s20 }
 0x382   : > { %v1176_v60 = vpop.f32.mrf.mxu3 }
 0x383   : > { %v1180_v61 = vadd.f32 %v1176_v60, %v5159_v42 }
 0x385   : > { %4107 = vtanh.f32 %v1180_v61  ;;  %v3724_v6 = vmul.f32 -1.442695, %v1180_v61  ;;  %v1144_v61 = vsel %vm1143_vm7, 1, %v4784_v0 }
 0x386   : > { %4109 = vpow2.f32 %v3722_v4 }
 0x387   : > { %1221 = vperm.xlu0 %4086, %v1219_v63   ;;  %4111 = vpow2.f32 %v3724_v6 }
 0x38a   : > { %v1178_v1 = vpop.f32.mrf.mxu3 }
 0x38b   : > { %v4108_v2 = vpop.eup %4107 }
 0x38c   : > { %1203 = vrot.lane.b32.xlu1 %v4108_v2, %s4785_s20  ;;  %v4110_v5 = vpop.eup %4109 }
 0x38d   : > { %v1109_v7 = vadd.f32 1.0, %v4110_v5  ;;  %v4112_v8 = vpop.eup %4111 }
 0x38e   : > { %v1184_v11 = vadd.f32 1.0, %v4112_v8 }
 0x38f   : > { %4113 = vrcp.f32 %v1109_v7  ;;  %v1121_v19 = vand.u32 2147483648, %v1109_v7  ;;  %vm1115_vm15 = vweird.f32 %v1109_v7  ;;  %v1119_v20 = vand.u32 2147483647, %v1109_v7 }
 0x390   : > { %4115 = vrcp.f32 %v1184_v11  ;;  %v1196_v43 = vand.u32 2147483648, %v1184_v11  ;;  %vm1190_vm4 = vweird.f32 %v1184_v11  ;;  %v1194_v44 = vand.u32 2147483647, %v1184_v11 }
 0x391   : > { %v1122_v27 = vor.u32 1.1754944e-38, %v1121_v19  ;;  %vm1120_vm2 = vcmp.eq.f32.partialorder %v1119_v20, 8.507059e+37  ;;  %v861_v20 = vpop.f32.mrf.mxu0 }
 0x392   : > { %v1197_v46 = vor.u32 1.1754944e-38, %v1196_v43  ;;  %vm1195_vm6 = vcmp.eq.f32.partialorder %v1194_v44, 8.507059e+37 }
 0x395   : > { %v4114_v9 = vpop.eup %4113 }
 0x396   : > { %v1111_v12 = vmul.f32 %v4114_v9, %v1109_v7  ;;  %v4116_v14 = vpop.eup %4115  ;;  %vm1116_vm14 = vweird.f32 %v4114_v9 }
 0x397   : > { %v1186_v18 = vmul.f32 %v4116_v14, %v1184_v11  ;;  %vm1117_vm1 = vmor %vm1115_vm15, %vm1116_vm14  ;;  %vm1191_vm3 = vweird.f32 %v4116_v14 }
 0x398   : > { %v1112_v42 = vsub.f32 1.0, %v1111_v12  ;;  %vm1192_vm5 = vmor %vm1190_vm4, %vm1191_vm3 }
 0x399   : > { %v1187_v26 = vsub.f32 1.0, %v1186_v18 }
 0x39a   : > { %v1113_v13 = vmul.f32 %v4114_v9, %v1112_v42 }
 0x39b   : > { %v1188_v35 = vmul.f32 %v4116_v14, %v1187_v26 }
 0x39c   : > { %v1114_v15 = vadd.f32 %v4114_v9, %v1113_v13 }
 0x39d   : > { %v1189_v37 = vadd.f32 %v4116_v14, %v1188_v35 }
 0x39e   : > { %v1118_v21 = vsel %vm1117_vm1, %v4114_v9, %v1114_v15 }
 0x39f   : > { %v1123_v31 = vsel %vm1120_vm2, %v1122_v27, %v1118_v21  ;;  %v1193_v45 = vsel %vm1192_vm5, %v4116_v14, %v1189_v37  ;;  %v862_v27 = vadd.f32 %v861_v20, %v5139_v23 }
 0x3a0   : > { %v1198_v50 = vsel %vm1195_vm6, %v1197_v46, %v1193_v45  ;;  %v1126_v59 = vmul.f32 %v1123_v31, %v5242_v58  ;;  %vm1293_vm6 = vcmp.gt.s32.totalorder %v5173_v62, 2 }
 0x3a1   : > { %v1201_v54 = vmul.f32 %v1198_v50, %v5232_v53 }
 0x3f1   : > { %v1129_v28 = vpop.permute.xlu0 %1128 }
 0x3f2   : > { %v1131_v32 = vmul.f32 %v1129_v28, %v1123_v31 }
 0x3f4   : > { %1133 = vrot.lane.b32.xlu1 %v1131_v32, %s4786_s21 }
 0x3f9   : > { %v5251_v1 = vpop.permute.xlu0 %1221 }
 0x3fa   : > { %vm1223_vm8 = vcmp.eq.s32.totalorder %v5251_v1, 1  ;;  %v3930_v1 = vld [vmem:[#allocation23 + $0x8] sm:$0xff] }
 0x3fe   : > { %v1204_v51 = vpop.permute.xlu1 %1203 }
 0x3ff   : > { %v1206_v52 = vmul.f32 %v1204_v51, %v1198_v50 }
 0x401   : > { %1208 = vrot.lane.b32.xlu2 %v1206_v52, %s4786_s21 }
 0x45b   : > { %v1209_v55 = vpop.permute.xlu2 %1208 }
 0x45c   : > { %v5235_v56 = vadd.f32 %v1209_v55, %v1201_v54 }
 0x45e   : > { %4117 = vtanh.f32 %v5235_v56 }
 0x464   : > { %v4118_v57 = vpop.eup %4117 }
 0x465   : > { %1214 = vrot.lane.b32.xlu2 %v4118_v57, %s4785_s20 }
 0x466   : > { %v1134_v60 = vpop.permute.xlu1 %1133 }
 0x467   : > { %v5246_v29 = vadd.f32 %v1134_v60, %v1126_v59 }
 0x469   : > { %4119 = vtanh.f32 %v5246_v29 }
 0x46d   : > { %1146 = vperm.xlu2 %4084, %v1144_v61  }
 0x46f   : > { %v4120_v63 = vpop.eup %4119 }
 0x470   : > { %1139 = vrot.lane.b32.xlu1 %v4120_v63, %s4785_s20 }
 0x4bf   : > { %v1215_v2 = vpop.permute.xlu2 %1214 }
 0x4c0   : > { %v1217_v24 = vmul.f32 %v1215_v2, %v1198_v50 }
 0x4c2   : > { %v5257_v4 = vsel %vm1223_vm8, %v1217_v24, %v5207_v48 }
 0x4c3   : > { %v5261_v5 = vpack.c.bf16 %v5257_v4, %v5257_v4 }
 0x4c5   : > { %v1310_v6 = vunpack.c.l.b16 %v5261_v5 }
 0x4c7   : > { %v1311_v7 = vpack.c.b16 %v1310_v6, %v1310_v6  ;;  %v5265_v8 = vpop.permute.xlu2 %1146 }
 0x4c8   : > { %vm1148_vm9 = vcmp.eq.s32.totalorder %v5265_v8, 1 }
 0x4c9   : > { %1312 = vrot.lane.b32.xlu1 %v1311_v7, %s4786_s21 }
 0x4e2   : > { %v1140_v9 = vpop.permute.xlu1 %1139 }
 0x4e3   : > { %v1142_v11 = vmul.f32 %v1140_v9, %v1123_v31 }
 0x4e5   : > { %v5271_v48 = vsel %vm1148_vm9, %v1142_v11, %v5194_v38  ;;  %v898_v38 = vadd.f32 %v5156_v40, %v5137_v22  ;;  %v1369_v40 = vsel %vm1368_vm10, 1, %v4784_v0 }
 0x4e6   : > { %v5275_v12 = vpack.c.bf16 %v5271_v48, %v5271_v48 }
 0x4e8   : > { %v1235_v42 = vunpack.c.l.b16 %v5275_v12 }
 0x4ea   : > { %v1236_v13 = vpack.c.b16 %v1235_v42, %v1235_v42 }
 0x4ec   : > { %1237 = vrot.lane.b32.xlu2 %v1236_v13, %s4786_s21 }
 0x53b   : > { %v1313_v14 = vpop.permute.xlu1 %1312 }
 0x53c   : > { %3727 = vmatmul.msk.bf16.vlgmr.msra.gmra.mxu3 %vm834_vm0, %v1313_v14 }
 0x53d   : > { %1755 = vmatpush.bf16.msra.mxu3 %v5106_v16 }
 0x541   : > { %1756 = vmatpush.bf16.msra.mxu3 %v5111_v17 }
 0x546   : > { %v1238_v15 = vpop.permute.xlu2 %1237 }
 0x547   : > { %3725 = vmatmul.msk.bf16.vlgmr.msra.gmra.mxu2 %vm834_vm0, %v1238_v15 }
 0x548   : > { %1686 = vmatpush.bf16.msra.mxu2 %v5095_v3 }
 0x54c   : > { %1687 = vmatpush.bf16.msra.mxu2 %v5098_v10 }
 0x5bf   : > { %v1326_v18 = vpop.f32.mrf.mxu3 }
 0x5c0   : > { %v1330_v19 = vadd.f32 %v1326_v18, %v898_v38 }
 0x5c2   : > { %4121 = vtanh.f32 %v1330_v19  ;;  %v3728_v44 = vmul.f32 -1.442695, %v1330_v19 }
 0x5c7   : > { %v1328_v21 = vpop.f32.mrf.mxu3 }
 0x5c8   : > { %v4122_v26 = vpop.eup %4121 }
 0x5c9   : > { %1353 = vrot.lane.b32.xlu0 %v4122_v26, %s4785_s20  ;;  %v5298_v26 = vsel %vm1148_vm9, %v5246_v29, %v5242_v58 }
 0x5ca   : > { %v1251_v28 = vpop.f32.mrf.mxu2 }
 0x5cb   : > { %v1255_v31 = vadd.f32 %v1251_v28, %v862_v27 }
 0x5cd   : > { %4123 = vtanh.f32 %v1255_v31  ;;  %v3726_v37 = vmul.f32 -1.442695, %v1255_v31 }
 0x5cf   : > { %4125 = vpow2.f32 %v3726_v37 }
 0x5d0   : > { %4127 = vpow2.f32 %v3728_v44 }
 0x5d2   : > { %v1253_v32 = vpop.f32.mrf.mxu2 }
 0x5d3   : > { %v4124_v35 = vpop.eup %4123 }
 0x5d4   : > { %1278 = vrot.lane.b32.xlu2 %v4124_v35, %s4785_s20  ;;  %v5309_v35 = vsel %vm1223_vm8, %v5235_v56, %v5232_v53 }
 0x5d5   : > { %v4126_v43 = vpop.eup %4125 }
 0x5d6   : > { %v1259_v45 = vadd.f32 1.0, %v4126_v43  ;;  %v4128_v46 = vpop.eup %4127  ;;  %v1294_v43 = vsel %vm1293_vm6, 1, %v4784_v0 }
 0x5d7   : > { %v1334_v51 = vadd.f32 1.0, %v4128_v46 }
 0x5d8   : > { %4129 = vrcp.f32 %v1259_v45  ;;  %v1271_v61 = vand.u32 2147483648, %v1259_v45  ;;  %vm1265_vm14 = vweird.f32 %v1259_v45  ;;  %v1269_v63 = vand.u32 2147483647, %v1259_v45 }
 0x5d9   : > { %4131 = vrcp.f32 %v1334_v51  ;;  %v1346_v14 = vand.u32 2147483648, %v1334_v51  ;;  %vm1340_vm3 = vweird.f32 %v1334_v51  ;;  %v1344_v15 = vand.u32 2147483647, %v1334_v51 }
 0x5da   : > { %v1272_v6 = vor.u32 1.1754944e-38, %v1271_v61  ;;  %vm1270_vm1 = vcmp.eq.f32.partialorder %v1269_v63, 8.507059e+37 }
 0x5db   : > { %v1347_v18 = vor.u32 1.1754944e-38, %v1346_v14  ;;  %vm1345_vm5 = vcmp.eq.f32.partialorder %v1344_v15, 8.507059e+37 }
 0x5dc   : > { %1371 = vperm.xlu2 %4084, %v1369_v40  }
 0x5de   : > { %v4130_v50 = vpop.eup %4129 }
 0x5df   : > { %v1261_v52 = vmul.f32 %v4130_v50, %v1259_v45  ;;  %v4132_v57 = vpop.eup %4131  ;;  %vm1266_vm13 = vweird.f32 %v4130_v50 }
 0x5e0   : > { %v1336_v60 = vmul.f32 %v4132_v57, %v1334_v51  ;;  %vm1267_vm15 = vmor %vm1265_vm14, %vm1266_vm13  ;;  %vm1341_vm2 = vweird.f32 %v4132_v57  ;;  %vm1518_vm13 = vcmp.gt.s32.totalorder %v5173_v62, 4 }
 0x5e1   : > { %v1262_v54 = vsub.f32 1.0, %v1261_v52  ;;  %vm1342_vm4 = vmor %vm1340_vm3, %vm1341_vm2 }
 0x5e2   : > { %v1337_v24 = vsub.f32 1.0, %v1336_v60 }
 0x5e3   : > { %v1263_v55 = vmul.f32 %v4130_v50, %v1262_v54 }
 0x5e4   : > { %v1338_v42 = vmul.f32 %v4132_v57, %v1337_v24 }
 0x5e5   : > { %v1264_v59 = vadd.f32 %v4130_v50, %v1263_v55 }
 0x5e6   : > { %v1339_v13 = vadd.f32 %v4132_v57, %v1338_v42 }
 0x5e7   : > { %v1268_v2 = vsel %vm1267_vm15, %v4130_v50, %v1264_v59 }
 0x5e8   : > { %v1273_v9 = vsel %vm1270_vm1, %v1272_v6, %v1268_v2  ;;  %v1343_v38 = vsel %vm1342_vm4, %v4132_v57, %v1339_v13 }
 0x5e9   : > { %v1348_v20 = vsel %vm1345_vm5, %v1347_v18, %v1343_v38  ;;  %v1276_v27 = vmul.f32 %v1273_v9, %v5298_v26 }
 0x5ea   : > { %v1351_v40 = vmul.f32 %v1348_v20, %v5309_v35 }
 0x62e   : > { %v1279_v7 = vpop.permute.xlu2 %1278 }
 0x62f   : > { %v1281_v11 = vmul.f32 %v1279_v7, %v1273_v9  ;;  %v863_v7 = vpop.f32.mrf.mxu0 }
 0x631   : > { %1283 = vrot.lane.b32.xlu0 %v1281_v11, %s4786_s21 }
 0x636   : > { %v5318_v44 = vpop.permute.xlu2 %1371 }
 0x637   : > { %vm1373_vm7 = vcmp.eq.s32.totalorder %v5318_v44, 1 }
 0x63b   : > { %v1354_v19 = vpop.permute.xlu0 %1353 }
 0x63c   : > { %v1356_v21 = vmul.f32 %v1354_v19, %v1348_v20 }
 0x63e   : > { %1358 = vrot.lane.b32.xlu1 %v1356_v21, %s4786_s21 }
 0x6a3   : > { %v1284_v28 = vpop.permute.xlu0 %1283 }
 0x6a4   : > { %v5301_v31 = vadd.f32 %v1284_v28, %v1276_v27 }
 0x6a6   : > { %4133 = vtanh.f32 %v5301_v31 }
 0x6ac   : > { %v4134_v32 = vpop.eup %4133 }
 0x6ad   : > { %1289 = vrot.lane.b32.xlu0 %v4134_v32, %s4785_s20 }
 0x6b0   : > { %v1359_v58 = vpop.permute.xlu1 %1358 }
 0x6b1   : > { %v5312_v29 = vadd.f32 %v1359_v58, %v1351_v40 }
 0x6b3   : > { %4135 = vtanh.f32 %v5312_v29 }
 0x6b9   : > { %v4136_v37 = vpop.eup %4135 }
 0x6ba   : > { %1364 = vrot.lane.b32.xlu1 %v4136_v37, %s4785_s20 }
 0x6c2   : > { %1296 = vperm.xlu1 %4085, %v1294_v43  }
 0x71f   : > { %v1290_v50 = vpop.permute.xlu0 %1289 }
 0x720   : > { %v1292_v52 = vmul.f32 %v1290_v50, %v1273_v9 }
 0x72c   : > { %v1365_v45 = vpop.permute.xlu1 %1364 }
 0x72d   : > { %v1367_v53 = vmul.f32 %v1365_v45, %v1348_v20 }
 0x72f   : > { %v5324_v56 = vsel %vm1373_vm7, %v1367_v53, %v5257_v4 }
 0x730   : > { %v5328_v46 = vpack.c.bf16 %v5324_v56, %v5324_v56 }
 0x732   : > { %v1460_v51 = vunpack.c.l.b16 %v5328_v46 }
 0x734   : > { %v5331_v54 = vpop.permute.xlu1 %1296  ;;  %v1461_v55 = vpack.c.b16 %v1460_v51, %v1460_v51 }
 0x735   : > { %vm1298_vm10 = vcmp.eq.s32.totalorder %v5331_v54, 1 }
 0x736   : > { %1462 = vrot.lane.b32.xlu2 %v1461_v55, %s4786_s21  ;;  %v5338_v4 = vsel %vm1298_vm10, %v1292_v52, %v5271_v48 }
 0x737   : > { %v5342_v57 = vpack.c.bf16 %v5338_v4, %v5338_v4 }
 0x739   : > { %v1385_v59 = vunpack.c.l.b16 %v5342_v57 }
 0x73b   : > { %v1386_v60 = vpack.c.b16 %v1385_v59, %v1385_v59 }
 0x73d   : > { %1387 = vrot.lane.b32.xlu0 %v1386_v60, %s4786_s21 }
 0x790   : > { %v1463_v61 = vpop.permute.xlu2 %1462 }
 0x791   : > { %3731 = vmatmul.msk.bf16.vlgmr.msrb.gmra.mxu3 %vm834_vm0, %v1463_v61 }
 0x792   : > { %2029 = vmatpush.bf16.msrb.mxu3 %v5106_v16  ;;  %v864_v16 = vadd.f32 %v863_v7, %v5139_v23 }
 0x796   : > { %2030 = vmatpush.bf16.msrb.mxu3 %v5111_v17 }
 0x7af   : > { %v1388_v63 = vpop.permute.xlu0 %1387 }
 0x7b0   : > { %3729 = vmatmul.msk.bf16.vlgmr.msrb.gmra.mxu2 %vm834_vm0, %v1388_v63 }
 0x7b1   : > { %1962 = vmatpush.bf16.msrb.mxu2 %v5095_v3  ;;  %v1519_v3 = vsel %vm1518_vm13, 1, %v4784_v0  ;;  %vm1443_vm13 = vcmp.gt.s32.totalorder %v5173_v62, 3 }
 0x7b5   : > { %1963 = vmatpush.bf16.msrb.mxu2 %v5098_v10 }
 0x814   : > { %v1476_v48 = vpop.f32.mrf.mxu3 }
 0x815   : > { %v1480_v2 = vadd.f32 %v1476_v48, %v5154_v39 }
 0x817   : > { %4137 = vtanh.f32 %v1480_v2  ;;  %v3732_v10 = vmul.f32 -1.442695, %v1480_v2 }
 0x81c   : > { %v1478_v24 = vpop.f32.mrf.mxu3 }
 0x81d   : > { %v4138_v6 = vpop.eup %4137 }
 0x81e   : > { %1503 = vrot.lane.b32.xlu1 %v4138_v6, %s4785_s20  ;;  %v5364_v6 = vsel %vm1373_vm7, %v5312_v29, %v5309_v35  ;;  %v5377_v35 = vsel %vm1298_vm10, %v5301_v31, %v5298_v26 }
 0x833   : > { %v1401_v9 = vpop.f32.mrf.mxu2 }
 0x834   : > { %v1405_v17 = vadd.f32 %v1401_v9, %v864_v16 }
 0x836   : > { %4139 = vtanh.f32 %v1405_v17  ;;  %v3730_v18 = vmul.f32 -1.442695, %v1405_v17 }
 0x837   : > { %4141 = vpow2.f32 %v3732_v10 }
 0x83b   : > { %v1403_v11 = vpop.f32.mrf.mxu2 }
 0x83c   : > { %v4140_v42 = vpop.eup %4139  ;;  %v1444_v11 = vsel %vm1443_vm13, 1, %v4784_v0 }
 0x83d   : > { %1428 = vrot.lane.b32.xlu0 %v4140_v42, %s4785_s20  ;;  %v4142_v39 = vpop.eup %4141 }
 0x83e   : > { %v1484_v13 = vadd.f32 1.0, %v4142_v39 }
 0x840   : > { %4143 = vrcp.f32 %v1484_v13  ;;  %v1496_v21 = vand.u32 2147483648, %v1484_v13  ;;  %vm1490_vm15 = vweird.f32 %v1484_v13  ;;  %v1494_v27 = vand.u32 2147483647, %v1484_v13 }
 0x841   : > { %4145 = vpow2.f32 %v3730_v18 }
 0x842   : > { %v1497_v40 = vor.u32 1.1754944e-38, %v1496_v21  ;;  %vm1495_vm2 = vcmp.eq.f32.partialorder %v1494_v27, 8.507059e+37 }
 0x845   : > { %1521 = vperm.xlu0 %4086, %v1519_v3  }
 0x846   : > { %v4144_v14 = vpop.eup %4143 }
 0x847   : > { %v1486_v15 = vmul.f32 %v4144_v14, %v1484_v13  ;;  %vm1491_vm14 = vweird.f32 %v4144_v14  ;;  %v4146_v28 = vpop.eup %4145 }
 0x848   : > { %vm1492_vm1 = vmor %vm1490_vm15, %vm1491_vm14  ;;  %v1409_v58 = vadd.f32 1.0, %v4146_v28 }
 0x849   : > { %v1487_v38 = vsub.f32 1.0, %v1486_v15 }
 0x84a   : > { %4147 = vrcp.f32 %v1409_v58  ;;  %v1421_v59 = vand.u32 2147483648, %v1409_v58  ;;  %vm1415_vm4 = vweird.f32 %v1409_v58  ;;  %v1419_v60 = vand.u32 2147483647, %v1409_v58 }
 0x84b   : > { %v1488_v19 = vmul.f32 %v4144_v14, %v1487_v38 }
 0x84c   : > { %v1422_v63 = vor.u32 1.1754944e-38, %v1421_v59  ;;  %vm1420_vm6 = vcmp.eq.f32.partialorder %v1419_v60, 8.507059e+37 }
 0x84d   : > { %v1489_v20 = vadd.f32 %v4144_v14, %v1488_v19 }
 0x84f   : > { %v1493_v32 = vsel %vm1492_vm1, %v4144_v14, %v1489_v20 }
 0x850   : > { %v1498_v43 = vsel %vm1495_vm2, %v1497_v40, %v1493_v32  ;;  %v4148_v53 = vpop.eup %4147  ;;  %v893_v40 = vadd.f32 %v5151_v36, %v5137_v22 }
 0x851   : > { %v1411_v50 = vmul.f32 %v4148_v53, %v1409_v58  ;;  %vm1416_vm3 = vweird.f32 %v4148_v53  ;;  %v1501_v7 = vmul.f32 %v1498_v43, %v5364_v6 }
 0x852   : > { %vm1417_vm5 = vmor %vm1415_vm4, %vm1416_vm3 }
 0x853   : > { %v1412_v51 = vsub.f32 1.0, %v1411_v50 }
 0x855   : > { %v1413_v52 = vmul.f32 %v4148_v53, %v1412_v51 }
 0x857   : > { %v1414_v55 = vadd.f32 %v4148_v53, %v1413_v52 }
 0x859   : > { %v1418_v61 = vsel %vm1417_vm5, %v4148_v53, %v1414_v55 }
 0x85a   : > { %v1423_v2 = vsel %vm1420_vm6, %v1422_v63, %v1418_v61 }
 0x85b   : > { %v1426_v29 = vmul.f32 %v1423_v2, %v5377_v35 }
 0x890   : > { %v1504_v37 = vpop.permute.xlu1 %1503 }
 0x891   : > { %v1506_v45 = vmul.f32 %v1504_v37, %v1498_v43 }
 0x893   : > { %1508 = vrot.lane.b32.xlu2 %v1506_v45, %s4786_s21  ;;  %v866_v45 = vpop.f32.mrf.mxu0 }
 0x894   : > { %v867_v60 = vadd.f32 %v866_v45, %v5139_v23 }
 0x89b   : > { %v5417_v53 = vpop.f32.mrf.mxu0 }
 0x8a3   : > { %v5419_v51 = vpop.f32.mrf.mxu0 }
 0x8ab   : > { %v5421_v59 = vpop.f32.mrf.mxu0 }
 0x8af   : > { %v1429_v48 = vpop.permute.xlu0 %1428 }
 0x8b0   : > { %v1431_v24 = vmul.f32 %v1429_v48, %v1423_v2 }
 0x8b2   : > { %1433 = vrot.lane.b32.xlu1 %v1431_v24, %s4786_s21 }
 0x8b7   : > { %v5384_v62 = vpop.permute.xlu0 %1521 }
 0x8b8   : > { %vm6177_vm14 = vcmp.eq.s32.totalorder %v5384_v62, 1 }
 0x8ed   : > { %v1509_v16 = vpop.permute.xlu2 %1508 }
 0x8ee   : > { %v5367_v9 = vadd.f32 %v1509_v16, %v1501_v7 }
 0x8f0   : > { %4149 = vtanh.f32 %v5367_v9 }
 0x8f6   : > { %v4150_v17 = vpop.eup %4149 }
 0x8f7   : > { %1514 = vrot.lane.b32.xlu2 %v4150_v17, %s4785_s20 }
 0x8ff   : > { %1446 = vperm.xlu2 %4084, %v1444_v11  }
 0x924   : > { %v1434_v42 = vpop.permute.xlu1 %1433 }
 0x925   : > { %v5380_v3 = vadd.f32 %v1434_v42, %v1426_v29 }
 0x927   : > { %4151 = vtanh.f32 %v5380_v3 }
 0x92d   : > { %v4152_v10 = vpop.eup %4151 }
 0x92e   : > { %1439 = vrot.lane.b32.xlu1 %v4152_v10, %s4785_s20 }
 0x951   : > { %v1515_v39 = vpop.permute.xlu2 %1514 }
 0x952   : > { %v1517_v13 = vmul.f32 %v1515_v39, %v1498_v43 }
 0x954   : > { %v5390_v26 = vsel %vm6177_vm14, %v1517_v13, %v5324_v56 }
 0x955   : > { %v5394_v31 = vpack.c.bf16 %v5390_v26, %v5390_v26 }
 0x957   : > { %v1604_v14 = vunpack.c.l.b16 %v5394_v31 }
 0x959   : > { %v1605_v15 = vpack.c.b16 %v1604_v14, %v1604_v14  ;;  %v5398_v38 = vpop.permute.xlu2 %1446 }
 0x95a   : > { %vm1448_vm15 = vcmp.eq.s32.totalorder %v5398_v38, 1 }
 0x95b   : > { %1606 = vrot.lane.b32.xlu0 %v1605_v15, %s4786_s21 }
 0x9a0   : > { %v1440_v18 = vpop.permute.xlu1 %1439 }
 0x9a1   : > { %v1442_v19 = vmul.f32 %v1440_v18, %v1423_v2 }
 0x9a3   : > { %v5404_v56 = vsel %vm1448_vm15, %v1442_v19, %v5338_v4 }
 0x9a4   : > { %v5408_v20 = vpack.c.bf16 %v5404_v56, %v5404_v56 }
 0x9a6   : > { %v1535_v21 = vunpack.c.l.b16 %v5408_v20 }
 0x9a8   : > { %v1536_v27 = vpack.c.b16 %v1535_v21, %v1535_v21 }
 0x9aa   : > { %1537 = vrot.lane.b32.xlu1 %v1536_v27, %s4786_s21 }
 0x9cd   : > { %v1607_v28 = vpop.permute.xlu0 %1606 }
 0x9ce   : > { %3735 = vmatmul.msk.bf16.vlgmr.msrb.gmra.mxu1 %vm834_vm0, %v1607_v28 }
 0xa1c   : > { %v1538_v32 = vpop.permute.xlu1 %1537 }
 0xa1d   : > { %3733 = vmatmul.msk.bf16.vlgmr.msrb.gmra.mxu0 %vm834_vm0, %v1538_v32 }
 0xa4b   : > { %v1620_v4 = vpop.f32.mrf.mxu1 }
 0xa4c   : > { %v1624_v58 = vadd.f32 %v1620_v4, %v893_v40 }
 0xa4e   : > { %4153 = vtanh.f32 %v1624_v58  ;;  %v3736_v50 = vmul.f32 -1.442695, %v1624_v58 }
 0xa50   : > { %4155 = vpow2.f32 %v3736_v50 }
 0xa53   : > { %v1622_v37 = vpop.f32.mrf.mxu1 }
 0xa54   : > { %v4154_v43 = vpop.eup %4153 }
 0xa55   : > { %1647 = vrot.lane.b32.xlu2 %v4154_v43, %s4785_s20 }
 0xa56   : > { %v4156_v52 = vpop.eup %4155 }
 0xa57   : > { %v1628_v55 = vadd.f32 1.0, %v4156_v52 }
 0xa59   : > { %4157 = vrcp.f32 %v1628_v55  ;;  %v1640_v11 = vand.u32 2147483648, %v1628_v55  ;;  %vm1634_vm2 = vweird.f32 %v1628_v55  ;;  %v1638_v29 = vand.u32 2147483647, %v1628_v55 }
 0xa5b   : > { %v1641_v10 = vor.u32 1.1754944e-38, %v1640_v11  ;;  %vm1639_vm4 = vcmp.eq.f32.partialorder %v1638_v29, 8.507059e+37 }
 0xa5f   : > { %v4158_v36 = vpop.eup %4157 }
 0xa60   : > { %v1630_v48 = vmul.f32 %v4158_v36, %v1628_v55  ;;  %vm1635_vm1 = vweird.f32 %v4158_v36  ;;  %v5431_v55 = vsel %vm6177_vm14, %v5367_v9, %v5364_v6 }
 0xa61   : > { %vm1636_vm3 = vmor %vm1634_vm2, %vm1635_vm1 }
 0xa62   : > { %v1631_v2 = vsub.f32 1.0, %v1630_v48  ;;  %v5442_v48 = vsel %vm1448_vm15, %v5380_v3, %v5377_v35 }
 0xa64   : > { %v1632_v16 = vmul.f32 %v4158_v36, %v1631_v2 }
 0xa66   : > { %v1633_v17 = vadd.f32 %v4158_v36, %v1632_v16 }
 0xa68   : > { %v1637_v42 = vsel %vm1636_vm3, %v4158_v36, %v1633_v17 }
 0xa69   : > { %v1642_v39 = vsel %vm1639_vm4, %v1641_v10, %v1637_v42 }
 0xa6a   : > { %v1645_v36 = vmul.f32 %v1642_v39, %v5431_v55 }
 0xa9a   : > { %v1551_v61 = vpop.f32.mrf.mxu0 }
 0xa9b   : > { %v1555_v63 = vadd.f32 %v1551_v61, %v867_v60 }
 0xa9d   : > { %4159 = vtanh.f32 %v1555_v63  ;;  %v3734_v15 = vmul.f32 -1.442695, %v1555_v63 }
 0xa9f   : > { %4161 = vpow2.f32 %v3734_v15 }
 0xaa2   : > { %v1553_v24 = vpop.f32.mrf.mxu0 }
 0xaa3   : > { %v4160_v7 = vpop.eup %4159 }
 0xaa4   : > { %1578 = vrot.lane.b32.xlu1 %v4160_v7, %s4785_s20 }
 0xaa5   : > { %v4162_v18 = vpop.eup %4161 }
 0xaa6   : > { %v1559_v19 = vadd.f32 1.0, %v4162_v18 }
 0xaa8   : > { %4163 = vrcp.f32 %v1559_v19  ;;  %v1571_v4 = vand.u32 2147483648, %v1559_v19  ;;  %vm1565_vm6 = vweird.f32 %v1559_v19  ;;  %v1569_v58 = vand.u32 2147483647, %v1559_v19 }
 0xaaa   : > { %v1572_v43 = vor.u32 1.1754944e-38, %v1571_v4  ;;  %vm1570_vm1 = vcmp.eq.f32.partialorder %v1569_v58, 8.507059e+37  ;;  %v869_v4 = vadd.f32 %v5417_v53, %v5139_v23 }
 0xaae   : > { %v4164_v21 = vpop.eup %4163 }
 0xaaf   : > { %v1648_v13 = vpop.permute.xlu2 %1647  ;;  %v1561_v27 = vmul.f32 %v4164_v21, %v1559_v19  ;;  %vm1566_vm5 = vweird.f32 %v4164_v21 }
 0xab0   : > { %v1650_v14 = vmul.f32 %v1648_v13, %v1642_v39  ;;  %vm1567_vm13 = vmor %vm1565_vm6, %vm1566_vm5 }
 0xab1   : > { %v1562_v28 = vsub.f32 1.0, %v1561_v27 }
 0xab2   : > { %1652 = vrot.lane.b32.xlu0 %v1650_v14, %s4786_s21 }
 0xab3   : > { %v1563_v32 = vmul.f32 %v4164_v21, %v1562_v28 }
 0xab5   : > { %v1564_v40 = vadd.f32 %v4164_v21, %v1563_v32 }
 0xab7   : > { %v1568_v37 = vsel %vm1567_vm13, %v4164_v21, %v1564_v40 }
 0xab8   : > { %v1573_v50 = vsel %vm1570_vm1, %v1572_v43, %v1568_v37 }
 0xab9   : > { %v1576_v2 = vmul.f32 %v1573_v50, %v5442_v48 }
 0xb16   : > { %v1579_v45 = vpop.permute.xlu1 %1578 }
 0xb17   : > { %v1581_v52 = vmul.f32 %v1579_v45, %v1573_v50 }
 0xb19   : > { %1583 = vrot.lane.b32.xlu2 %v1581_v52, %s4786_s21 }
 0xb24   : > { %v1653_v60 = vpop.permute.xlu0 %1652 }
 0xb25   : > { %v5434_v61 = vadd.f32 %v1653_v60, %v1645_v36 }
 0xb27   : > { %4165 = vtanh.f32 %v5434_v61 }
 0xb2d   : > { %v4166_v63 = vpop.eup %4165 }
 0xb2e   : > { %1658 = vrot.lane.b32.xlu0 %v4166_v63, %s4785_s20 }
 0xb73   : > { %v1584_v6 = vpop.permute.xlu2 %1583 }
 0xb74   : > { %v5445_v9 = vadd.f32 %v1584_v6, %v1576_v2 }
 0xb76   : > { %4167 = vtanh.f32 %v5445_v9 }
 0xb7c   : > { %v4168_v24 = vpop.eup %4167 }
 0xb7d   : > { %1589 = vrot.lane.b32.xlu1 %v4168_v24, %s4785_s20 }
 0xba0   : > { %v1659_v7 = vpop.permute.xlu0 %1658 }
 0xba1   : > { %v1661_v16 = vmul.f32 %v1659_v7, %v1642_v39 }
 0xba3   : > { %v5452_v17 = vsel %vm1448_vm15, %v1661_v16, %v5390_v26 }
 0xba4   : > { %v5456_v35 = vpack.c.bf16 %v5452_v17, %v5452_v17 }
 0xba6   : > { %v1742_v3 = vunpack.c.l.b16 %v5456_v35 }
 0xba8   : > { %v1743_v11 = vpack.c.b16 %v1742_v3, %v1742_v3 }
 0xbaa   : > { %1744 = vrot.lane.b32.xlu2 %v1743_v11, %s4786_s21 }
 0xbef   : > { %v1590_v29 = vpop.permute.xlu1 %1589 }
 0xbf0   : > { %v1592_v42 = vmul.f32 %v1590_v29, %v1573_v50 }
 0xbf2   : > { %v5463_v10 = vsel %vm6177_vm14, %v1592_v42, %v5404_v56 }
 0xbf3   : > { %v5467_v26 = vpack.c.bf16 %v5463_v10, %v5463_v10 }
 0xbf5   : > { %v1673_v39 = vunpack.c.l.b16 %v5467_v26 }
 0xbf7   : > { %v1674_v13 = vpack.c.b16 %v1673_v39, %v1673_v39 }
 0xbf9   : > { %1675 = vrot.lane.b32.xlu0 %v1674_v13, %s4786_s21  ;;  %v5483_v13 = vsel %vm1448_vm15, %v5434_v61, %v5431_v55 }
 0xc04   : > { %v1745_v14 = vpop.permute.xlu2 %1744 }
 0xc05   : > { %3739 = vmatmul.msk.bf16.vlgmr.msra.gmra.mxu3 %vm834_vm0, %v1745_v14 }
 0xc6b   : > { %v1676_v15 = vpop.permute.xlu0 %1675 }
 0xc6c   : > { %3737 = vmatmul.msk.bf16.vlgmr.msra.gmra.mxu2 %vm834_vm0, %v1676_v15 }
 0xc88   : > { %v1758_v18 = vpop.f32.mrf.mxu3 }
 0xc89   : > { %v1762_v19 = vadd.f32 %v1758_v18, %v5149_v34 }
 0xc8b   : > { %4169 = vtanh.f32 %v1762_v19  ;;  %v3740_v27 = vmul.f32 -1.442695, %v1762_v19 }
 0xc8d   : > { %4171 = vpow2.f32 %v3740_v27 }
 0xc90   : > { %v1760_v56 = vpop.f32.mrf.mxu3 }
 0xc91   : > { %v4170_v21 = vpop.eup %4169 }
 0xc92   : > { %1785 = vrot.lane.b32.xlu1 %v4170_v21, %s4785_s20 }
 0xc93   : > { %v4172_v28 = vpop.eup %4171 }
 0xc94   : > { %v1766_v32 = vadd.f32 1.0, %v4172_v28 }
 0xc96   : > { %4173 = vrcp.f32 %v1766_v32  ;;  %v1778_v60 = vand.u32 2147483648, %v1766_v32  ;;  %vm1772_vm3 = vweird.f32 %v1766_v32  ;;  %v1776_v63 = vand.u32 2147483647, %v1766_v32 }
 0xc98   : > { %v1779_v6 = vor.u32 1.1754944e-38, %v1778_v60  ;;  %vm1777_vm5 = vcmp.eq.f32.partialorder %v1776_v63, 8.507059e+37 }
 0xc9c   : > { %v4174_v40 = vpop.eup %4173 }
 0xc9d   : > { %v1768_v43 = vmul.f32 %v4174_v40, %v1766_v32  ;;  %vm1773_vm2 = vweird.f32 %v4174_v40 }
 0xc9e   : > { %vm1774_vm4 = vmor %vm1772_vm3, %vm1773_vm2 }
 0xc9f   : > { %v1769_v45 = vsub.f32 1.0, %v1768_v43 }
 0xca1   : > { %v1770_v52 = vmul.f32 %v4174_v40, %v1769_v45 }
 0xca3   : > { %v1771_v36 = vadd.f32 %v4174_v40, %v1770_v52  ;;  %v5506_v52 = vsel %vm6177_vm14, %v5445_v9, %v5442_v48 }
 0xca5   : > { %v1775_v2 = vsel %vm1774_vm4, %v4174_v40, %v1771_v36 }
 0xca6   : > { %v1780_v24 = vsel %vm1777_vm5, %v1779_v6, %v1775_v2 }
 0xca7   : > { %v1783_v14 = vmul.f32 %v1780_v24, %v5483_v13 }
 0xcef   : > { %v1689_v58 = vpop.f32.mrf.mxu2 }
 0xcf0   : > { %v1693_v37 = vadd.f32 %v1689_v58, %v869_v4 }
 0xcf2   : > { %4175 = vtanh.f32 %v1693_v37  ;;  %v3738_v16 = vmul.f32 -1.442695, %v1693_v37 }
 0xcf4   : > { %4177 = vpow2.f32 %v3738_v16  ;;  %v888_v16 = vadd.f32 %v5145_v30, %v5137_v22 }
 0xcf7   : > { %v1691_v34 = vpop.f32.mrf.mxu2 }
 0xcf8   : > { %v4176_v50 = vpop.eup %4175 }
 0xcf9   : > { %1716 = vrot.lane.b32.xlu0 %v4176_v50, %s4785_s20 }
 0xcfa   : > { %v4178_v3 = vpop.eup %4177 }
 0xcfb   : > { %v1697_v11 = vadd.f32 1.0, %v4178_v3 }
 0xcfd   : > { %4179 = vrcp.f32 %v1697_v11  ;;  %v1709_v21 = vand.u32 2147483648, %v1697_v11  ;;  %vm1703_vm13 = vweird.f32 %v1697_v11  ;;  %v1707_v27 = vand.u32 2147483647, %v1697_v11 }
 0xcff   : > { %v1710_v32 = vor.u32 1.1754944e-38, %v1709_v21  ;;  %vm1708_vm2 = vcmp.eq.f32.partialorder %v1707_v27, 8.507059e+37 }
 0xd03   : > { %v4180_v29 = vpop.eup %4179 }
 0xd04   : > { %v1786_v53 = vpop.permute.xlu1 %1785  ;;  %v1699_v42 = vmul.f32 %v4180_v29, %v1697_v11  ;;  %vm1704_vm6 = vweird.f32 %v4180_v29 }
 0xd05   : > { %v1788_v7 = vmul.f32 %v1786_v53, %v1780_v24  ;;  %vm1705_vm1 = vmor %vm1703_vm13, %vm1704_vm6 }
 0xd06   : > { %v1700_v39 = vsub.f32 1.0, %v1699_v42 }
 0xd07   : > { %1790 = vrot.lane.b32.xlu2 %v1788_v7, %s4786_s21 }
 0xd08   : > { %v1701_v15 = vmul.f32 %v4180_v29, %v1700_v39 }
 0xd0a   : > { %v1702_v56 = vadd.f32 %v4180_v29, %v1701_v15 }
 0xd0c   : > { %v1706_v28 = vsel %vm1705_vm1, %v4180_v29, %v1702_v56 }
 0xd0d   : > { %v1711_v61 = vsel %vm1708_vm2, %v1710_v32, %v1706_v28 }
 0xd0e   : > { %v1714_v36 = vmul.f32 %v1711_v61, %v5506_v52 }
 0xd61   : > { %v1791_v18 = vpop.permute.xlu2 %1790 }
 0xd62   : > { %v5486_v19 = vadd.f32 %v1791_v18, %v1783_v14 }
 0xd64   : > { %4181 = vtanh.f32 %v5486_v19 }
 0xd6a   : > { %v4182_v40 = vpop.eup %4181 }
 0xd6b   : > { %v1717_v55 = vpop.permute.xlu0 %1716  ;;  %1796 = vrot.lane.b32.xlu2 %v4182_v40, %s4785_s20 }
 0xd6c   : > { %v1719_v4 = vmul.f32 %v1717_v55, %v1711_v61 }
 0xd6e   : > { %1721 = vrot.lane.b32.xlu1 %v1719_v4, %s4786_s21 }
 0xdc5   : > { %v1797_v58 = vpop.permute.xlu2 %1796 }
 0xdc6   : > { %v1799_v37 = vmul.f32 %v1797_v58, %v1780_v24  ;;  %v872_v58 = vadd.f32 %v5419_v51, %v5139_v23 }
 0xdc8   : > { %v5494_v43 = vsel %vm1298_vm10, %v1799_v37, %v5452_v17 }
 0xdc9   : > { %v5498_v45 = vpack.c.bf16 %v5494_v43, %v5494_v43 }
 0xdcb   : > { %v1880_v34 = vunpack.c.l.b16 %v5498_v45 }
 0xdcd   : > { %v1881_v50 = vpack.c.b16 %v1880_v34, %v1880_v34 }
 0xdcf   : > { %1882 = vrot.lane.b32.xlu1 %v1881_v50, %s4786_s21 }
 0xde0   : > { %v1722_v60 = vpop.permute.xlu1 %1721 }
 0xde1   : > { %v5509_v17 = vadd.f32 %v1722_v60, %v1714_v36 }
 0xde3   : > { %4183 = vtanh.f32 %v5509_v17 }
 0xde9   : > { %v4184_v63 = vpop.eup %4183 }
 0xdea   : > { %1727 = vrot.lane.b32.xlu0 %v4184_v63, %s4785_s20 }
 0xe41   : > { %v1883_v2 = vpop.permute.xlu1 %1882 }
 0xe42   : > { %3743 = vmatmul.msk.bf16.vlgmr.msra.gmra.mxu1 %vm834_vm0, %v1883_v2 }
 0xe5c   : > { %v1728_v6 = vpop.permute.xlu0 %1727 }
 0xe5d   : > { %v1730_v53 = vmul.f32 %v1728_v6, %v1711_v61 }
 0xe5f   : > { %v5517_v48 = vsel %vm1373_vm7, %v1730_v53, %v5463_v10 }
 0xe60   : > { %v5521_v9 = vpack.c.bf16 %v5517_v48, %v5517_v48 }
 0xe62   : > { %v1811_v24 = vunpack.c.l.b16 %v5521_v9 }
 0xe64   : > { %v1812_v7 = vpack.c.b16 %v1811_v24, %v1811_v24 }
 0xe66   : > { %1813 = vrot.lane.b32.xlu2 %v1812_v7, %s4786_s21 }
 0xebf   : > { %v1896_v3 = vpop.f32.mrf.mxu1 }
 0xec0   : > { %v1900_v11 = vadd.f32 %v1896_v3, %v888_v16  ;;  %v1814_v29 = vpop.permute.xlu2 %1813 }
 0xec1   : > { %3741 = vmatmul.msk.bf16.vlgmr.msra.gmra.mxu0 %vm834_vm0, %v1814_v29 }
 0xec2   : > { %4185 = vtanh.f32 %v1900_v11  ;;  %v3744_v39 = vmul.f32 -1.442695, %v1900_v11 }
 0xec4   : > { %4187 = vpow2.f32 %v3744_v39 }
 0xec7   : > { %v1898_v10 = vpop.f32.mrf.mxu1 }
 0xec8   : > { %v4186_v42 = vpop.eup %4185 }
 0xec9   : > { %1923 = vrot.lane.b32.xlu0 %v4186_v42, %s4785_s20 }
 0xeca   : > { %v4188_v14 = vpop.eup %4187 }
 0xecb   : > { %v1904_v15 = vadd.f32 1.0, %v4188_v14  ;;  %v5538_v14 = vsel %vm1298_vm10, %v5486_v19, %v5483_v13 }
 0xecd   : > { %4189 = vrcp.f32 %v1904_v15  ;;  %v1916_v30 = vand.u32 2147483648, %v1904_v15  ;;  %vm1910_vm4 = vweird.f32 %v1904_v15  ;;  %v1914_v28 = vand.u32 2147483647, %v1904_v15 }
 0xecf   : > { %v1917_v40 = vor.u32 1.1754944e-38, %v1916_v30  ;;  %vm1915_vm6 = vcmp.eq.f32.partialorder %v1914_v28, 8.507059e+37 }
 0xed3   : > { %v4190_v18 = vpop.eup %4189 }
 0xed4   : > { %v1906_v56 = vmul.f32 %v4190_v18, %v1904_v15  ;;  %vm1911_vm3 = vweird.f32 %v4190_v18 }
 0xed5   : > { %vm1912_vm5 = vmor %vm1910_vm4, %vm1911_vm3 }
 0xed6   : > { %v1907_v21 = vsub.f32 1.0, %v1906_v56 }
 0xed8   : > { %v1908_v27 = vmul.f32 %v4190_v18, %v1907_v21 }
 0xeda   : > { %v1909_v22 = vadd.f32 %v4190_v18, %v1908_v27  ;;  %v5549_v27 = vsel %vm1373_vm7, %v5509_v17, %v5506_v52 }
 0xedc   : > { %v1913_v32 = vsel %vm1912_vm5, %v4190_v18, %v1909_v22 }
 0xedd   : > { %v1918_v61 = vsel %vm1915_vm6, %v1917_v40, %v1913_v32 }
 0xede   : > { %v1921_v15 = vmul.f32 %v1918_v61, %v5538_v14 }
 0xf3b   : > { %v1924_v55 = vpop.permute.xlu0 %1923 }
 0xf3c   : > { %v1926_v4 = vmul.f32 %v1924_v55, %v1918_v61 }
 0xf3e   : > { %1928 = vrot.lane.b32.xlu1 %v1926_v4, %s4786_s21  ;;  %v1827_v37 = vpop.f32.mrf.mxu0 }
 0xf3f   : > { %v1831_v34 = vadd.f32 %v1827_v37, %v872_v58 }
 0xf41   : > { %4191 = vtanh.f32 %v1831_v34  ;;  %v3742_v60 = vmul.f32 -1.442695, %v1831_v34 }
 0xf43   : > { %4193 = vpow2.f32 %v3742_v60 }
 0xf46   : > { %v1829_v50 = vpop.f32.mrf.mxu0 }
 0xf47   : > { %v4192_v36 = vpop.eup %4191 }
 0xf48   : > { %1854 = vrot.lane.b32.xlu2 %v4192_v36, %s4785_s20 }
 0xf49   : > { %v4194_v63 = vpop.eup %4193 }
 0xf4a   : > { %v1835_v2 = vadd.f32 1.0, %v4194_v63 }
 0xf4c   : > { %4195 = vrcp.f32 %v1835_v2  ;;  %v1847_v51 = vand.u32 2147483648, %v1835_v2  ;;  %vm1841_vm1 = vweird.f32 %v1835_v2  ;;  %v1845_v3 = vand.u32 2147483647, %v1835_v2 }
 0xf4e   : > { %v1848_v29 = vor.u32 1.1754944e-38, %v1847_v51  ;;  %vm1846_vm3 = vcmp.eq.f32.partialorder %v1845_v3, 8.507059e+37 }
 0xf52   : > { %v4196_v6 = vpop.eup %4195 }
 0xf53   : > { %v1837_v53 = vmul.f32 %v4196_v6, %v1835_v2  ;;  %vm1842_vm13 = vweird.f32 %v4196_v6 }
 0xf54   : > { %vm1843_vm2 = vmor %vm1841_vm1, %vm1842_vm13 }
 0xf55   : > { %v1838_v24 = vsub.f32 1.0, %v1837_v53 }
 0xf57   : > { %v1839_v7 = vmul.f32 %v4196_v6, %v1838_v24 }
 0xf59   : > { %v1840_v16 = vadd.f32 %v4196_v6, %v1839_v7 }
 0xf5b   : > { %v1844_v11 = vsel %vm1843_vm2, %v4196_v6, %v1840_v16  ;;  %v874_v16 = vadd.f32 %v5421_v59, %v5139_v23 }
 0xf5c   : > { %v1849_v42 = vsel %vm1846_vm3, %v1848_v29, %v1844_v11 }
 0xf5d   : > { %v1852_v22 = vmul.f32 %v1849_v42, %v5549_v27 }
 0xfa2   : > { %v1855_v10 = vpop.permute.xlu2 %1854 }
 0xfa3   : > { %v1857_v39 = vmul.f32 %v1855_v10, %v1849_v42 }
 0xfa5   : > { %1859 = vrot.lane.b32.xlu0 %v1857_v39, %s4786_s21 }
 0xfb0   : > { %v1929_v18 = vpop.permute.xlu1 %1928 }
 0xfb1   : > { %v5541_v56 = vadd.f32 %v1929_v18, %v1921_v15 }
 0xfb3   : > { %4197 = vtanh.f32 %v5541_v56 }
 0xfb9   : > { %v4198_v21 = vpop.eup %4197 }
 0xfba   : > { %1934 = vrot.lane.b32.xlu1 %v4198_v21, %s4785_s20 }
0x1017   : > { %v1860_v13 = vpop.permute.xlu0 %1859 }
0x1018   : > { %v5552_v19 = vadd.f32 %v1860_v13, %v1852_v22 }
0x101a   : > { %4199 = vtanh.f32 %v5552_v19 }
0x1020   : > { %v4200_v30 = vpop.eup %4199 }
0x1021   : > { %1865 = vrot.lane.b32.xlu2 %v4200_v30, %s4785_s20 }
0x102c   : > { %v1935_v28 = vpop.permute.xlu1 %1934 }
0x102d   : > { %v1937_v32 = vmul.f32 %v1935_v28, %v1918_v61 }
0x102f   : > { %v5559_v40 = vsel %vm1148_vm9, %v1937_v32, %v5494_v43 }
0x1030   : > { %v5563_v52 = vpack.c.bf16 %v5559_v40, %v5559_v40 }
0x1032   : > { %v2016_v17 = vunpack.c.l.b16 %v5563_v52 }
0x1034   : > { %v2017_v55 = vpack.c.b16 %v2016_v17, %v2016_v17 }
0x1036   : > { %2018 = vrot.lane.b32.xlu0 %v2017_v55, %s4786_s21 }
0x107b   : > { %v1866_v4 = vpop.permute.xlu2 %1865 }
0x107c   : > { %v1868_v58 = vmul.f32 %v1866_v4, %v1849_v42 }
0x107e   : > { %v5570_v61 = vsel %vm1223_vm8, %v1868_v58, %v5517_v48 }
0x107f   : > { %v5574_v43 = vpack.c.bf16 %v5570_v61, %v5570_v61 }
0x1081   : > { %v1949_v37 = vunpack.c.l.b16 %v5574_v43 }
0x1083   : > { %v1950_v34 = vpack.c.b16 %v1949_v37, %v1949_v37 }
0x1085   : > { %1951 = vrot.lane.b32.xlu1 %v1950_v34, %s4786_s21 }
0x10a8   : > { %v2019_v50 = vpop.permute.xlu0 %2018 }
0x10a9   : > { %3747 = vmatmul.msk.bf16.vlgmr.msrb.gmra.mxu3 %vm834_vm0, %v2019_v50 }
0x10f7   : > { %v1952_v36 = vpop.permute.xlu1 %1951 }
0x10f8   : > { %3745 = vmatmul.msk.bf16.vlgmr.msrb.gmra.mxu2 %vm834_vm0, %v1952_v36 }
0x112c   : > { %v2032_v60 = vpop.f32.mrf.mxu3 }
0x112d   : > { %v2036_v63 = vadd.f32 %v2032_v60, %v5142_v25 }
0x112f   : > { %4201 = vtanh.f32 %v2036_v63  ;;  %v3748_v6 = vmul.f32 -1.442695, %v2036_v63 }
0x1131   : > { %4203 = vpow2.f32 %v3748_v6  ;;  %v1939_v6 = vsel %vm1148_vm9, %v5541_v56, %v5538_v14  ;;  %v3922_v14 = vld [vmem:[#allocation16 + $0x14] sm:$0xf0]  ;;  %v3921_v56 = vld [vmem:[#allocation16 + $0x14] sm:$0xf] }
0x1134   : > { %v2034_v48 = vpop.f32.mrf.mxu3 }
0x1135   : > { %v4202_v2 = vpop.eup %4201 }
0x1136   : > { %2059 = vrot.lane.b32.xlu2 %v4202_v2, %s4785_s20 }
0x1137   : > { %v4204_v53 = vpop.eup %4203 }
0x1138   : > { %v2040_v24 = vadd.f32 1.0, %v4204_v53 }
0x113a   : > { %4205 = vrcp.f32 %v2040_v24  ;;  %v2052_v15 = vand.u32 2147483648, %v2040_v24  ;;  %vm2046_vm5 = vweird.f32 %v2040_v24  ;;  %v2050_v18 = vand.u32 2147483647, %v2040_v24 }
0x113c   : > { %v2053_v59 = vor.u32 1.1754944e-38, %v2052_v15  ;;  %vm2051_vm13 = vcmp.eq.f32.partialorder %v2050_v18, 8.507059e+37 }
0x1140   : > { %v4206_v7 = vpop.eup %4205 }
0x1141   : > { %v2042_v11 = vmul.f32 %v4206_v7, %v2040_v24  ;;  %vm2047_vm4 = vweird.f32 %v4206_v7 }
0x1142   : > { %vm2048_vm6 = vmor %vm2046_vm5, %vm2047_vm4  ;;  %vm1001_vm5 = vcmask 257024  }
0x1143   : > { %v2043_v29 = vsub.f32 1.0, %v2042_v11  ;;  %v3807_v11 = vld [vmem:[#allocation16] sm:$0xf] }
0x1145   : > { %v2044_v42 = vmul.f32 %v4206_v7, %v2043_v29  ;;  %v3920_v29 = vld [vmem:[#allocation16 + $0x4] sm:$0xf0] }
0x1147   : > { %v2045_v39 = vadd.f32 %v4206_v7, %v2044_v42  ;;  %v3809_v42 = vld [vmem:[#allocation16 + $0x8] sm:$0xf0] }
0x1149   : > { %v2049_v23 = vsel %vm2048_vm6, %v4206_v7, %v2045_v39 }
0x114a   : > { %v5587_v22 = vsel %vm2051_vm13, %v2053_v59, %v2049_v23 }
0x114b   : > { %v2057_v53 = vmul.f32 %v5587_v22, %v1939_v6 }
0x117b   : > { %v1965_v51 = vpop.f32.mrf.mxu2 }
0x117c   : > { %v1969_v3 = vadd.f32 %v1965_v51, %v874_v16 }
0x117e   : > { %4207 = vtanh.f32 %v1969_v3  ;;  %v3746_v30 = vmul.f32 -1.442695, %v1969_v3  ;;  %v3817_v3 = vld [vmem:[#allocation16 + $0x18] sm:$0xf0] }
0x1180   : > { %4209 = vpow2.f32 %v3746_v30 }
0x1183   : > { %v1967_v25 = vpop.f32.mrf.mxu2 }
0x1184   : > { %v4208_v10 = vpop.eup %4207  ;;  %v3820_v25 = vor.u32 %v3921_v56, %v3817_v3  ;;  %v5706_v3 = vld [vmem:[#allocation20] sm:$0xff] }
0x1185   : > { %1992 = vrot.lane.b32.xlu1 %v4208_v10, %s4785_s20  ;;  %v3919_v10 = vld [vmem:[#allocation16 + $0x4] sm:$0xf] }
0x1186   : > { %v4210_v28 = vpop.eup %4209  ;;  %2302 = vmatpush.bf16.msra.mxu3 %v3820_v25 }
0x1187   : > { %v1973_v32 = vadd.f32 1.0, %v4210_v28 }
0x1189   : > { %4211 = vrcp.f32 %v1973_v32  ;;  %v1985_v37 = vand.u32 2147483648, %v1973_v32  ;;  %vm1979_vm2 = vweird.f32 %v1973_v32  ;;  %v1983_v34 = vand.u32 2147483647, %v1973_v32 }
0x118b   : > { %v1986_v36 = vor.u32 1.1754944e-38, %v1985_v37  ;;  %vm1984_vm4 = vcmp.eq.f32.partialorder %v1983_v34, 8.507059e+37  ;;  %v3777_v37 = vld [vmem:[%s6210_s9 + $0x18] sm:$0xf0]  ;;  %v3923_v34 = vld [vmem:[%s6210_s9 + $0x4] sm:$0xf] }
0x118d   : > { %998 = vrot.lane.b32.xlu1 %v5198_v41, %s4786_s21 }
0x118f   : > { %v4212_v17 = vpop.eup %4211 }
0x1190   : > { %v2060_v21 = vpop.permute.xlu2 %2059  ;;  %v1975_v55 = vmul.f32 %v4212_v17, %v1973_v32  ;;  %vm1980_vm1 = vweird.f32 %v4212_v17 }
0x1191   : > { %v2062_v13 = vmul.f32 %v2060_v21, %v5587_v22  ;;  %vm1981_vm3 = vmor %vm1979_vm2, %vm1980_vm1 }
0x1192   : > { %v1976_v4 = vsub.f32 1.0, %v1975_v55  ;;  %v3767_v55 = vld [vmem:[%s6210_s9] sm:$0xf] }
0x1193   : > { %2064 = vrot.lane.b32.xlu0 %v2062_v13, %s4786_s21 }
0x1194   : > { %v1977_v58 = vmul.f32 %v4212_v17, %v1976_v4  ;;  %v3924_v4 = vld [vmem:[%s6210_s9 + $0x4] sm:$0xf0] }
0x1196   : > { %v1978_v41 = vadd.f32 %v4212_v17, %v1977_v58  ;;  %v3925_v58 = vld [vmem:[%s6210_s9 + $0x14] sm:$0xf] }
0x1198   : > { %v1982_v50 = vsel %vm1981_vm3, %v4212_v17, %v1978_v41  ;;  %v3768_v41 = vor.u32 %v3924_v4, %v3767_v55 }
0x1199   : > { %v5591_v63 = vsel %vm1984_vm4, %v1986_v36, %v1982_v50  ;;  %v3769_v50 = vld [vmem:[%s6210_s9 + $0x8] sm:$0xf0]  ;;  %v3780_v36 = vor.u32 %v3925_v58, %v3777_v37 }
0x119b   : > { %2192 = vmatpush.bf16.msrb.mxu1 %v3780_v36  ;;  %v2325_v36 = vld [vmem:[#allocation17] sm:$0x3] }
0x11f7   : > { %v1993_v60 = vpop.permute.xlu1 %1992 }
0x11f8   : > { %v1995_v48 = vmul.f32 %v1993_v60, %v5591_v63  ;;  %v3772_v60 = vor.u32 %v3923_v34, %v3769_v50 }
0x11fa   : > { %1997 = vrot.lane.b32.xlu2 %v1995_v48, %s4786_s21  ;;  %2193 = vmatpush.bf16.msrb.mxu1 %v3772_v60 }
0x11ff   : > { %v999_v2 = vpop.permute.xlu1 %998 }
0x1200   : > { %1002 = vst.msk [vmem:[#allocation4] sm:$0xf] %vm1001_vm5, %v999_v2  ;;  %v5684_v2 = vld [vmem:[#allocation20 + $0x8] sm:$0xff] }
0x1201   : > { %2448 = vmatpush.bf16.msra.mxu1 %v5684_v2 }
0x1202   : > { %1153 = vrot.lane.b32.xlu2 %v5275_v12, %s4786_s21  ;;  %v3815_v12 = vld [vmem:[#allocation16 + $0x10] sm:$0xf] }
0x1203   : > { %v3816_v51 = vor.u32 %v3922_v14, %v3815_v12 }
0x1205   : > { %v2065_v24 = vpop.permute.xlu0 %2064  ;;  %2273 = vmatpush.bf16.msra.mxu2 %v3816_v51  ;;  %2449 = vmatpush.bf16.msra.mxu1 %v5706_v3 }
0x1206   : > { %v2067_v7 = vadd.f32 %v2065_v24, %v2057_v53  ;;  %v5691_v24 = vld [vmem:[#allocation19] sm:$0xff] }
0x1208   : > { %4213 = vtanh.f32 %v2067_v7 }
0x120e   : > { %v4214_v16 = vpop.eup %4213 }
0x120f   : > { %2070 = vrot.lane.b32.xlu0 %v4214_v16, %s4785_s20 }
0x1217   : > { %1942 = vrot.lane.b32.xlu0 %v5563_v52, %s4786_s21  ;;  %v3808_v52 = vor.u32 %v3920_v29, %v3807_v11 }
0x1219   : > { %2274 = vmatpush.bf16.msra.mxu2 %v3808_v52 }
0x121f   : > { %1303 = vrot.lane.b32.xlu0 %v5342_v57, %s4786_s21  ;;  %v3812_v57 = vor.u32 %v3919_v10, %v3809_v42 }
0x1221   : > { %2303 = vmatpush.bf16.msra.mxu3 %v3812_v57 }
0x1225   : > { %2570 = vmatpush.bf16.msrb.mxu3 %v5684_v2 }
0x1227   : > { %1804 = vrot.lane.b32.xlu0 %v5498_v45, %s4786_s21 }
0x1229   : > { %2571 = vmatpush.bf16.msrb.mxu3 %v5706_v3 }
0x122f   : > { %1378 = vrot.lane.b32.xlu0 %v5328_v46, %s4786_s21  ;;  %v1870_v46 = vsel %vm1223_vm8, %v5552_v19, %v5549_v27 }
0x1230   : > { %v1990_v45 = vmul.f32 %v5591_v63, %v1870_v46 }
0x1254   : > { %v1998_v39 = vpop.permute.xlu2 %1997 }
0x1255   : > { %v2000_v15 = vadd.f32 %v1998_v39, %v1990_v45 }
0x1257   : > { %4215 = vtanh.f32 %v2000_v15 }
0x125c   : > { %v1154_v18 = vpop.permute.xlu2 %1153 }
0x125d   : > { %v4216_v23 = vpop.eup %4215  ;;  %1157 = vst.msk [vmem:[#allocation4 + $0x4] sm:$0xf] %vm1001_vm5, %v1154_v18 }
0x125e   : > { %2003 = vrot.lane.b32.xlu2 %v4216_v23, %s4785_s20 }
0x1264   : > { %v3911_v59 = vld [vmem:[#allocation4] sm:$0xff] }
0x1265   : > { %3821 = vmatmul.msk.bf16.vlgmr.msra.gmra.mxu2 %vm834_vm0, %v3911_v59  ;;  %3825 = vmatmul.msk.bf16.vlgmr.msra.gmra.mxu3 %vm834_vm0, %v3911_v59 }
0x1266   : > { %1666 = vrot.lane.b32.xlu2 %v5456_v35, %s4786_s21  ;;  %2814 = vmatpush.bf16.msra.mxu3 %v5684_v2 }
0x126a   : > { %2815 = vmatpush.bf16.msra.mxu3 %v5706_v3 }
0x126e   : > { %1735 = vrot.lane.b32.xlu2 %v5521_v9, %s4786_s21 }
0x1276   : > { %1873 = vrot.lane.b32.xlu2 %v5574_v43, %s4786_s21 }
0x127e   : > { %1228 = vrot.lane.b32.xlu2 %v5261_v5, %s4786_s21 }
0x1281   : > { %v2071_v27 = vpop.permute.xlu0 %2070 }
0x1282   : > { %v2073_v19 = vmul.f32 %v2071_v27, %v5587_v22 }
0x1284   : > { %v2074_v35 = vsel %vm993_vm11, %v2073_v19, %v5559_v40 }
0x1285   : > { %v2075_v21 = vpack.c.bf16 %v2074_v35, %v2074_v35 }
0x1287   : > { %2077 = vrot.lane.b32.xlu1 %v2075_v21, %s4786_s21 }
0x1289   : > { %v1943_v13 = vpop.permute.xlu0 %1942 }
0x128a   : > { %1946 = vst.msk [vmem:[#allocation5 + $0x4] sm:$0xf] %vm1001_vm5, %v1943_v13 }
0x128f   : > { %1453 = vrot.lane.b32.xlu1 %v5408_v20, %s4786_s21 }
0x1291   : > { %v1304_v9 = vpop.permute.xlu0 %1303 }
0x1292   : > { %1307 = vst.msk [vmem:[#allocation4 + $0x8] sm:$0xf] %vm1001_vm5, %v1304_v9 }
0x1297   : > { %1597 = vrot.lane.b32.xlu1 %v5467_v26, %s4786_s21 }
0x1299   : > { %v1805_v5 = vpop.permute.xlu0 %1804 }
0x129a   : > { %1808 = vst.msk [vmem:[#allocation5 + $0x8] sm:$0xf] %vm1001_vm5, %v1805_v5 }
0x129f   : > { %1528 = vrot.lane.b32.xlu1 %v5394_v31, %s4786_s21 }
0x12a1   : > { %v1379_v40 = vpop.permute.xlu0 %1378 }
0x12a2   : > { %1382 = vst.msk [vmem:[#allocation5 + $0x14] sm:$0xf] %vm1001_vm5, %v1379_v40 }
0x12a7   : > { %1078 = vrot.lane.b32.xlu1 %v5211_v49, %s4786_s21  ;;  %v3775_v49 = vld [vmem:[%s6209_s24 + $0x10] sm:$0xf]  ;;  %s6215_s24 = sld [smem:[#allocation44_spill]] }
0x12b8   : > { %v2004_v43 = vpop.permute.xlu2 %2003 }
0x12b9   : > { %v2006_v20 = vmul.f32 %v2004_v43, %v5591_v63  ;;  %v5679_v63 = vld [vmem:[#allocation19 + $0x8] sm:$0xff] }
0x12ba   : > { %2509 = vmatpush.bf16.msrb.mxu2 %v5679_v63 }
0x12bb   : > { %v2007_v22 = vsel %vm1073_vm12, %v2006_v20, %v5570_v61  ;;  %v3926_v61 = vld [vmem:[%s6210_s9 + $0x14] sm:$0xf0] }
0x12bc   : > { %v2008_v26 = vpack.c.bf16 %v2007_v22, %v2007_v22  ;;  %v3776_v32 = vor.u32 %v3926_v61, %v3775_v49 }
0x12be   : > { %2010 = vrot.lane.b32.xlu0 %v2008_v26, %s4786_s21  ;;  %2163 = vmatpush.bf16.msrb.mxu0 %v3776_v32 }
0x12bf   : > { %2510 = vmatpush.bf16.msrb.mxu2 %v5691_v24 }
0x12c0   : > { %v1667_v30 = vpop.permute.xlu2 %1666 }
0x12c1   : > { %1670 = vst.msk [vmem:[#allocation5 + $0xc] sm:$0xf] %vm1001_vm5, %v1667_v30 }
0x12c2   : > { %2164 = vmatpush.bf16.msrb.mxu0 %v3768_v41 }
0x12c3   : > { %2753 = vmatpush.bf16.msra.mxu2 %v5679_v63 }
0x12c6   : > { %2382 = vmatpush.bf16.msra.mxu0 %v5679_v63 }
0x12c7   : > { %2754 = vmatpush.bf16.msra.mxu2 %v5691_v24 }
0x12c8   : > { %v1736_v31 = vpop.permute.xlu2 %1735  ;;  %v3916_v14 = vld [vmem:[#allocation5 + $0x8] sm:$0xff] }
0x12c9   : > { %1739 = vst.msk [vmem:[#allocation4 + $0x14] sm:$0xf] %vm1001_vm5, %v1736_v31 }
0x12ca   : > { %2383 = vmatpush.bf16.msra.mxu0 %v5691_v24 }
0x12d0   : > { %v1874_v28 = vpop.permute.xlu2 %1873 }
0x12d1   : > { %1877 = vst.msk [vmem:[#allocation4 + $0x18] sm:$0xf] %vm1001_vm5, %v1874_v28 }
0x12d8   : > { %v1229_v17 = vpop.permute.xlu2 %1228 }
0x12d9   : > { %1232 = vst.msk [vmem:[#allocation5 + $0x18] sm:$0xf] %vm1001_vm5, %v1229_v17 }
0x12e8   : > { %v2276_v42 = vpop.f32.mrf.mxu2  ;;  %v5729_v52 = vpop.f32.mrf.mxu3 }
0x12f0   : > { %v5733_v45 = vpop.f32.mrf.mxu2  ;;  %v2307_v39 = vpop.f32.mrf.mxu3 }
0x12f9   : > { %v2078_v48 = vpop.permute.xlu1 %2077 }
0x12fa   : > { %2080 = vst.msk [vmem:[#allocation5] sm:$0xf] %vm1001_vm5, %v2078_v48  ;;  %v5757_v48 = vperm.slane %v2325_v36, 0 }
0x1301   : > { %v1454_v6 = vpop.permute.xlu1 %1453  ;;  %v3915_v53 = vld [vmem:[#allocation5] sm:$0xff] }
0x1302   : > { %1457 = vst.msk [vmem:[#allocation4 + $0xc] sm:$0xf] %vm1001_vm5, %v1454_v6  ;;  %3781 = vmatmul.msk.bf16.vlgmr.msrb.gmra.mxu0 %vm834_vm0, %v3915_v53  ;;  %3785 = vmatmul.msk.bf16.vlgmr.msrb.gmra.mxu1 %vm834_vm0, %v3915_v53 }
0x1303   : > { %2631 = vmatpush.bf16.msrb.mxu0 %v5679_v63  ;;  %2692 = vmatpush.bf16.msrb.mxu1 %v5684_v2 }
0x1307   : > { %2632 = vmatpush.bf16.msrb.mxu0 %v5691_v24  ;;  %2693 = vmatpush.bf16.msrb.mxu1 %v5706_v3 }
0x1309   : > { %v1598_v7 = vpop.permute.xlu1 %1597  ;;  %v3912_v16 = vld [vmem:[#allocation4 + $0x8] sm:$0xff] }
0x130a   : > { %1601 = vst.msk [vmem:[#allocation4 + $0x10] sm:$0xf] %vm1001_vm5, %v1598_v7  ;;  %3822 = vmatmul.msk.bf16.gmra.mxu2 %vm834_vm0, %v3912_v16  ;;  %3826 = vmatmul.msk.bf16.gmra.mxu3 %vm834_vm0, %v3912_v16 }
0x1311   : > { %v1529_v12 = vpop.permute.xlu1 %1528  ;;  %v3913_v51 = vld [vmem:[#allocation4 + $0x10] sm:$0xff] }
0x1312   : > { %1532 = vst.msk [vmem:[#allocation5 + $0x10] sm:$0xf] %vm1001_vm5, %v1529_v12  ;;  %3782 = vmatmul.msk.bf16.gmra.mxu0 %vm834_vm0, %v3916_v14  ;;  %3786 = vmatmul.msk.bf16.gmra.mxu1 %vm834_vm0, %v3916_v14 }
0x1319   : > { %v1079_v56 = vpop.permute.xlu1 %1078  ;;  %v3917_v11 = vld [vmem:[#allocation5 + $0x10] sm:$0xff] }
0x131a   : > { %1082 = vst.msk [vmem:[#allocation5 + $0x1c] sm:$0xf] %vm1001_vm5, %v1079_v56  ;;  %3823 = vmatmul.msk.bf16.gmra.mxu2 %vm834_vm0, %v3913_v51  ;;  %3827 = vmatmul.msk.bf16.gmra.mxu3 %vm834_vm0, %v3913_v51 }
0x1321   : > { %v3918_v25 = vld [vmem:[#allocation5 + $0x18] sm:$0xff] }
0x1322   : > { %3783 = vmatmul.msk.bf16.gmra.mxu0 %vm834_vm0, %v3917_v11  ;;  %3787 = vmatmul.msk.bf16.gmra.mxu1 %vm834_vm0, %v3917_v11 }
0x1330   : > { %v2011_v29 = vpop.permute.xlu0 %2010 }
0x1331   : > { %2014 = vst.msk [vmem:[#allocation4 + $0x1c] sm:$0xf] %vm1001_vm5, %v2011_v29 }
0x1332   : > { %3784 = vmatmul.msk.bf16.gmra.mxu0 %vm834_vm0, %v3918_v25  ;;  %3788 = vmatmul.msk.bf16.gmra.mxu1 %vm834_vm0, %v3918_v25  ;;  %v5764_v25 = vperm.slane %v2325_v36, 1 }
0x1338   : > { %v3914_v10 = vld [vmem:[#allocation4 + $0x18] sm:$0xff] }
0x1339   : > { %3824 = vmatmul.msk.bf16.gmra.mxu2 %vm834_vm0, %v3914_v10  ;;  %3828 = vmatmul.msk.bf16.gmra.mxu3 %vm834_vm0, %v3914_v10 }
0x1342   : > { %2384 = vmatmul.bf16.vlgmr.msra.gmra.mxu0 %v4784_v0  ;;  %2450 = vmatmul.bf16.vlgmr.msra.gmra.mxu1 %v4784_v0 }
0x1343   : > { %2875 = vmatpush.bf16.msra.mxu0 %v5679_v63  ;;  %2936 = vmatpush.bf16.msra.mxu1 %v5684_v2 }
0x1347   : > { %2876 = vmatpush.bf16.msra.mxu0 %v5691_v24  ;;  %2937 = vmatpush.bf16.msra.mxu1 %v5706_v3 }
0x137f   : > { %v2166_v57 = vpop.f32.mrf.mxu0  ;;  %v5731_v46 = vpop.f32.mrf.mxu1 }
0x1380   : > { %v2277_v60 = vadd.f32 %v2276_v42, %v2166_v57 }
0x1382   : > { %v2331_v12 = vadd.f32 %v5757_v48, %v2277_v60 }
0x1387   : > { %v5735_v15 = vpop.f32.mrf.mxu0  ;;  %v2197_v0 = vpop.f32.mrf.mxu1 }
0x1388   : > { %v5737_v18 = vadd.f32 %v2307_v39, %v2197_v0 }
0x138d   : > { %v2281_v23 = vpop.f32.mrf.mxu2  ;;  %v2310_v59 = vpop.f32.mrf.mxu3 }
0x138f   : > { %v2171_v27 = vpop.f32.mrf.mxu0  ;;  %v2200_v19 = vpop.f32.mrf.mxu1 }
0x1390   : > { %v5739_v35 = vadd.f32 %v2281_v23, %v2171_v27  ;;  %v5741_v21 = vadd.f32 %v2310_v59, %v2200_v19 }
0x1395   : > { %v2283_v13 = vpop.f32.mrf.mxu2  ;;  %v2312_v9 = vpop.f32.mrf.mxu3 }
0x1397   : > { %v2173_v5 = vpop.f32.mrf.mxu0  ;;  %v2202_v40 = vpop.f32.mrf.mxu1 }
0x1398   : > { %v5743_v43 = vadd.f32 %v2283_v13, %v2173_v5  ;;  %v5745_v20 = vadd.f32 %v2312_v9, %v2202_v40 }
0x139d   : > { %v2286_v22 = vpop.f32.mrf.mxu2  ;;  %v2315_v26 = vpop.f32.mrf.mxu3 }
0x139f   : > { %v2176_v30 = vpop.f32.mrf.mxu0  ;;  %v2205_v31 = vpop.f32.mrf.mxu1 }
0x13a0   : > { %v5747_v28 = vadd.f32 %v2286_v22, %v2176_v30  ;;  %v5749_v49 = vadd.f32 %v2315_v26, %v2205_v31 }
0x13a5   : > { %v2288_v61 = vpop.f32.mrf.mxu2  ;;  %v2317_v32 = vpop.f32.mrf.mxu3 }
0x13a7   : > { %v2178_v17 = vpop.f32.mrf.mxu0  ;;  %v2207_v55 = vpop.f32.mrf.mxu1 }
0x13a8   : > { %v5751_v4 = vadd.f32 %v2288_v61, %v2178_v17  ;;  %v5753_v58 = vadd.f32 %v2317_v32, %v2207_v55 }
0x13af   : > { %v2181_v41 = vpop.f32.mrf.mxu0  ;;  %v2210_v37 = vpop.f32.mrf.mxu1 }
0x13b7   : > { %v5755_v34 = vpop.f32.mrf.mxu0  ;;  %v2212_v50 = vpop.f32.mrf.mxu1 }
0x13bc   : > { %v2291_v6 = vpop.f32.mrf.mxu2  ;;  %v2320_v53 = vpop.f32.mrf.mxu3 }
0x13bd   : > { %v5759_v7 = vadd.f32 %v2291_v6, %v2181_v41  ;;  %v5761_v16 = vadd.f32 %v2320_v53, %v2210_v37 }
0x13bf   : > { %v2385_v14 = vpop.f32.mrf.mxu0  ;;  %v2451_v56 = vpop.f32.mrf.mxu1 }
0x13c0   : > { %v2389_v51 = vadd.f32 %v2385_v14, %v2331_v12 }
0x13c2   : > { %4217 = vtanh.f32 %v2389_v51  ;;  %v3837_v59 = vmul.f32 -1.442695, %v2389_v51 }
0x13c4   : > { %v2322_v11 = vpop.f32.mrf.mxu3 }
0x13c5   : > { %v2323_v29 = vadd.f32 %v2322_v11, %v2212_v50 }
0x13c7   : > { %v2387_v10 = vpop.f32.mrf.mxu0  ;;  %v2346_v42 = vadd.f32 %v5764_v25, %v2323_v29  ;;  %v2453_v57 = vpop.f32.mrf.mxu1 }
0x13c8   : > { %v4218_v39 = vpop.eup %4217 }
0x13c9   : > { %v2455_v0 = vadd.f32 %v2451_v56, %v2346_v42  ;;  %2412 = vrot.lane.b32.xlu0 %v4218_v39, %s4785_s20 }
0x13cb   : > { %4219 = vtanh.f32 %v2455_v0  ;;  %v3846_v27 = vmul.f32 -1.442695, %v2455_v0 }
0x13cc   : > { %4221 = vpow2.f32 %v3837_v59 }
0x13cd   : > { %4223 = vpow2.f32 %v3846_v27 }
0x13d1   : > { %v4220_v23 = vpop.eup %4219 }
0x13d2   : > { %2478 = vrot.lane.b32.xlu1 %v4220_v23, %s4785_s20  ;;  %v4222_v19 = vpop.eup %4221 }
0x13d3   : > { %v2393_v13 = vadd.f32 1.0, %v4222_v19  ;;  %v4224_v9 = vpop.eup %4223 }
0x13d4   : > { %v2459_v5 = vadd.f32 1.0, %v4224_v9 }
0x13d5   : > { %4225 = vrcp.f32 %v2393_v13  ;;  %v2405_v17 = vand.u32 2147483648, %v2393_v13  ;;  %vm2399_vm13 = vweird.f32 %v2393_v13  ;;  %v2403_v41 = vand.u32 2147483647, %v2393_v13 }
0x13d6   : > { %4227 = vrcp.f32 %v2459_v5  ;;  %v2471_v14 = vand.u32 2147483648, %v2459_v5  ;;  %vm2465_vm4 = vweird.f32 %v2459_v5  ;;  %v2469_v56 = vand.u32 2147483647, %v2459_v5 }
0x13d7   : > { %v2406_v50 = vor.u32 1.1754944e-38, %v2405_v17  ;;  %vm2404_vm2 = vcmp.eq.f32.partialorder %v2403_v41, 8.507059e+37  ;;  %v2279_v41 = vadd.f32 %v5733_v45, %v5735_v15 }
0x13d8   : > { %v2472_v11 = vor.u32 1.1754944e-38, %v2471_v14  ;;  %vm2470_vm14 = vcmp.eq.f32.partialorder %v2469_v56, 8.507059e+37 }
0x13db   : > { %v4226_v40 = vpop.eup %4225 }
0x13dc   : > { %v2395_v22 = vmul.f32 %v4226_v40, %v2393_v13  ;;  %v4228_v30 = vpop.eup %4227  ;;  %vm2400_vm6 = vweird.f32 %v4226_v40 }
0x13dd   : > { %v2461_v61 = vmul.f32 %v4228_v30, %v2459_v5  ;;  %vm2401_vm1 = vmor %vm2399_vm13, %vm2400_vm6  ;;  %vm2466_vm3 = vweird.f32 %v4228_v30 }
0x13de   : > { %v2396_v26 = vsub.f32 1.0, %v2395_v22  ;;  %vm2467_vm5 = vmor %vm2465_vm4, %vm2466_vm3 }
0x13df   : > { %v2462_v55 = vsub.f32 1.0, %v2461_v61 }
0x13e0   : > { %v2397_v31 = vmul.f32 %v4226_v40, %v2396_v26 }
0x13e1   : > { %v2463_v36 = vmul.f32 %v4228_v30, %v2462_v55  ;;  %v5799_v55 = vpop.f32.mrf.mxu2 }
0x13e2   : > { %v2398_v32 = vadd.f32 %v4226_v40, %v2397_v31 }
0x13e3   : > { %v2464_v12 = vadd.f32 %v4228_v30, %v2463_v36 }
0x13e4   : > { %v2402_v37 = vsel %vm2401_vm1, %v4226_v40, %v2398_v32 }
0x13e5   : > { %v2407_v60 = vsel %vm2404_vm2, %v2406_v50, %v2402_v37  ;;  %v2468_v51 = vsel %vm2467_vm5, %v4228_v30, %v2464_v12  ;;  %v2333_v37 = vadd.f32 %v5757_v48, %v2279_v41 }
0x13e6   : > { %v2473_v10 = vsel %vm2470_vm14, %v2472_v11, %v2468_v51  ;;  %v2410_v57 = vmul.f32 0.0, %v2407_v60 }
0x13e7   : > { %v2476_v59 = vmul.f32 0.0, %v2473_v10 }
0x143b   : > { %v2413_v6 = vpop.permute.xlu0 %2412 }
0x143c   : > { %v2415_v53 = vmul.f32 %v2413_v6, %v2407_v60  ;;  %v2344_v6 = vadd.f32 %v5764_v25, %v5761_v16 }
0x143e   : > { %2417 = vrot.lane.b32.xlu2 %v2415_v53, %s4786_s21 }
0x1444   : > { %v2479_v29 = vpop.permute.xlu1 %2478 }
0x1445   : > { %v2481_v42 = vmul.f32 %v2479_v29, %v2473_v10 }
0x1447   : > { %2483 = vrot.lane.b32.xlu0 %v2481_v42, %s4786_s21 }
0x1498   : > { %v2418_v39 = vpop.permute.xlu2 %2417 }
0x1499   : > { %v5771_v0 = vadd.f32 %v2418_v39, %v2410_v57 }
0x149b   : > { %4229 = vtanh.f32 %v5771_v0 }
0x14a1   : > { %v4230_v23 = vpop.eup %4229 }
0x14a2   : > { %2423 = vrot.lane.b32.xlu1 %v4230_v23, %s4785_s20 }
0x14b9   : > { %v2484_v27 = vpop.permute.xlu0 %2483 }
0x14ba   : > { %v5775_v19 = vadd.f32 %v2484_v27, %v2476_v59 }
0x14bc   : > { %4231 = vtanh.f32 %v5775_v19 }
0x14c2   : > { %v4232_v13 = vpop.eup %4231 }
0x14c3   : > { %2489 = vrot.lane.b32.xlu2 %v4232_v13, %s4785_s20 }
0x1514   : > { %v2424_v9 = vpop.permute.xlu1 %2423 }
0x1515   : > { %v2426_v5 = vmul.f32 %v2424_v9, %v2407_v60 }
0x1517   : > { %v5781_v40 = vsel %vm993_vm11, %v2426_v5, 0.0 }
0x1518   : > { %v2496_v22 = vpack.c.bf16 %v5781_v40, %v5781_v40 }
0x151a   : > { %2498 = vrot.lane.b32.xlu0 %v2496_v22, %s4786_s21 }
0x151d   : > { %v2490_v26 = vpop.permute.xlu2 %2489 }
0x151e   : > { %v2492_v30 = vmul.f32 %v2490_v26, %v2473_v10 }
0x1520   : > { %v5788_v31 = vsel %vm1073_vm12, %v2492_v30, 0.0 }
0x1521   : > { %v2557_v61 = vpack.c.bf16 %v5788_v31, %v5788_v31 }
0x1523   : > { %2559 = vrot.lane.b32.xlu1 %v2557_v61, %s4786_s21 }
0x158c   : > { %v2499_v32 = vpop.permute.xlu0 %2498 }
0x158d   : > { %3847 = vmatmul.msk.bf16.vlgmr.msrb.gmra.mxu2 %vm834_vm0, %v2499_v32 }
0x158e   : > { %2997 = vmatpush.bf16.msrb.mxu2 %v5679_v63 }
0x1592   : > { %2998 = vmatpush.bf16.msrb.mxu2 %v5691_v24 }
0x1595   : > { %v2560_v17 = vpop.permute.xlu1 %2559 }
0x1596   : > { %3849 = vmatmul.msk.bf16.vlgmr.msrb.gmra.mxu3 %vm834_vm0, %v2560_v17 }
0x1597   : > { %3058 = vmatpush.bf16.msrb.mxu3 %v5684_v2 }
0x159b   : > { %3059 = vmatpush.bf16.msrb.mxu3 %v5706_v3 }
0x1610   : > { %v2512_v50 = vpop.f32.mrf.mxu2 }
0x1611   : > { %v2516_v36 = vadd.f32 %v2512_v50, %v2333_v37 }
0x1613   : > { %4233 = vtanh.f32 %v2516_v36  ;;  %v3848_v45 = vmul.f32 -1.442695, %v2516_v36 }
0x1618   : > { %v2514_v60 = vpop.f32.mrf.mxu2 }
0x1619   : > { %v4234_v53 = vpop.eup %4233  ;;  %v2573_v12 = vpop.f32.mrf.mxu3 }
0x161a   : > { %v2577_v14 = vadd.f32 %v2573_v12, %v2344_v6  ;;  %2539 = vrot.lane.b32.xlu2 %v4234_v53, %s4785_s20 }
0x161c   : > { %4235 = vtanh.f32 %v2577_v14  ;;  %v3850_v57 = vmul.f32 -1.442695, %v2577_v14 }
0x161d   : > { %4237 = vpow2.f32 %v3848_v45 }
0x1621   : > { %v2575_v56 = vpop.f32.mrf.mxu3 }
0x1622   : > { %v4236_v51 = vpop.eup %4235  ;;  %v5813_v56 = vsel %vm993_vm11, %v5771_v0, 0.0 }
0x1623   : > { %2600 = vrot.lane.b32.xlu0 %v4236_v51, %s4785_s20  ;;  %v4238_v15 = vpop.eup %4237 }
0x1624   : > { %v2520_v11 = vadd.f32 1.0, %v4238_v15 }
0x1626   : > { %4239 = vrcp.f32 %v2520_v11  ;;  %v2532_v23 = vand.u32 2147483648, %v2520_v11  ;;  %vm2526_vm6 = vweird.f32 %v2520_v11  ;;  %v2530_v59 = vand.u32 2147483647, %v2520_v11 }
0x1627   : > { %4241 = vpow2.f32 %v3850_v57 }
0x1628   : > { %v2533_v9 = vor.u32 1.1754944e-38, %v2532_v23  ;;  %vm2531_vm1 = vcmp.eq.f32.partialorder %v2530_v59, 8.507059e+37 }
0x162c   : > { %v4240_v29 = vpop.eup %4239 }
0x162d   : > { %v2522_v10 = vmul.f32 %v4240_v29, %v2520_v11  ;;  %vm2527_vm14 = vweird.f32 %v4240_v29  ;;  %v4242_v13 = vpop.eup %4241  ;;  %v5822_v11 = vsel %vm1073_vm12, %v5775_v19, 0.0 }
0x162e   : > { %vm2528_vm13 = vmor %vm2526_vm6, %vm2527_vm14  ;;  %v2581_v26 = vadd.f32 1.0, %v4242_v13 }
0x162f   : > { %v2523_v42 = vsub.f32 1.0, %v2522_v10 }
0x1630   : > { %4243 = vrcp.f32 %v2581_v26  ;;  %v2593_v50 = vand.u32 2147483648, %v2581_v26  ;;  %vm2587_vm3 = vweird.f32 %v2581_v26  ;;  %v2591_v36 = vand.u32 2147483647, %v2581_v26 }
0x1631   : > { %v2524_v16 = vmul.f32 %v4240_v29, %v2523_v42 }
0x1632   : > { %v2594_v6 = vor.u32 1.1754944e-38, %v2593_v50  ;;  %vm2592_vm5 = vcmp.eq.f32.partialorder %v2591_v36, 8.507059e+37 }
0x1633   : > { %v2525_v39 = vadd.f32 %v4240_v29, %v2524_v16 }
0x1635   : > { %v2529_v27 = vsel %vm2528_vm13, %v4240_v29, %v2525_v39 }
0x1636   : > { %v2534_v5 = vsel %vm2531_vm1, %v2533_v9, %v2529_v27  ;;  %v4244_v61 = vpop.eup %4243 }
0x1637   : > { %v2583_v32 = vmul.f32 %v4244_v61, %v2581_v26  ;;  %vm2588_vm2 = vweird.f32 %v4244_v61  ;;  %v2537_v51 = vmul.f32 %v2534_v5, %v5813_v56 }
0x1638   : > { %vm2589_vm4 = vmor %vm2587_vm3, %vm2588_vm2 }
0x1639   : > { %v2584_v17 = vsub.f32 1.0, %v2583_v32  ;;  %v2342_v32 = vadd.f32 %v5764_v25, %v5753_v58 }
0x163b   : > { %v2585_v41 = vmul.f32 %v4244_v61, %v2584_v17 }
0x163d   : > { %v2586_v37 = vadd.f32 %v4244_v61, %v2585_v41 }
0x163f   : > { %v2590_v60 = vsel %vm2589_vm4, %v4244_v61, %v2586_v37 }
0x1640   : > { %v2595_v12 = vsel %vm2592_vm5, %v2594_v6, %v2590_v60 }
0x1641   : > { %v2598_v29 = vmul.f32 %v2595_v12, %v5822_v11 }
0x1674   : > { %v2540_v22 = vpop.permute.xlu2 %2539 }
0x1675   : > { %v2542_v30 = vmul.f32 %v2540_v22, %v2534_v5 }
0x1677   : > { %2544 = vrot.lane.b32.xlu1 %v2542_v30, %s4786_s21 }
0x1695   : > { %v2601_v53 = vpop.permute.xlu0 %2600 }
0x1696   : > { %v2603_v14 = vmul.f32 %v2601_v53, %v2595_v12 }
0x1698   : > { %2605 = vrot.lane.b32.xlu2 %v2603_v14, %s4786_s21 }
0x16e9   : > { %v2545_v45 = vpop.permute.xlu1 %2544 }
0x16ea   : > { %v5816_v15 = vadd.f32 %v2545_v45, %v2537_v51 }
0x16ec   : > { %4245 = vtanh.f32 %v5816_v15 }
0x16f2   : > { %v4246_v10 = vpop.eup %4245  ;;  %v2606_v42 = vpop.permute.xlu2 %2605 }
0x16f3   : > { %v5825_v57 = vadd.f32 %v2606_v42, %v2598_v29  ;;  %2550 = vrot.lane.b32.xlu0 %v4246_v10, %s4785_s20 }
0x16f5   : > { %4247 = vtanh.f32 %v5825_v57 }
0x16fb   : > { %v4248_v0 = vpop.eup %4247 }
0x16fc   : > { %2611 = vrot.lane.b32.xlu1 %v4248_v0, %s4785_s20 }
0x1765   : > { %v2551_v16 = vpop.permute.xlu0 %2550 }
0x1766   : > { %v2553_v39 = vmul.f32 %v2551_v16, %v2534_v5 }
0x1768   : > { %v5833_v19 = vsel %vm1148_vm9, %v2553_v39, %v5781_v40 }
0x1769   : > { %v2618_v23 = vpack.c.bf16 %v5833_v19, %v5833_v19 }
0x176b   : > { %2620 = vrot.lane.b32.xlu2 %v2618_v23, %s4786_s21 }
0x176e   : > { %v2612_v59 = vpop.permute.xlu1 %2611 }
0x176f   : > { %v2614_v27 = vmul.f32 %v2612_v59, %v2595_v12 }
0x1771   : > { %v5841_v13 = vsel %vm1223_vm8, %v2614_v27, %v5788_v31  ;;  %v2335_v31 = vadd.f32 %v5757_v48, %v5739_v35 }
0x1772   : > { %v2679_v9 = vpack.c.bf16 %v5841_v13, %v5841_v13 }
0x1774   : > { %2681 = vrot.lane.b32.xlu0 %v2679_v9, %s4786_s21 }
0x17c5   : > { %v2621_v5 = vpop.permute.xlu2 %2620 }
0x17c6   : > { %3851 = vmatmul.msk.bf16.vlgmr.msrb.gmra.mxu0 %vm834_vm0, %v2621_v5 }
0x17c7   : > { %3119 = vmatpush.bf16.msrb.mxu0 %v5679_v63 }
0x17cb   : > { %3120 = vmatpush.bf16.msrb.mxu0 %v5691_v24 }
0x17e6   : > { %v2682_v40 = vpop.permute.xlu0 %2681 }
0x17e7   : > { %3853 = vmatmul.msk.bf16.vlgmr.msrb.gmra.mxu1 %vm834_vm0, %v2682_v40 }
0x17e8   : > { %3180 = vmatpush.bf16.msrb.mxu1 %v5684_v2 }
0x17ec   : > { %3181 = vmatpush.bf16.msrb.mxu1 %v5706_v3 }
0x1843   : > { %v2634_v22 = vpop.f32.mrf.mxu0 }
0x1844   : > { %v2638_v26 = vadd.f32 %v2634_v22, %v2335_v31 }
0x1846   : > { %4249 = vtanh.f32 %v2638_v26  ;;  %v3852_v36 = vmul.f32 -1.442695, %v2638_v26 }
0x184b   : > { %v2636_v30 = vpop.f32.mrf.mxu0 }
0x184c   : > { %v4250_v61 = vpop.eup %4249 }
0x184d   : > { %2661 = vrot.lane.b32.xlu1 %v4250_v61, %s4785_s20 }
0x1864   : > { %v2695_v17 = vpop.f32.mrf.mxu1 }
0x1865   : > { %v2699_v41 = vadd.f32 %v2695_v17, %v2342_v32 }
0x1867   : > { %4251 = vtanh.f32 %v2699_v41  ;;  %v3854_v35 = vmul.f32 -1.442695, %v2699_v41 }
0x1868   : > { %4253 = vpow2.f32 %v3852_v36 }
0x1869   : > { %4255 = vpow2.f32 %v3854_v35 }
0x186c   : > { %v2697_v37 = vpop.f32.mrf.mxu1 }
0x186d   : > { %v4252_v50 = vpop.eup %4251  ;;  %v5864_v37 = vsel %vm1148_vm9, %v5816_v15, %v5813_v56 }
0x186e   : > { %2722 = vrot.lane.b32.xlu2 %v4252_v50, %s4785_s20  ;;  %v4254_v60 = vpop.eup %4253 }
0x186f   : > { %v2642_v6 = vadd.f32 1.0, %v4254_v60  ;;  %v4256_v53 = vpop.eup %4255  ;;  %v5874_v60 = vsel %vm1223_vm8, %v5825_v57, %v5822_v11 }
0x1870   : > { %v2703_v12 = vadd.f32 1.0, %v4256_v53 }
0x1871   : > { %4257 = vrcp.f32 %v2642_v6  ;;  %v2654_v0 = vand.u32 2147483648, %v2642_v6  ;;  %vm2648_vm6 = vweird.f32 %v2642_v6  ;;  %v2652_v39 = vand.u32 2147483647, %v2642_v6 }
0x1872   : > { %4259 = vrcp.f32 %v2703_v12  ;;  %v2715_v22 = vand.u32 2147483648, %v2703_v12  ;;  %vm2709_vm3 = vweird.f32 %v2703_v12  ;;  %v2713_v26 = vand.u32 2147483647, %v2703_v12 }
0x1873   : > { %v2655_v59 = vor.u32 1.1754944e-38, %v2654_v0  ;;  %vm2653_vm1 = vcmp.eq.f32.partialorder %v2652_v39, 8.507059e+37 }
0x1874   : > { %v2716_v61 = vor.u32 1.1754944e-38, %v2715_v22  ;;  %vm2714_vm5 = vcmp.eq.f32.partialorder %v2713_v26, 8.507059e+37 }
0x1877   : > { %v4258_v14 = vpop.eup %4257 }
0x1878   : > { %v2644_v51 = vmul.f32 %v4258_v14, %v2642_v6  ;;  %v4260_v45 = vpop.eup %4259  ;;  %vm2649_vm14 = vweird.f32 %v4258_v14 }
0x1879   : > { %v2705_v10 = vmul.f32 %v4260_v45, %v2703_v12  ;;  %vm2650_vm13 = vmor %vm2648_vm6, %vm2649_vm14  ;;  %vm2710_vm2 = vweird.f32 %v4260_v45 }
0x187a   : > { %v2645_v58 = vsub.f32 1.0, %v2644_v51  ;;  %vm2711_vm4 = vmor %vm2709_vm3, %vm2710_vm2 }
0x187b   : > { %v2706_v16 = vsub.f32 1.0, %v2705_v10 }
0x187c   : > { %v2646_v29 = vmul.f32 %v4258_v14, %v2645_v58 }
0x187d   : > { %v2707_v27 = vmul.f32 %v4260_v45, %v2706_v16 }
0x187e   : > { %v2647_v42 = vadd.f32 %v4258_v14, %v2646_v29 }
0x187f   : > { %v2708_v31 = vadd.f32 %v4260_v45, %v2707_v27 }
0x1880   : > { %v2651_v23 = vsel %vm2650_vm13, %v4258_v14, %v2647_v42 }
0x1881   : > { %v2656_v9 = vsel %vm2653_vm1, %v2655_v59, %v2651_v23  ;;  %v2712_v30 = vsel %vm2711_vm4, %v4260_v45, %v2708_v31  ;;  %v2340_v23 = vadd.f32 %v5764_v25, %v5749_v49 }
0x1882   : > { %v2717_v17 = vsel %vm2714_vm5, %v2716_v61, %v2712_v30  ;;  %v2659_v50 = vmul.f32 %v2656_v9, %v5864_v37 }
0x1883   : > { %v2720_v6 = vmul.f32 %v2717_v17, %v5874_v60 }
0x18bf   : > { %v2662_v5 = vpop.permute.xlu1 %2661 }
0x18c0   : > { %v2664_v40 = vmul.f32 %v2662_v5, %v2656_v9 }
0x18c2   : > { %2666 = vrot.lane.b32.xlu0 %v2664_v40, %s4786_s21 }
0x18c8   : > { %v2723_v32 = vpop.permute.xlu2 %2722 }
0x18c9   : > { %v2725_v41 = vmul.f32 %v2723_v32, %v2717_v17 }
0x18cb   : > { %2727 = vrot.lane.b32.xlu1 %v2725_v41, %s4786_s21 }
0x1934   : > { %v2667_v36 = vpop.permute.xlu0 %2666 }
0x1935   : > { %v5867_v35 = vadd.f32 %v2667_v36, %v2659_v50 }
0x1937   : > { %4261 = vtanh.f32 %v5867_v35 }
0x193d   : > { %v4262_v53 = vpop.eup %4261  ;;  %v2728_v12 = vpop.permute.xlu1 %2727 }
0x193e   : > { %v5877_v14 = vadd.f32 %v2728_v12, %v2720_v6  ;;  %2672 = vrot.lane.b32.xlu2 %v4262_v53, %s4785_s20 }
0x1940   : > { %4263 = vtanh.f32 %v5877_v14 }
0x1946   : > { %v4264_v56 = vpop.eup %4263 }
0x1947   : > { %2733 = vrot.lane.b32.xlu0 %v4264_v56, %s4785_s20 }
0x1998   : > { %v2673_v15 = vpop.permute.xlu2 %2672 }
0x1999   : > { %v2675_v51 = vmul.f32 %v2673_v15, %v2656_v9 }
0x199b   : > { %v5885_v11 = vsel %vm1298_vm10, %v2675_v51, %v5833_v19 }
0x199c   : > { %v2740_v57 = vpack.c.bf16 %v5885_v11, %v5885_v11 }
0x199e   : > { %2742 = vrot.lane.b32.xlu1 %v2740_v57, %s4786_s21 }
0x19b9   : > { %v2734_v58 = vpop.permute.xlu0 %2733 }
0x19ba   : > { %v2736_v45 = vmul.f32 %v2734_v58, %v2717_v17 }
0x19bc   : > { %v5893_v29 = vsel %vm1373_vm7, %v2736_v45, %v5841_v13  ;;  %v2337_v13 = vadd.f32 %v5757_v48, %v5743_v43 }
0x19bd   : > { %v2801_v10 = vpack.c.bf16 %v5893_v29, %v5893_v29 }
0x19bf   : > { %2803 = vrot.lane.b32.xlu2 %v2801_v10, %s4786_s21 }
0x1a10   : > { %v2743_v42 = vpop.permute.xlu1 %2742 }
0x1a11   : > { %3855 = vmatmul.msk.bf16.vlgmr.msra.gmra.mxu2 %vm834_vm0, %v2743_v42 }
0x1a12   : > { %3241 = vmatpush.bf16.msra.mxu2 %v5679_v63 }
0x1a16   : > { %3242 = vmatpush.bf16.msra.mxu2 %v5691_v24 }
0x1a19   : > { %v2804_v19 = vpop.permute.xlu2 %2803 }
0x1a1a   : > { %3857 = vmatmul.msk.bf16.vlgmr.msra.gmra.mxu3 %vm834_vm0, %v2804_v19 }
0x1a1b   : > { %3301 = vmatpush.bf16.msra.mxu3 %v5684_v2 }
0x1a1f   : > { %3302 = vmatpush.bf16.msra.mxu3 %v5706_v3 }
0x1a94   : > { %v2756_v0 = vpop.f32.mrf.mxu2 }
0x1a95   : > { %v2760_v16 = vadd.f32 %v2756_v0, %v2337_v13 }
0x1a97   : > { %4265 = vtanh.f32 %v2760_v16  ;;  %v3856_v3 = vmul.f32 -1.442695, %v2760_v16  ;;  %v5916_v16 = vsel %vm1298_vm10, %v5867_v35, %v5864_v37 }
0x1a9c   : > { %v2758_v39 = vpop.f32.mrf.mxu2 }
0x1a9d   : > { %v4266_v63 = vpop.eup %4265  ;;  %v2817_v59 = vpop.f32.mrf.mxu3 }
0x1a9e   : > { %v2821_v24 = vadd.f32 %v2817_v59, %v2340_v23  ;;  %2783 = vrot.lane.b32.xlu0 %v4266_v63, %s4785_s20 }
0x1aa0   : > { %4267 = vtanh.f32 %v2821_v24  ;;  %v3858_v43 = vmul.f32 -1.442695, %v2821_v24  ;;  %v5927_v24 = vsel %vm1373_vm7, %v5877_v14, %v5874_v60 }
0x1aa1   : > { %4269 = vpow2.f32 %v3856_v3 }
0x1aa2   : > { %4271 = vpow2.f32 %v3858_v43 }
0x1aa5   : > { %v2819_v27 = vpop.f32.mrf.mxu3 }
0x1aa6   : > { %v4268_v2 = vpop.eup %4267 }
0x1aa7   : > { %2844 = vrot.lane.b32.xlu1 %v4268_v2, %s4785_s20  ;;  %v4270_v9 = vpop.eup %4269 }
0x1aa8   : > { %v2764_v5 = vadd.f32 1.0, %v4270_v9  ;;  %v4272_v40 = vpop.eup %4271 }
0x1aa9   : > { %v2825_v31 = vadd.f32 1.0, %v4272_v40 }
0x1aaa   : > { %4273 = vrcp.f32 %v2764_v5  ;;  %v2776_v41 = vand.u32 2147483648, %v2764_v5  ;;  %vm2770_vm6 = vweird.f32 %v2764_v5  ;;  %v2774_v36 = vand.u32 2147483647, %v2764_v5 }
0x1aab   : > { %4275 = vrcp.f32 %v2825_v31  ;;  %v2837_v58 = vand.u32 2147483648, %v2825_v31  ;;  %vm2831_vm3 = vweird.f32 %v2825_v31  ;;  %v2835_v45 = vand.u32 2147483647, %v2825_v31 }
0x1aac   : > { %v2777_v53 = vor.u32 1.1754944e-38, %v2776_v41  ;;  %vm2775_vm1 = vcmp.eq.f32.partialorder %v2774_v36, 8.507059e+37 }
0x1aad   : > { %v2838_v42 = vor.u32 1.1754944e-38, %v2837_v58  ;;  %vm2836_vm5 = vcmp.eq.f32.partialorder %v2835_v45, 8.507059e+37 }
0x1ab0   : > { %v4274_v49 = vpop.eup %4273 }
0x1ab1   : > { %v2766_v22 = vmul.f32 %v4274_v49, %v2764_v5  ;;  %v4276_v30 = vpop.eup %4275  ;;  %vm2771_vm14 = vweird.f32 %v4274_v49 }
0x1ab2   : > { %v2827_v32 = vmul.f32 %v4276_v30, %v2825_v31  ;;  %vm2772_vm13 = vmor %vm2770_vm6, %vm2771_vm14  ;;  %vm2832_vm2 = vweird.f32 %v4276_v30  ;;  %vm6211_vm14 = vcmp.eq.s32.totalorder %v5384_v62, 1 }
0x1ab3   : > { %v2767_v26 = vsub.f32 1.0, %v2766_v22  ;;  %vm2833_vm4 = vmor %vm2831_vm3, %vm2832_vm2  ;;  %v2339_v22 = vadd.f32 %v5757_v48, %v5747_v28 }
0x1ab4   : > { %v2828_v50 = vsub.f32 1.0, %v2827_v32 }
0x1ab5   : > { %v2768_v61 = vmul.f32 %v4274_v49, %v2767_v26 }
0x1ab6   : > { %v2829_v12 = vmul.f32 %v4276_v30, %v2828_v50 }
0x1ab7   : > { %v2769_v17 = vadd.f32 %v4274_v49, %v2768_v61 }
0x1ab8   : > { %v2830_v57 = vadd.f32 %v4276_v30, %v2829_v12 }
0x1ab9   : > { %v2773_v6 = vsel %vm2772_vm13, %v4274_v49, %v2769_v17 }
0x1aba   : > { %v2778_v56 = vsel %vm2775_vm1, %v2777_v53, %v2773_v6  ;;  %v2834_v10 = vsel %vm2833_vm4, %v4276_v30, %v2830_v57 }
0x1abb   : > { %v2839_v13 = vsel %vm2836_vm5, %v2838_v42, %v2834_v10  ;;  %v2781_v39 = vmul.f32 %v2778_v56, %v5916_v16 }
0x1abc   : > { %v2842_v27 = vmul.f32 %v2839_v13, %v5927_v24 }
0x1b10   : > { %v2784_v15 = vpop.permute.xlu0 %2783 }
0x1b11   : > { %v2786_v51 = vmul.f32 %v2784_v15, %v2778_v56 }
0x1b13   : > { %2788 = vrot.lane.b32.xlu2 %v2786_v51, %s4786_s21 }
0x1b19   : > { %v2845_v19 = vpop.permute.xlu1 %2844 }
0x1b1a   : > { %v2847_v0 = vmul.f32 %v2845_v19, %v2839_v13 }
0x1b1c   : > { %2849 = vrot.lane.b32.xlu0 %v2847_v0, %s4786_s21 }
0x1b6d   : > { %v2789_v23 = vpop.permute.xlu2 %2788 }
0x1b6e   : > { %v5919_v63 = vadd.f32 %v2789_v23, %v2781_v39 }
0x1b70   : > { %4277 = vtanh.f32 %v5919_v63 }
0x1b76   : > { %v4278_v59 = vpop.eup %4277 }
0x1b77   : > { %2794 = vrot.lane.b32.xlu1 %v4278_v59, %s4785_s20 }
0x1b8e   : > { %v2850_v37 = vpop.permute.xlu0 %2849 }
0x1b8f   : > { %v5930_v35 = vadd.f32 %v2850_v37, %v2842_v27 }
0x1b91   : > { %4279 = vtanh.f32 %v5930_v35 }
0x1b97   : > { %v4280_v2 = vpop.eup %4279 }
0x1b98   : > { %2855 = vrot.lane.b32.xlu2 %v4280_v2, %s4785_s20 }
0x1be9   : > { %v2795_v3 = vpop.permute.xlu1 %2794 }
0x1bea   : > { %v2797_v43 = vmul.f32 %v2795_v3, %v2778_v56 }
0x1bec   : > { %v5937_v9 = vsel %vm1448_vm15, %v2797_v43, %v5885_v11 }
0x1bed   : > { %v2862_v60 = vpack.c.bf16 %v5937_v9, %v5937_v9 }
0x1bef   : > { %2864 = vrot.lane.b32.xlu0 %v2862_v60, %s4786_s21 }
0x1bf2   : > { %v2856_v14 = vpop.permute.xlu2 %2855 }
0x1bf3   : > { %v2858_v5 = vmul.f32 %v2856_v14, %v2839_v13 }
0x1bf5   : > { %v5945_v40 = vsel %vm6211_vm14, %v2858_v5, %v5893_v29  ;;  %v2338_v29 = vadd.f32 %v5764_v25, %v5745_v20 }
0x1bf6   : > { %v2923_v31 = vpack.c.bf16 %v5945_v40, %v5945_v40 }
0x1bf8   : > { %2925 = vrot.lane.b32.xlu1 %v2923_v31, %s4786_s21 }
0x1c61   : > { %v2865_v49 = vpop.permute.xlu0 %2864 }
0x1c62   : > { %3859 = vmatmul.msk.bf16.vlgmr.msra.gmra.mxu0 %vm834_vm0, %v2865_v49 }
0x1c63   : > { %3381 = vmatpush.bf16.msra.mxu0 %v3930_v1 }
0x1c6a   : > { %v2926_v11 = vpop.permute.xlu1 %2925 }
0x1c6b   : > { %3861 = vmatmul.msk.bf16.vlgmr.msra.gmra.mxu1 %vm834_vm0, %v2926_v11 }
0x1cdf   : > { %v2878_v26 = vpop.f32.mrf.mxu0 }
0x1ce0   : > { %v2882_v30 = vadd.f32 %v2878_v26, %v2339_v22  ;;  %v5964_v22 = vsel %vm1448_vm15, %v5919_v63, %v5916_v16 }
0x1ce2   : > { %4281 = vtanh.f32 %v2882_v30  ;;  %v3860_v6 = vmul.f32 -1.442695, %v2882_v30 }
0x1ce7   : > { %v2880_v61 = vpop.f32.mrf.mxu0 }
0x1ce8   : > { %v4282_v32 = vpop.eup %4281  ;;  %v2939_v17 = vpop.f32.mrf.mxu1 }
0x1ce9   : > { %v2943_v41 = vadd.f32 %v2939_v17, %v2338_v29  ;;  %2905 = vrot.lane.b32.xlu2 %v4282_v32, %s4785_s20 }
0x1ceb   : > { %4283 = vtanh.f32 %v2943_v41  ;;  %v3862_v51 = vmul.f32 -1.442695, %v2943_v41 }
0x1cec   : > { %4285 = vpow2.f32 %v3860_v6 }
0x1cf0   : > { %v2941_v50 = vpop.f32.mrf.mxu1 }
0x1cf1   : > { %v4284_v36 = vpop.eup %4283 }
0x1cf2   : > { %2966 = vrot.lane.b32.xlu0 %v4284_v36, %s4785_s20  ;;  %v4286_v28 = vpop.eup %4285 }
0x1cf3   : > { %v2886_v53 = vadd.f32 1.0, %v4286_v28 }
0x1cf5   : > { %4287 = vrcp.f32 %v2886_v53  ;;  %v2898_v58 = vand.u32 2147483648, %v2886_v53  ;;  %vm2892_vm13 = vweird.f32 %v2886_v53  ;;  %v2896_v45 = vand.u32 2147483647, %v2886_v53 }
0x1cf6   : > { %4289 = vpow2.f32 %v3862_v51 }
0x1cf7   : > { %v2899_v19 = vor.u32 1.1754944e-38, %v2898_v58  ;;  %vm2897_vm2 = vcmp.eq.f32.partialorder %v2896_v45, 8.507059e+37  ;;  %v2336_v58 = vadd.f32 %v5764_v25, %v5741_v21 }
0x1cfb   : > { %v4288_v12 = vpop.eup %4287 }
0x1cfc   : > { %v2888_v56 = vmul.f32 %v4288_v12, %v2886_v53  ;;  %vm2893_vm6 = vweird.f32 %v4288_v12  ;;  %v4290_v42 = vpop.eup %4289 }
0x1cfd   : > { %vm2894_vm1 = vmor %vm2892_vm13, %vm2893_vm6  ;;  %v2947_v39 = vadd.f32 1.0, %v4290_v42  ;;  %vm6212_vm6 = vcmp.eq.s32.totalorder %v5384_v62, 1 }
0x1cfe   : > { %v2889_v15 = vsub.f32 1.0, %v2888_v56  ;;  %v5974_v29 = vsel %vm6212_vm6, %v5930_v35, %v5927_v24  ;;  %vm6213_vm13 = vmmov %vm6212_vm6 }
0x1cff   : > { %4291 = vrcp.f32 %v2947_v39  ;;  %v2959_v43 = vand.u32 2147483648, %v2947_v39  ;;  %vm2953_vm4 = vweird.f32 %v2947_v39  ;;  %v2957_v60 = vand.u32 2147483647, %v2947_v39 }
0x1d00   : > { %v2890_v20 = vmul.f32 %v4288_v12, %v2889_v15  ;;  %v2341_v15 = vadd.f32 %v5757_v48, %v5751_v4 }
0x1d01   : > { %v2960_v5 = vor.u32 1.1754944e-38, %v2959_v43  ;;  %vm2958_vm14 = vcmp.eq.f32.partialorder %v2957_v60, 8.507059e+37 }
0x1d02   : > { %v2891_v57 = vadd.f32 %v4288_v12, %v2890_v20 }
0x1d04   : > { %v2895_v10 = vsel %vm2894_vm1, %v4288_v12, %v2891_v57 }
0x1d05   : > { %v2900_v13 = vsel %vm2897_vm2, %v2899_v19, %v2895_v10  ;;  %v4292_v59 = vpop.eup %4291 }
0x1d06   : > { %v2949_v27 = vmul.f32 %v4292_v59, %v2947_v39  ;;  %vm2954_vm3 = vweird.f32 %v4292_v59  ;;  %v2903_v26 = vmul.f32 %v2900_v13, %v5964_v22 }
0x1d07   : > { %vm2955_vm5 = vmor %vm2953_vm4, %vm2954_vm3 }
0x1d08   : > { %v2950_v37 = vsub.f32 1.0, %v2949_v27 }
0x1d0a   : > { %v2951_v2 = vmul.f32 %v4292_v59, %v2950_v37 }
0x1d0c   : > { %v2952_v3 = vadd.f32 %v4292_v59, %v2951_v2 }
0x1d0e   : > { %v2956_v14 = vsel %vm2955_vm5, %v4292_v59, %v2952_v3 }
0x1d0f   : > { %v2961_v49 = vsel %vm2958_vm14, %v2960_v5, %v2956_v14 }
0x1d10   : > { %v2964_v32 = vmul.f32 %v2961_v49, %v5974_v29 }
0x1d43   : > { %v2906_v0 = vpop.permute.xlu2 %2905 }
0x1d44   : > { %v2908_v23 = vmul.f32 %v2906_v0, %v2900_v13 }
0x1d46   : > { %2910 = vrot.lane.b32.xlu1 %v2908_v23, %s4786_s21 }
0x1d64   : > { %v2967_v31 = vpop.permute.xlu0 %2966 }
0x1d65   : > { %v2969_v11 = vmul.f32 %v2967_v31, %v2961_v49 }
0x1d67   : > { %2971 = vrot.lane.b32.xlu2 %v2969_v11, %s4786_s21 }
0x1db8   : > { %v2911_v30 = vpop.permute.xlu1 %2910 }
0x1db9   : > { %v5967_v61 = vadd.f32 %v2911_v30, %v2903_v26 }
0x1dbb   : > { %4293 = vtanh.f32 %v5967_v61 }
0x1dc1   : > { %v4294_v17 = vpop.eup %4293  ;;  %v2972_v41 = vpop.permute.xlu2 %2971 }
0x1dc2   : > { %v5977_v50 = vadd.f32 %v2972_v41, %v2964_v32  ;;  %2916 = vrot.lane.b32.xlu0 %v4294_v17, %s4785_s20 }
0x1dc4   : > { %4295 = vtanh.f32 %v5977_v50 }
0x1dca   : > { %v4296_v16 = vpop.eup %4295 }
0x1dcb   : > { %2977 = vrot.lane.b32.xlu1 %v4296_v16, %s4785_s20 }
0x1e34   : > { %v2917_v63 = vpop.permute.xlu0 %2916 }
0x1e35   : > { %v2919_v36 = vmul.f32 %v2917_v63, %v2900_v13 }
0x1e37   : > { %v5985_v24 = vsel %vm6213_vm13, %v2919_v36, %v5937_v9 }
0x1e38   : > { %v2984_v35 = vpack.c.bf16 %v5985_v24, %v5985_v24 }
0x1e3a   : > { %2986 = vrot.lane.b32.xlu2 %v2984_v35, %s4786_s21 }
0x1e3d   : > { %v2978_v6 = vpop.permute.xlu1 %2977 }
0x1e3e   : > { %v2980_v28 = vmul.f32 %v2978_v6, %v2961_v49 }
0x1e40   : > { %v5993_v53 = vsel %vm1448_vm15, %v2980_v28, %v5945_v40 }
0x1e41   : > { %v3045_v12 = vpack.c.bf16 %v5993_v53, %v5993_v53 }
0x1e43   : > { %3047 = vrot.lane.b32.xlu0 %v3045_v12, %s4786_s21 }
0x1e94   : > { %v2987_v56 = vpop.permute.xlu2 %2986 }
0x1e95   : > { %3863 = vmatmul.msk.bf16.vlgmr.msrb.gmra.mxu2 %vm834_vm0, %v2987_v56 }
0x1eb5   : > { %v3048_v9 = vpop.permute.xlu0 %3047 }
0x1eb6   : > { %3865 = vmatmul.msk.bf16.vlgmr.msrb.gmra.mxu3 %vm834_vm0, %v3048_v9 }
0x1f18   : > { %v3000_v51 = vpop.f32.mrf.mxu2 }
0x1f19   : > { %v3004_v20 = vadd.f32 %v3000_v51, %v2341_v15 }
0x1f1b   : > { %4297 = vtanh.f32 %v3004_v20  ;;  %v3864_v13 = vmul.f32 -1.442695, %v3004_v20  ;;  %v6022_v20 = vsel %vm1448_vm15, %v5977_v50, %v5974_v29 }
0x1f20   : > { %v3002_v57 = vpop.f32.mrf.mxu2 }
0x1f21   : > { %v4298_v40 = vpop.eup %4297 }
0x1f22   : > { %3027 = vrot.lane.b32.xlu1 %v4298_v40, %s4785_s20 }
0x1f39   : > { %v3061_v45 = vpop.f32.mrf.mxu3 }
0x1f3a   : > { %v3065_v10 = vadd.f32 %v3061_v45, %v2336_v58 }
0x1f3c   : > { %4299 = vtanh.f32 %v3065_v10  ;;  %v3866_v4 = vmul.f32 -1.442695, %v3065_v10 }
0x1f3d   : > { %4301 = vpow2.f32 %v3864_v13 }
0x1f3e   : > { %4303 = vpow2.f32 %v3866_v4  ;;  %v2343_v4 = vadd.f32 %v5757_v48, %v5759_v7 }
0x1f41   : > { %v3063_v42 = vpop.f32.mrf.mxu3 }
0x1f42   : > { %v4300_v19 = vpop.eup %4299 }
0x1f43   : > { %3088 = vrot.lane.b32.xlu2 %v4300_v19, %s4785_s20  ;;  %v4302_v0 = vpop.eup %4301 }
0x1f44   : > { %v3008_v39 = vadd.f32 1.0, %v4302_v0  ;;  %v4304_v23 = vpop.eup %4303 }
0x1f45   : > { %v3069_v59 = vadd.f32 1.0, %v4304_v23 }
0x1f46   : > { %4305 = vrcp.f32 %v3008_v39  ;;  %v3020_v14 = vand.u32 2147483648, %v3008_v39  ;;  %vm3014_vm2 = vweird.f32 %v3008_v39  ;;  %v3018_v31 = vand.u32 2147483647, %v3008_v39 }
0x1f47   : > { %4307 = vrcp.f32 %v3069_v59  ;;  %v3081_v16 = vand.u32 2147483648, %v3069_v59  ;;  %vm3075_vm14 = vweird.f32 %v3069_v59  ;;  %v3079_v63 = vand.u32 2147483647, %v3069_v59 }
0x1f48   : > { %v3021_v11 = vor.u32 1.1754944e-38, %v3020_v14  ;;  %vm3019_vm4 = vcmp.eq.f32.partialorder %v3018_v31, 8.507059e+37 }
0x1f49   : > { %v3082_v35 = vor.u32 1.1754944e-38, %v3081_v16  ;;  %vm3080_vm13 = vcmp.eq.f32.partialorder %v3079_v63, 8.507059e+37 }
0x1f4c   : > { %v4306_v27 = vpop.eup %4305 }
0x1f4d   : > { %v3010_v37 = vmul.f32 %v4306_v27, %v3008_v39  ;;  %v4308_v2 = vpop.eup %4307  ;;  %vm3015_vm1 = vweird.f32 %v4306_v27 }
0x1f4e   : > { %v3071_v43 = vmul.f32 %v4308_v2, %v3069_v59  ;;  %vm3016_vm3 = vmor %vm3014_vm2, %vm3015_vm1  ;;  %vm3076_vm5 = vweird.f32 %v4308_v2  ;;  %vm6214_vm1 = vcmp.eq.s32.totalorder %v5384_v62, 1 }
0x1f4f   : > { %v3011_v21 = vsub.f32 1.0, %v3010_v37  ;;  %vm3077_vm6 = vmor %vm3075_vm14, %vm3076_vm5  ;;  %v6012_v56 = vsel %vm6214_vm1, %v5967_v61, %v5964_v22 }
0x1f50   : > { %v3072_v5 = vsub.f32 1.0, %v3071_v43 }
0x1f51   : > { %v3012_v3 = vmul.f32 %v4306_v27, %v3011_v21 }
0x1f52   : > { %v3073_v26 = vmul.f32 %v4308_v2, %v3072_v5 }
0x1f53   : > { %v3013_v60 = vadd.f32 %v4306_v27, %v3012_v3 }
0x1f54   : > { %v3074_v41 = vadd.f32 %v4308_v2, %v3073_v26 }
0x1f55   : > { %v3017_v49 = vsel %vm3016_vm3, %v4306_v27, %v3013_v60 }
0x1f56   : > { %v3022_v30 = vsel %vm3019_vm4, %v3021_v11, %v3017_v49  ;;  %v3078_v36 = vsel %vm3077_vm6, %v4308_v2, %v3074_v41 }
0x1f57   : > { %v3083_v28 = vsel %vm3080_vm13, %v3082_v35, %v3078_v36  ;;  %v3025_v9 = vmul.f32 %v3022_v30, %v6012_v56 }
0x1f58   : > { %v3086_v57 = vmul.f32 %v3083_v28, %v6022_v20 }
0x1f94   : > { %v3028_v32 = vpop.permute.xlu1 %3027 }
0x1f95   : > { %v3030_v17 = vmul.f32 %v3028_v32, %v3022_v30 }
0x1f97   : > { %3032 = vrot.lane.b32.xlu0 %v3030_v17, %s4786_s21 }
0x1f9d   : > { %v3089_v6 = vpop.permute.xlu2 %3088 }
0x1f9e   : > { %v3091_v12 = vmul.f32 %v3089_v6, %v3083_v28 }
0x1fa0   : > { %3093 = vrot.lane.b32.xlu1 %v3091_v12, %s4786_s21 }
0x2009   : > { %v3033_v15 = vpop.permute.xlu0 %3032 }
0x200a   : > { %v6015_v51 = vadd.f32 %v3033_v15, %v3025_v9 }
0x200c   : > { %4309 = vtanh.f32 %v6015_v51 }
0x2012   : > { %v4310_v40 = vpop.eup %4309  ;;  %v3094_v58 = vpop.permute.xlu1 %3093 }
0x2013   : > { %v6025_v62 = vadd.f32 %v3094_v58, %v3086_v57  ;;  %3038 = vrot.lane.b32.xlu2 %v4310_v40, %s4785_s20 }
0x2015   : > { %4311 = vtanh.f32 %v6025_v62 }
0x201b   : > { %v4312_v22 = vpop.eup %4311 }
0x201c   : > { %3099 = vrot.lane.b32.xlu0 %v4312_v22, %s4785_s20 }
0x206d   : > { %v3039_v61 = vpop.permute.xlu2 %3038 }
0x206e   : > { %v3041_v45 = vmul.f32 %v3039_v61, %v3022_v30 }
0x2070   : > { %v6033_v38 = vsel %vm1373_vm7, %v3041_v45, %v5985_v24 }
0x2071   : > { %v3106_v29 = vpack.c.bf16 %v6033_v38, %v6033_v38 }
0x2073   : > { %3108 = vrot.lane.b32.xlu1 %v3106_v29, %s4786_s21  ;;  %v6060_v29 = vsel %vm1373_vm7, %v6015_v51, %v6012_v56 }
0x208e   : > { %v3100_v50 = vpop.permute.xlu0 %3099 }
0x208f   : > { %v3102_v10 = vmul.f32 %v3100_v50, %v3083_v28 }
0x2091   : > { %v6041_v42 = vsel %vm1298_vm10, %v3102_v10, %v5993_v53  ;;  %v2334_v53 = vadd.f32 %v5764_v25, %v5737_v18 }
0x2092   : > { %v3167_v19 = vpack.c.bf16 %v6041_v42, %v6041_v42 }
0x2094   : > { %3169 = vrot.lane.b32.xlu2 %v3167_v19, %s4786_s21 }
0x20e5   : > { %v3109_v13 = vpop.permute.xlu1 %3108 }
0x20e6   : > { %3867 = vmatmul.msk.bf16.vlgmr.msrb.gmra.mxu0 %vm834_vm0, %v3109_v13 }
0x20ee   : > { %v3170_v24 = vpop.permute.xlu2 %3169 }
0x20ef   : > { %3869 = vmatmul.msk.bf16.vlgmr.msrb.gmra.mxu1 %vm834_vm0, %v3170_v24  ;;  %v6071_v24 = vsel %vm1298_vm10, %v6025_v62, %v6022_v20 }
0x2163   : > { %v3122_v0 = vpop.f32.mrf.mxu0 }
0x2164   : > { %v3126_v39 = vadd.f32 %v3122_v0, %v2343_v4 }
0x2166   : > { %4313 = vtanh.f32 %v3126_v39  ;;  %v3868_v3 = vmul.f32 -1.442695, %v3126_v39 }
0x216b   : > { %v3124_v23 = vpop.f32.mrf.mxu0 }
0x216c   : > { %v4314_v59 = vpop.eup %4313  ;;  %v3183_v27 = vpop.f32.mrf.mxu1 }
0x216d   : > { %v3187_v37 = vadd.f32 %v3183_v27, %v2334_v53  ;;  %3149 = vrot.lane.b32.xlu0 %v4314_v59, %s4785_s20 }
0x216f   : > { %4315 = vtanh.f32 %v3187_v37  ;;  %v3870_v7 = vmul.f32 -1.442695, %v3187_v37  ;;  %v2294_v37 = vadd.f32 %v5799_v55, %v5755_v34 }
0x2170   : > { %4317 = vpow2.f32 %v3868_v3 }
0x2171   : > { %4319 = vpow2.f32 %v3870_v7 }
0x2174   : > { %v3185_v21 = vpop.f32.mrf.mxu1 }
0x2175   : > { %v4316_v2 = vpop.eup %4315  ;;  %v2345_v21 = vadd.f32 %v5757_v48, %v2294_v37 }
0x2176   : > { %3210 = vrot.lane.b32.xlu1 %v4316_v2, %s4785_s20  ;;  %v4318_v43 = vpop.eup %4317 }
0x2177   : > { %v3130_v60 = vadd.f32 1.0, %v4318_v43  ;;  %v4320_v14 = vpop.eup %4319 }
0x2178   : > { %v3191_v5 = vadd.f32 1.0, %v4320_v14 }
0x2179   : > { %4321 = vrcp.f32 %v3130_v60  ;;  %v3142_v17 = vand.u32 2147483648, %v3130_v60  ;;  %vm3136_vm2 = vweird.f32 %v3130_v60  ;;  %v3140_v16 = vand.u32 2147483647, %v3130_v60 }
0x217a   : > { %4323 = vrcp.f32 %v3191_v5  ;;  %v3203_v15 = vand.u32 2147483648, %v3191_v5  ;;  %vm3197_vm14 = vweird.f32 %v3191_v5  ;;  %v3201_v57 = vand.u32 2147483647, %v3191_v5 }
0x217b   : > { %v3143_v36 = vor.u32 1.1754944e-38, %v3142_v17  ;;  %vm3141_vm4 = vcmp.eq.f32.partialorder %v3140_v16, 8.507059e+37 }
0x217c   : > { %v3204_v58 = vor.u32 1.1754944e-38, %v3203_v15  ;;  %vm3202_vm13 = vcmp.eq.f32.partialorder %v3201_v57, 8.507059e+37 }
0x217f   : > { %v4322_v18 = vpop.eup %4321 }
0x2180   : > { %v3132_v31 = vmul.f32 %v4322_v18, %v3130_v60  ;;  %v4324_v11 = vpop.eup %4323  ;;  %vm3137_vm15 = vweird.f32 %v4322_v18 }
0x2181   : > { %v3193_v30 = vmul.f32 %v4324_v11, %v3191_v5  ;;  %vm3138_vm3 = vmor %vm3136_vm2, %vm3137_vm15  ;;  %vm3198_vm5 = vweird.f32 %v4324_v11 }
0x2182   : > { %v3133_v49 = vsub.f32 1.0, %v3132_v31  ;;  %vm3199_vm6 = vmor %vm3197_vm14, %vm3198_vm5 }
0x2183   : > { %v3194_v41 = vsub.f32 1.0, %v3193_v30 }
0x2184   : > { %v3134_v26 = vmul.f32 %v4322_v18, %v3133_v49 }
0x2185   : > { %v3195_v35 = vmul.f32 %v4324_v11, %v3194_v41 }
0x2186   : > { %v3135_v32 = vadd.f32 %v4322_v18, %v3134_v26 }
0x2187   : > { %v3196_v9 = vadd.f32 %v4324_v11, %v3195_v35 }
0x2188   : > { %v3139_v63 = vsel %vm3138_vm3, %v4322_v18, %v3135_v32 }
0x2189   : > { %v3144_v6 = vsel %vm3141_vm4, %v3143_v36, %v3139_v63  ;;  %v3200_v40 = vsel %vm3199_vm6, %v4324_v11, %v3196_v9 }
0x218a   : > { %v3205_v61 = vsel %vm3202_vm13, %v3204_v58, %v3200_v40  ;;  %v3147_v50 = vmul.f32 %v3144_v6, %v6060_v29 }
0x218b   : > { %v3208_v44 = vmul.f32 %v3205_v61, %v6071_v24 }
0x21df   : > { %v3150_v28 = vpop.permute.xlu0 %3149 }
0x21e0   : > { %v3152_v12 = vmul.f32 %v3150_v28, %v3144_v6 }
0x21e2   : > { %3154 = vrot.lane.b32.xlu2 %v3152_v12, %s4786_s21 }
0x21e8   : > { %v3211_v22 = vpop.permute.xlu1 %3210 }
0x21e9   : > { %v3213_v45 = vmul.f32 %v3211_v22, %v3205_v61 }
0x21eb   : > { %3215 = vrot.lane.b32.xlu0 %v3213_v45, %s4786_s21 }
0x223c   : > { %v3155_v10 = vpop.permute.xlu2 %3154 }
0x223d   : > { %v6063_v19 = vadd.f32 %v3155_v10, %v3147_v50 }
0x223f   : > { %4325 = vtanh.f32 %v6063_v19 }
0x2245   : > { %v4326_v13 = vpop.eup %4325 }
0x2246   : > { %3160 = vrot.lane.b32.xlu1 %v4326_v13, %s4785_s20  ;;  %v3165_v13 = vsel %vm1223_vm8, %v6063_v19, %v6060_v29  ;;  %v3928_v29 = vld [vmem:[#allocation22 + $0x8] sm:$0xff]  ;;  %v3929_v19 = vld [vmem:[#allocation23] sm:$0xff] }
0x2247   : > { %3412 = vmatpush.bf16.msra.mxu1 %v3928_v29  ;;  %3382 = vmatpush.bf16.msra.mxu0 %v3929_v19 }
0x225d   : > { %v3216_v56 = vpop.permute.xlu0 %3215 }
0x225e   : > { %v6074_v51 = vadd.f32 %v3216_v56, %v3208_v44 }
0x2260   : > { %4327 = vtanh.f32 %v6074_v51 }
0x2266   : > { %v4328_v4 = vpop.eup %4327 }
0x2267   : > { %3221 = vrot.lane.b32.xlu2 %v4328_v4, %s4785_s20 }
0x22b8   : > { %v3161_v0 = vpop.permute.xlu1 %3160 }
0x22b9   : > { %v3163_v39 = vmul.f32 %v3161_v0, %v3144_v6  ;;  %v3226_v0 = vsel %vm1148_vm9, %v6074_v51, %v6071_v24 }
0x22bb   : > { %v6081_v23 = vsel %vm1223_vm8, %v3163_v39, %v6033_v38 }
0x22bc   : > { %v3228_v54 = vpack.c.bf16 %v6081_v23, %v6081_v23 }
0x22be   : > { %3230 = vrot.lane.b32.xlu0 %v3228_v54, %s4786_s21 }
0x22c1   : > { %v3222_v20 = vpop.permute.xlu2 %3221 }
0x22c2   : > { %v3224_v62 = vmul.f32 %v3222_v20, %v3205_v61 }
0x22c4   : > { %v6089_v53 = vsel %vm1148_vm9, %v3224_v62, %v6041_v42  ;;  %v2306_v42 = vadd.f32 %v5729_v52, %v5731_v46 }
0x22c5   : > { %v3288_v59 = vpack.c.bf16 %v6089_v53, %v6089_v53 }
0x22c6   : > { %v2332_v43 = vadd.f32 %v5764_v25, %v2306_v42 }
0x22c7   : > { %3290 = vrot.lane.b32.xlu1 %v3288_v59, %s4786_s21 }
0x2330   : > { %v3231_v27 = vpop.permute.xlu0 %3230 }
0x2331   : > { %3871 = vmatmul.msk.bf16.vlgmr.msra.gmra.mxu2 %vm834_vm0, %v3231_v27 }
0x2339   : > { %v3291_v38 = vpop.permute.xlu1 %3290 }
0x233a   : > { %3873 = vmatmul.msk.bf16.vlgmr.msra.gmra.mxu3 %vm834_vm0, %v3291_v38 }
0x23b4   : > { %v3244_v2 = vpop.f32.mrf.mxu2 }
0x23b5   : > { %v3248_v3 = vadd.f32 %v3244_v2, %v2345_v21 }
0x23b7   : > { %4329 = vtanh.f32 %v3248_v3  ;;  %v3872_v34 = vmul.f32 -1.442695, %v3248_v3  ;;  %v3927_v3 = vld [vmem:[#allocation22] sm:$0xff] }
0x23b8   : > { %3413 = vmatpush.bf16.msra.mxu1 %v3927_v3 }
0x23bc   : > { %v3246_v7 = vpop.f32.mrf.mxu2 }
0x23bd   : > { %v4330_v60 = vpop.eup %4329  ;;  %v3304_v14 = vpop.f32.mrf.mxu3 }
0x23be   : > { %v3308_v5 = vadd.f32 %v3304_v14, %v2332_v43  ;;  %3271 = vrot.lane.b32.xlu2 %v4330_v60, %s4785_s20  ;;  %v4087_v43 = vld [vmem:[%s6215_s24] ss:$0 sm:$0xff] }
0x23c0   : > { %4331 = vtanh.f32 %v3308_v5  ;;  %v3874_v11 = vmul.f32 -1.442695, %v3308_v5 }
0x23c1   : > { %4333 = vpow2.f32 %v3872_v34 }
0x23c5   : > { %v3306_v18 = vpop.f32.mrf.mxu3 }
0x23c6   : > { %v4332_v31 = vpop.eup %4331  ;;  %v3429_v18 = vld [vmem:[%s5062_s18] sm:$0xff] }
0x23c7   : > { %3331 = vrot.lane.b32.xlu0 %v4332_v31, %s4785_s20  ;;  %v4334_v48 = vpop.eup %4333 }
0x23c8   : > { %v3252_v55 = vadd.f32 1.0, %v4334_v48 }
0x23ca   : > { %4335 = vrcp.f32 %v3252_v55  ;;  %v3264_v30 = vand.u32 2147483648, %v3252_v55  ;;  %vm3258_vm10 = vweird.f32 %v3252_v55  ;;  %v3262_v32 = vand.u32 2147483647, %v3252_v55 }
0x23cb   : > { %4337 = vpow2.f32 %v3874_v11 }
0x23cc   : > { %v3265_v16 = vor.u32 1.1754944e-38, %v3264_v30  ;;  %vm3263_vm15 = vcmp.eq.f32.partialorder %v3262_v32, 8.507059e+37 }
0x23d0   : > { %v4336_v49 = vpop.eup %4335 }
0x23d1   : > { %v3254_v52 = vmul.f32 %v4336_v49, %v3252_v55  ;;  %vm3259_vm7 = vweird.f32 %v4336_v49  ;;  %v4338_v41 = vpop.eup %4337 }
0x23d2   : > { %vm3260_vm1 = vmor %vm3258_vm10, %vm3259_vm7  ;;  %v3312_v35 = vadd.f32 1.0, %v4338_v41 }
0x23d3   : > { %v3255_v46 = vsub.f32 1.0, %v3254_v52 }
0x23d4   : > { %4339 = vrcp.f32 %v3312_v35  ;;  %v3324_v40 = vand.u32 2147483648, %v3312_v35  ;;  %vm3318_vm3 = vweird.f32 %v3312_v35  ;;  %v3322_v58 = vand.u32 2147483647, %v3312_v35 }
0x23d5   : > { %v3256_v25 = vmul.f32 %v4336_v49, %v3255_v46 }
0x23d6   : > { %v3325_v61 = vor.u32 1.1754944e-38, %v3324_v40  ;;  %vm3323_vm5 = vcmp.eq.f32.partialorder %v3322_v58, 8.507059e+37 }
0x23d7   : > { %v3257_v26 = vadd.f32 %v4336_v49, %v3256_v25 }
0x23d9   : > { %v3261_v17 = vsel %vm3260_vm1, %v4336_v49, %v3257_v26 }
0x23da   : > { %v3266_v63 = vsel %vm3263_vm15, %v3265_v16, %v3261_v17  ;;  %v4340_v28 = vpop.eup %4339 }
0x23db   : > { %v3314_v12 = vmul.f32 %v4340_v28, %v3312_v35  ;;  %vm3319_vm2 = vweird.f32 %v4340_v28  ;;  %v3269_v44 = vmul.f32 %v3266_v63, %v3165_v13 }
0x23dc   : > { %vm3320_vm4 = vmor %vm3318_vm3, %vm3319_vm2 }
0x23dd   : > { %v3315_v9 = vsub.f32 1.0, %v3314_v12 }
0x23df   : > { %v3316_v15 = vmul.f32 %v4340_v28, %v3315_v9 }
0x23e1   : > { %v3317_v57 = vadd.f32 %v4340_v28, %v3316_v15 }
0x23e3   : > { %v3321_v22 = vsel %vm3320_vm4, %v4340_v28, %v3317_v57 }
0x23e4   : > { %v3326_v50 = vsel %vm3323_vm5, %v3325_v61, %v3321_v22 }
0x23e5   : > { %v3329_v39 = vmul.f32 %v3326_v50, %v3226_v0 }
0x2418   : > { %v3272_v36 = vpop.permute.xlu2 %3271 }
0x2419   : > { %v3274_v6 = vmul.f32 %v3272_v36, %v3266_v63 }
0x241b   : > { %3276 = vrot.lane.b32.xlu1 %v3274_v6, %s4786_s21 }
0x2439   : > { %v3332_v45 = vpop.permute.xlu0 %3331 }
0x243a   : > { %v3334_v10 = vmul.f32 %v3332_v45, %v3326_v50 }
0x243c   : > { %3336 = vrot.lane.b32.xlu2 %v3334_v10, %s4786_s21 }
0x248d   : > { %v3277_v56 = vpop.permute.xlu1 %3276 }
0x248e   : > { %v3279_v4 = vadd.f32 %v3277_v56, %v3269_v44 }
0x2490   : > { %4341 = vtanh.f32 %v3279_v4 }
0x2496   : > { %v4342_v54 = vpop.eup %4341  ;;  %v3337_v20 = vpop.permute.xlu2 %3336 }
0x2497   : > { %v3339_v62 = vadd.f32 %v3337_v20, %v3329_v39  ;;  %3282 = vrot.lane.b32.xlu0 %v4342_v54, %s4785_s20 }
0x2499   : > { %4343 = vtanh.f32 %v3339_v62 }
0x249f   : > { %v4344_v59 = vpop.eup %4343 }
0x24a0   : > { %3342 = vrot.lane.b32.xlu1 %v4344_v59, %s4785_s20 }
0x2509   : > { %v3283_v27 = vpop.permute.xlu0 %3282 }
0x250a   : > { %v3285_v38 = vmul.f32 %v3283_v27, %v3266_v63 }
0x250c   : > { %v3286_v8 = vsel %vm1073_vm12, %v3285_v38, %v6081_v23  ;;  %vm3434_vm12 = vcmask 7168  }
0x250d   : > { %v3347_v24 = vpack.c.bf16 %v3286_v8, %v3286_v8 }
0x250f   : > { %3389 = vrot.lane.b32.xlu0 %v3347_v24, %s4786_s21 }
0x2512   : > { %v3343_v51 = vpop.permute.xlu1 %3342 }
0x2513   : > { %v3345_v37 = vmul.f32 %v3343_v51, %v3326_v50 }
0x2515   : > { %v3346_v21 = vsel %vm993_vm11, %v3345_v37, %v6089_v53 }
0x2516   : > { %v3352_v2 = vpack.c.bf16 %v3346_v21, %v3346_v21 }
0x2518   : > { %3358 = vrot.lane.b32.xlu2 %v3352_v2, %s4786_s21  ;;  %s6216_s21 = sld [smem:[#allocation45_spill]] }
0x251e   : > { %v4088_v14 = vld [vmem:[%s6216_s21] ss:$0 sm:$0xff] }
0x2572   : > { %v3359_v42 = vpop.permute.xlu2 %3358 }
0x2573   : > { %3883 = vmatmul.msk.bf16.vlgmr.msra.gmra.mxu0 %vm834_vm0, %v3359_v42 }
0x2581   : > { %v3390_v47 = vpop.permute.xlu0 %3389 }
0x2582   : > { %3892 = vmatmul.msk.bf16.vlgmr.msra.gmra.mxu1 %vm834_vm0, %v3390_v47 }
0x25f0   : > { %v3384_v23 = vpop.f32.mrf.mxu0 }
0x25f8   : > { %v3386_v7 = vpop.f32.mrf.mxu0 }
0x25ff   : > { %v3415_v53 = vpop.f32.mrf.mxu1 }
0x2600   : > { %v3416_v60 = vadd.f32 %v3415_v53, %v3384_v23 }
0x2602   : > { %v3423_v5 = vadd.f32 %v4087_v43, %v3416_v60 }
0x2604   : > { %v3428_v31 = vsel %vm993_vm11, %v3423_v5, %v4088_v14 }
0x2605   : > { %v3430_v34 = vmul.f32 %v3429_v18, %v3428_v31 }
0x2607   : > { %v3417_v48 = vpop.f32.mrf.mxu1  ;;  %v3431_v55 = vsel %vm834_vm0, %v3430_v34, 0.0 }
0x2608   : > { %3432 = vadd.xlane.f32.xlu1 %v3431_v55 }
0x267b   : > { %v3433_v49 = vpop.xlane.xlu1 %3432 }
0x267c   : > { %3435 = vst.msk [vmem:[%s757_s25] sm:$0xff] %vm3434_vm12, %v3433_v49 }
0x267d PF: > { %p34_p3 = scmp.ge.s32.totalorder %s4985_s3, 5   ;;  %s6218_s21 = smov %s4759_s22 }
0x267e   : > { %s6219_s22 = smov %s4763_s23  ;;  %s6220_s23 = smov %s4997_s4 }
0x267f   : > { %s6221_s24 = smov %s4985_s3  ;;  %36 = sbr.rel (!%p34_p3) target bundleno = 24 (0x18), region = 208 }
0x2684   :  { %3455 = vsyncpa [#allocation7], 1 }
0x2685   :  { %3457 = vsyncpa [#allocation7 + $0x1], 1 }
0x2686   :  { %3458 = vsyncpa [#allocation9], 1 }
0x2687   :  { %3460 = vsyncpa [#allocation9 + $0x1], 1 }
0x2688   :  { %3461 = vsyncpa [#allocation12], 1 }
0x2689   :  { %3462 = vsyncpa [#allocation15], 1 }
0x268a   :  { %3463 = vsyncpa [#allocation18], 1 }
0x268b   :  { %3464 = vsyncpa [#allocation21], 1 }
0x268c   :  { %3465 = vsyncpa [#allocation24], 1 }

</bundles_post_ra>
